<compile_context>
chip_gen: v5e
topology: v5e:2x2
jax: 0.10.0
libtpu: 0.0.40
codegen_flags: <defaults>
</compile_context>

<pallas_src>
import functools

import numpy as np
import jax
import jax.numpy as jnp
from jax import lax
from jax.experimental import pallas as pl
from jax.experimental.pallas import tpu as pltpu

BN_EPS = 1e-5
_VMEM_LIMIT_BYTES = 48 * 1024 * 1024     # < 64 MiB (v7x physical), < 128 MiB (v5e/v6e)
_VMEM_TILE_BUDGET = 36 * 1024 * 1024     # double-buffered I/O tiles + weights


def _make_kernel(K: int, Wp: int, M: int):
    """K: conv kernel size, Wp: padded image width, M = TILE_H * Wp output rows."""
    pad = K // 2

    def kernel(x_ref, wc_ref, shift_ref, ws_ref, wu_ref, bu_ref, o_ref):
        # x_ref     : (1, 1, R, Cin)    flattened zero-padded input tile (+halo)
        # wc_ref    : (K*K, Cin, Cout)  conv taps, BN scale pre-folded
        # shift_ref : (1, Cout)         folded conv-bias + BN shift (f32)
        # ws_ref    : (Cin, Cout)       1x1 skip-conv weight (adapt_res)
        # wu_ref    : (Cout, 4*Cout)    fused 2x2/s2 transpose-conv weight
        # bu_ref    : (1, 4*Cout)       fused transpose-conv bias (f32)
        # o_ref     : (1, 1, M, 4*Cout) column (di*2+dj)*Cout+c -> pixel (2i+di, 2j+dj)
        mm_dtype = wc_ref.dtype

        # --- BaseBlock conv: K*K accumulated MXU matmuls over shifted views ---
        acc = None
        xc = None
        for kh in range(K):
            for kw in range(K):
                xs = x_ref[0, 0, pl.ds(kh * Wp + kw, M), :].astype(mm_dtype)
                if kh == pad and kw == pad:
                    xc = xs                      # centre tap, reused by skip conv
                p = jnp.dot(xs, wc_ref[kh * K + kw],
                            preferred_element_type=jnp.float32)
                acc = p if acc is None else acc + p

        # --- conv bias + BatchNorm (eval) already folded into wc / shift ---
        y = acc + shift_ref[...]

        # --- Dropout2d: identity in eval mode.  SiLU via EUP reciprocal ---
        y = y * pl.reciprocal(1.0 + jnp.exp(-y), approx=True)

        # --- adapt_res: 1x1 skip conv == centre tap of the same input tile ---
        y = y + jnp.dot(xc, ws_ref[...], preferred_element_type=jnp.float32)

        # --- scale: ConvTranspose2d(k=2, s=2) fused into ONE lane-dense matmul ---
        up = jnp.dot(y.astype(mm_dtype), wu_ref[...],
                     preferred_element_type=jnp.float32) + bu_ref[...]
        o_ref[0, 0] = up.astype(o_ref.dtype)

    return kernel


def _largest_divisor_leq(n: int, cap: int) -> int:
    cap = max(1, min(n, cap))
    for d in range(cap, 0, -1):
        if n % d == 0:
            return d
    return 1


def _auto_tile_h(H, Wp, Cin, Cout, K, in_itemsize, mm_itemsize) -> int:
    """Largest divisor of H whose double-buffered tiles fit the VMEM budget."""
    pad = K // 2
    wbytes = (K * K * Cin * Cout + Cin * Cout + 4 * Cout * Cout) * mm_itemsize \
        + 5 * Cout * 4
    for th in range(H, 0, -1):
        if H % th:
            continue
        M = th * Wp
        R = -(-((th + 2 * pad) * Wp + (K - 1)) // 8) * 8
        step = 2 * (R * Cin * in_itemsize + M * 4 * Cout * 4) + 2 * wbytes
        if step <= _VMEM_TILE_BUDGET:
            return th
    return 1


@functools.partial(jax.jit, static_argnames=("kernel_size", "tile_h", "use_bf16"))
def adaptive_res_block(x_nchw, params, kernel_size=3, tile_h=None, use_bf16=False):
    """x_nchw: (N, Cin, H, W) float32 -> (N, Cout, 2H, 2W) float32."""
    K = kernel_size
    pad = K // 2

    w_conv = params["w_conv"].astype(jnp.float32)   # (K, K, Cin, Cout) HWIO
    b_conv = params["b_conv"].astype(jnp.float32)   # (Cout,)
    gamma, beta, mean, var = params["bn"]           # each (Cout,)
    w_skip = params["w_skip"].astype(jnp.float32)   # (Cin, Cout)
    w_up = params["w_up"].astype(jnp.float32)       # (Cout, Cout, 2, 2)
    b_up = params["b_up"].astype(jnp.float32)       # (Cout,)

    mm_dtype = jnp.bfloat16 if use_bf16 else jnp.float32

    x = jnp.transpose(x_nchw, (0, 2, 3, 1)).astype(mm_dtype)      # NHWC
    N, H, W, Cin = x.shape
    Cout = w_conv.shape[-1]
    Hp, Wp = H + 2 * pad, W + 2 * pad

    # --- fold conv bias + BatchNorm (eval) into the conv weights / shift ---
    scale = gamma * lax.rsqrt(var + BN_EPS)                       # (Cout,)
    wc = (w_conv * scale).reshape(K * K, Cin, Cout)               # tap = kh*K+kw
    shift = ((b_conv - mean) * scale + beta).reshape(1, Cout)

    # --- fuse the 2x2/s2 transpose conv into one (Cout, 4*Cout) matmul ---
    wu = jnp.transpose(w_up, (0, 2, 3, 1)).reshape(Cout, 4 * Cout)
    bu = jnp.tile(b_up, 4).reshape(1, 4 * Cout)

    wc = wc.astype(mm_dtype)
    w_skip = w_skip.astype(mm_dtype)
    wu = wu.astype(mm_dtype)

    # --- row tiling (halo of 2*pad rows per tile, duplicated on host) ---
    in_itemsize = 2 if use_bf16 else 4
    if tile_h is None:
        TH = _auto_tile_h(H, Wp, Cin, Cout, K, in_itemsize, in_itemsize)
    else:
        TH = _largest_divisor_leq(H, tile_h)
    nT = H // TH
    M = TH * Wp                                 # flattened output rows per tile
    R_min = (TH + 2 * pad) * Wp + (K - 1)       # input rows needed per tile
    R = ((R_min + 7) // 8) * 8                  # round up to sublane multiple
    guard = R - (TH + 2 * pad) * Wp

    # --- layout plumbing: pad, flatten, build overlapping row-tiles ---
    x_pad = jnp.pad(x, ((0, 0), (pad, pad), (pad, pad), (0, 0)))
    x_flat = x_pad.reshape(N, Hp * Wp, Cin)
    x_flat = jnp.pad(x_flat, ((0, 0), (0, guard), (0, 0)))
    x_tiles = jnp.stack([x_flat[:, t * M: t * M + R, :] for t in range(nT)],
                        axis=1)                                   # (N, nT, R, Cin)

    kernel = _make_kernel(K, Wp, M)

    grid_spec = pltpu.PrefetchScalarGridSpec(
        num_scalar_prefetch=0,
        grid=(N, nT),
        in_specs=[
            pl.BlockSpec((1, 1, R, Cin), lambda n, t: (n, t, 0, 0)),
            pl.BlockSpec((K * K, Cin, Cout), lambda n, t: (0, 0, 0)),
            pl.BlockSpec((1, Cout), lambda n, t: (0, 0)),
            pl.BlockSpec((Cin, Cout), lambda n, t: (0, 0)),
            pl.BlockSpec((Cout, 4 * Cout), lambda n, t: (0, 0)),
            pl.BlockSpec((1, 4 * Cout), lambda n, t: (0, 0)),
        ],
        out_specs=pl.BlockSpec((1, 1, M, 4 * Cout), lambda n, t: (n, t, 0, 0)),
    )

    out = pl.pallas_call(
        kernel,
        out_shape=jax.ShapeDtypeStruct((N, nT, M, 4 * Cout), jnp.float32),
        grid_spec=grid_spec,
        compiler_params=pltpu.CompilerParams(
            dimension_semantics=("parallel", "parallel"),
            vmem_limit_bytes=_VMEM_LIMIT_BYTES),
    )(x_tiles, wc, shift, w_skip, wu, bu)

    # --- glue: drop garbage padded columns, de-interleave stride-2 phases ---
    out = out.reshape(N, nT, TH, Wp, 2, 2, Cout)[:, :, :, :W]     # (n,t,r,j,di,dj,c)
    out = out.reshape(N, H, W, 2, 2, Cout)
    out = out.transpose(0, 1, 3, 2, 4, 5).reshape(N, 2 * H, 2 * W, Cout)
    return jnp.transpose(out, (0, 3, 1, 2))                        # back to NCHW


def reference(x_nchw, params, kernel_size=3):
    """Pure-JAX reference (eval-mode semantics) for cross-checking."""
    x = jnp.transpose(x_nchw, (0, 2, 3, 1)).astype(jnp.float32)
    N, H, W, Cin = x.shape
    Cout = params["w_conv"].shape[-1]

    y = lax.conv_general_dilated(
        x, params["w_conv"], (1, 1), "SAME",
        dimension_numbers=("NHWC", "HWIO", "NHWC"),
        precision=lax.Precision.HIGHEST) + params["b_conv"]
    gamma, beta, mean, var = params["bn"]
    y = (y - mean) * lax.rsqrt(var + BN_EPS) * gamma + beta
    y = y * jax.nn.sigmoid(y)
    y = y + jnp.einsum("nhwi,io->nhwo", x, params["w_skip"], precision="highest")
    up = jnp.einsum("nijc,coab->niajbo", y, params["w_up"], precision="highest")
    up = up.reshape(N, 2 * H, 2 * W, Cout) + params["b_up"]
    return jnp.transpose(up, (0, 3, 1, 2))


def make_params(key, in_channels, out_channels, kernel_size):
    ks = jax.random.split(key, 8)
    K = kernel_size
    w_conv = 0.1 * jax.random.normal(ks[0], (K, K, in_channels, out_channels),
                                     jnp.float32)
    b_conv = 0.05 * jax.random.normal(ks[1], (out_channels,), jnp.float32)
    gamma = 1.0 + 0.1 * jax.random.normal(ks[2], (out_channels,), jnp.float32)
    beta = 0.1 * jax.random.normal(ks[3], (out_channels,), jnp.float32)
    run_mean = 0.1 * jax.random.normal(ks[4], (out_channels,), jnp.float32)
    run_var = 0.5 + jnp.abs(jax.random.normal(ks[5], (out_channels,),
                                              jnp.float32)) * 0.5
    w_skip = 0.1 * jax.random.normal(ks[6], (in_channels, out_channels),
                                     jnp.float32)
    w_up = 0.1 * jax.random.normal(ks[7], (out_channels, out_channels, 2, 2),
                                   jnp.float32)
    b_up = jnp.zeros((out_channels,), jnp.float32) + 0.01
    return {
        "w_conv": w_conv, "b_conv": b_conv,
        "bn": jnp.stack([gamma, beta, run_mean, run_var]),
        "w_skip": w_skip, "w_up": w_up, "b_up": b_up,
    }


if __name__ == "__main__":
    N, Cin, Cout, H, W, K = 2, 4, 8, 16, 16, 3
    key = jax.random.PRNGKey(0)
    kx, kp = jax.random.split(key)
    x = jax.random.normal(kx, (N, Cin, H, W), jnp.float32)   # PyTorch NCHW
    params = make_params(kp, Cin, Cout, K)

    ref = jax.block_until_ready(reference(x, params, kernel_size=K))

    # f32 matmul path, auto (max-VMEM) tile -> single tile per batch image.
    out = jax.block_until_ready(adaptive_res_block(x, params, kernel_size=K))
    assert out.shape == (N, Cout, 2 * H, 2 * W), out.shape
    err = float(np.max(np.abs(np.asarray(out) - np.asarray(ref))))
    assert np.allclose(np.asarray(out), np.asarray(ref),
                       atol=1e-2, rtol=1e-2), "f32 path max abs err %g" % err

    # f32 path with explicit row tiling (exercises halo / multi-tile grid).
    out_t = jax.block_until_ready(
        adaptive_res_block(x, params, kernel_size=K, tile_h=8))
    err_t = float(np.max(np.abs(np.asarray(out_t) - np.asarray(ref))))
    assert np.allclose(np.asarray(out_t), np.asarray(ref),
                       atol=1e-2, rtol=1e-2), "tiled path max abs err %g" % err_t

    # bf16 matmul-operand + bf16-input-DMA path (v6e / v7x MXU); accumulation
    # and the BN/SiLU epilogue stay f32.
    out_bf = jax.block_until_ready(
        adaptive_res_block(x, params, kernel_size=K, tile_h=8, use_bf16=True))
    err_bf = float(np.max(np.abs(np.asarray(out_bf) - np.asarray(ref))))
    assert np.allclose(np.asarray(out_bf), np.asarray(ref),
                       atol=5e-2, rtol=5e-2), "bf16 path max abs err %g" % err_bf

    print("KERNEL_OK")
</pallas_src>

<mosaic_0001>
module attributes {stable_mosaic.version = 11 : i64} {
  func.func @kernel(%arg0: i32, %arg1: i32, %arg2: memref<1x1x328x4xf32, #tpu.memory_space<vmem>>, %arg3: memref<9x4x8xf32, #tpu.memory_space<vmem>>, %arg4: memref<1x8xf32, #tpu.memory_space<vmem>>, %arg5: memref<4x8xf32, #tpu.memory_space<vmem>>, %arg6: memref<8x32xf32, #tpu.memory_space<vmem>>, %arg7: memref<1x32xf32, #tpu.memory_space<vmem>>, %arg8: memref<1x1x288x32xf32, #tpu.memory_space<vmem>>) attributes {dimension_semantics = [#tpu.dimension_semantics<parallel>, #tpu.dimension_semantics<parallel>], iteration_bounds = array<i64: 2, 1>, scalar_prefetch = 0 : i64, scratch_operands = 0 : i64, tpu.core_type = #tpu.core_type<tc>, window_params = [{transform_indices = @transform_0, window_bounds = array<i64: 1, 1, 328, 4>}, {pipeline_mode = #tpu.pipeline_mode<synchronous>, transform_indices = @transform_1, window_bounds = array<i64: 9, 4, 8>}, {pipeline_mode = #tpu.pipeline_mode<synchronous>, transform_indices = @transform_2, window_bounds = array<i64: 1, 8>}, {pipeline_mode = #tpu.pipeline_mode<synchronous>, transform_indices = @transform_3, window_bounds = array<i64: 4, 8>}, {pipeline_mode = #tpu.pipeline_mode<synchronous>, transform_indices = @transform_4, window_bounds = array<i64: 8, 32>}, {pipeline_mode = #tpu.pipeline_mode<synchronous>, transform_indices = @transform_5, window_bounds = array<i64: 1, 32>}, {transform_indices = @transform_6, window_bounds = array<i64: 1, 1, 288, 32>}]} {
    %c0 = arith.constant 0 : index
    %c0_0 = arith.constant 0 : index
    %c0_1 = arith.constant 0 : index
    %c0_2 = arith.constant 0 : index
    %0 = vector.load %arg2[%c0, %c0_0, %c0_1, %c0_2] : memref<1x1x328x4xf32, #tpu.memory_space<vmem>>, vector<1x1x288x4xf32>
    %1 = vector.shape_cast %0 : vector<1x1x288x4xf32> to vector<288x4xf32>
    %c0_3 = arith.constant 0 : index
    %c0_4 = arith.constant 0 : index
    %c0_5 = arith.constant 0 : index
    %2 = vector.load %arg3[%c0_3, %c0_4, %c0_5] : memref<9x4x8xf32, #tpu.memory_space<vmem>>, vector<1x4x8xf32>
    %3 = vector.shape_cast %2 : vector<1x4x8xf32> to vector<4x8xf32>
    %cst = arith.constant dense<0.000000e+00> : vector<288x8xf32>
    %4 = tpu.matmul %1, %3, %cst {dimension_numbers = #tpu.dot_dimension_numbers<[1], [0], [0], [1], [0, 0, 1, 1], [], []>} : vector<288x4xf32>, vector<4x8xf32>, vector<288x8xf32> -> vector<288x8xf32>
    %c0_6 = arith.constant 0 : index
    %c0_7 = arith.constant 0 : index
    %c1 = arith.constant 1 : index
    %c0_8 = arith.constant 0 : index
    %5 = vector.load %arg2[%c0_6, %c0_7, %c1, %c0_8] : memref<1x1x328x4xf32, #tpu.memory_space<vmem>>, vector<1x1x288x4xf32>
    %6 = vector.shape_cast %5 : vector<1x1x288x4xf32> to vector<288x4xf32>
    %c1_9 = arith.constant 1 : index
    %c0_10 = arith.constant 0 : index
    %c0_11 = arith.constant 0 : index
    %7 = vector.load %arg3[%c1_9, %c0_10, %c0_11] : memref<9x4x8xf32, #tpu.memory_space<vmem>>, vector<1x4x8xf32>
    %8 = vector.shape_cast %7 : vector<1x4x8xf32> to vector<4x8xf32>
    %cst_12 = arith.constant dense<0.000000e+00> : vector<288x8xf32>
    %9 = tpu.matmul %6, %8, %cst_12 {dimension_numbers = #tpu.dot_dimension_numbers<[1], [0], [0], [1], [0, 0, 1, 1], [], []>} : vector<288x4xf32>, vector<4x8xf32>, vector<288x8xf32> -> vector<288x8xf32>
    %10 = arith.addf %4, %9 : vector<288x8xf32>
    %c0_13 = arith.constant 0 : index
    %c0_14 = arith.constant 0 : index
    %c2 = arith.constant 2 : index
    %c0_15 = arith.constant 0 : index
    %11 = vector.load %arg2[%c0_13, %c0_14, %c2, %c0_15] : memref<1x1x328x4xf32, #tpu.memory_space<vmem>>, vector<1x1x288x4xf32>
    %12 = vector.shape_cast %11 : vector<1x1x288x4xf32> to vector<288x4xf32>
    %c2_16 = arith.constant 2 : index
    %c0_17 = arith.constant 0 : index
    %c0_18 = arith.constant 0 : index
    %13 = vector.load %arg3[%c2_16, %c0_17, %c0_18] : memref<9x4x8xf32, #tpu.memory_space<vmem>>, vector<1x4x8xf32>
    %14 = vector.shape_cast %13 : vector<1x4x8xf32> to vector<4x8xf32>
    %cst_19 = arith.constant dense<0.000000e+00> : vector<288x8xf32>
    %15 = tpu.matmul %12, %14, %cst_19 {dimension_numbers = #tpu.dot_dimension_numbers<[1], [0], [0], [1], [0, 0, 1, 1], [], []>} : vector<288x4xf32>, vector<4x8xf32>, vector<288x8xf32> -> vector<288x8xf32>
    %16 = arith.addf %10, %15 : vector<288x8xf32>
    %c0_20 = arith.constant 0 : index
    %c0_21 = arith.constant 0 : index
    %c18 = arith.constant 18 : index
    %c0_22 = arith.constant 0 : index
    %17 = vector.load %arg2[%c0_20, %c0_21, %c18, %c0_22] : memref<1x1x328x4xf32, #tpu.memory_space<vmem>>, vector<1x1x288x4xf32>
    %18 = vector.shape_cast %17 : vector<1x1x288x4xf32> to vector<288x4xf32>
    %c3 = arith.constant 3 : index
    %c0_23 = arith.constant 0 : index
    %c0_24 = arith.constant 0 : index
    %19 = vector.load %arg3[%c3, %c0_23, %c0_24] : memref<9x4x8xf32, #tpu.memory_space<vmem>>, vector<1x4x8xf32>
    %20 = vector.shape_cast %19 : vector<1x4x8xf32> to vector<4x8xf32>
    %cst_25 = arith.constant dense<0.000000e+00> : vector<288x8xf32>
    %21 = tpu.matmul %18, %20, %cst_25 {dimension_numbers = #tpu.dot_dimension_numbers<[1], [0], [0], [1], [0, 0, 1, 1], [], []>} : vector<288x4xf32>, vector<4x8xf32>, vector<288x8xf32> -> vector<288x8xf32>
    %22 = arith.addf %16, %21 : vector<288x8xf32>
    %c0_26 = arith.constant 0 : index
    %c0_27 = arith.constant 0 : index
    %c19 = arith.constant 19 : index
    %c0_28 = arith.constant 0 : index
    %23 = vector.load %arg2[%c0_26, %c0_27, %c19, %c0_28] : memref<1x1x328x4xf32, #tpu.memory_space<vmem>>, vector<1x1x288x4xf32>
    %24 = vector.shape_cast %23 : vector<1x1x288x4xf32> to vector<288x4xf32>
    %c4 = arith.constant 4 : index
    %c0_29 = arith.constant 0 : index
    %c0_30 = arith.constant 0 : index
    %25 = vector.load %arg3[%c4, %c0_29, %c0_30] : memref<9x4x8xf32, #tpu.memory_space<vmem>>, vector<1x4x8xf32>
    %26 = vector.shape_cast %25 : vector<1x4x8xf32> to vector<4x8xf32>
    %cst_31 = arith.constant dense<0.000000e+00> : vector<288x8xf32>
    %27 = tpu.matmul %24, %26, %cst_31 {dimension_numbers = #tpu.dot_dimension_numbers<[1], [0], [0], [1], [0, 0, 1, 1], [], []>} : vector<288x4xf32>, vector<4x8xf32>, vector<288x8xf32> -> vector<288x8xf32>
    %28 = arith.addf %22, %27 : vector<288x8xf32>
    %c0_32 = arith.constant 0 : index
    %c0_33 = arith.constant 0 : index
    %c20 = arith.constant 20 : index
    %c0_34 = arith.constant 0 : index
    %29 = vector.load %arg2[%c0_32, %c0_33, %c20, %c0_34] : memref<1x1x328x4xf32, #tpu.memory_space<vmem>>, vector<1x1x288x4xf32>
    %30 = vector.shape_cast %29 : vector<1x1x288x4xf32> to vector<288x4xf32>
    %c5 = arith.constant 5 : index
    %c0_35 = arith.constant 0 : index
    %c0_36 = arith.constant 0 : index
    %31 = vector.load %arg3[%c5, %c0_35, %c0_36] : memref<9x4x8xf32, #tpu.memory_space<vmem>>, vector<1x4x8xf32>
    %32 = vector.shape_cast %31 : vector<1x4x8xf32> to vector<4x8xf32>
    %cst_37 = arith.constant dense<0.000000e+00> : vector<288x8xf32>
    %33 = tpu.matmul %30, %32, %cst_37 {dimension_numbers = #tpu.dot_dimension_numbers<[1], [0], [0], [1], [0, 0, 1, 1], [], []>} : vector<288x4xf32>, vector<4x8xf32>, vector<288x8xf32> -> vector<288x8xf32>
    %34 = arith.addf %28, %33 : vector<288x8xf32>
    %c0_38 = arith.constant 0 : index
    %c0_39 = arith.constant 0 : index
    %c36 = arith.constant 36 : index
    %c0_40 = arith.constant 0 : index
    %35 = vector.load %arg2[%c0_38, %c0_39, %c36, %c0_40] : memref<1x1x328x4xf32, #tpu.memory_space<vmem>>, vector<1x1x288x4xf32>
    %36 = vector.shape_cast %35 : vector<1x1x288x4xf32> to vector<288x4xf32>
    %c6 = arith.constant 6 : index
    %c0_41 = arith.constant 0 : index
    %c0_42 = arith.constant 0 : index
    %37 = vector.load %arg3[%c6, %c0_41, %c0_42] : memref<9x4x8xf32, #tpu.memory_space<vmem>>, vector<1x4x8xf32>
    %38 = vector.shape_cast %37 : vector<1x4x8xf32> to vector<4x8xf32>
    %cst_43 = arith.constant dense<0.000000e+00> : vector<288x8xf32>
    %39 = tpu.matmul %36, %38, %cst_43 {dimension_numbers = #tpu.dot_dimension_numbers<[1], [0], [0], [1], [0, 0, 1, 1], [], []>} : vector<288x4xf32>, vector<4x8xf32>, vector<288x8xf32> -> vector<288x8xf32>
    %40 = arith.addf %34, %39 : vector<288x8xf32>
    %c0_44 = arith.constant 0 : index
    %c0_45 = arith.constant 0 : index
    %c37 = arith.constant 37 : index
    %c0_46 = arith.constant 0 : index
    %41 = vector.load %arg2[%c0_44, %c0_45, %c37, %c0_46] : memref<1x1x328x4xf32, #tpu.memory_space<vmem>>, vector<1x1x288x4xf32>
    %42 = vector.shape_cast %41 : vector<1x1x288x4xf32> to vector<288x4xf32>
    %c7 = arith.constant 7 : index
    %c0_47 = arith.constant 0 : index
    %c0_48 = arith.constant 0 : index
    %43 = vector.load %arg3[%c7, %c0_47, %c0_48] : memref<9x4x8xf32, #tpu.memory_space<vmem>>, vector<1x4x8xf32>
    %44 = vector.shape_cast %43 : vector<1x4x8xf32> to vector<4x8xf32>
    %cst_49 = arith.constant dense<0.000000e+00> : vector<288x8xf32>
    %45 = tpu.matmul %42, %44, %cst_49 {dimension_numbers = #tpu.dot_dimension_numbers<[1], [0], [0], [1], [0, 0, 1, 1], [], []>} : vector<288x4xf32>, vector<4x8xf32>, vector<288x8xf32> -> vector<288x8xf32>
    %46 = arith.addf %40, %45 : vector<288x8xf32>
    %c0_50 = arith.constant 0 : index
    %c0_51 = arith.constant 0 : index
    %c38 = arith.constant 38 : index
    %c0_52 = arith.constant 0 : index
    %47 = vector.load %arg2[%c0_50, %c0_51, %c38, %c0_52] : memref<1x1x328x4xf32, #tpu.memory_space<vmem>>, vector<1x1x288x4xf32>
    %48 = vector.shape_cast %47 : vector<1x1x288x4xf32> to vector<288x4xf32>
    %c8 = arith.constant 8 : index
    %c0_53 = arith.constant 0 : index
    %c0_54 = arith.constant 0 : index
    %49 = vector.load %arg3[%c8, %c0_53, %c0_54] : memref<9x4x8xf32, #tpu.memory_space<vmem>>, vector<1x4x8xf32>
    %50 = vector.shape_cast %49 : vector<1x4x8xf32> to vector<4x8xf32>
    %cst_55 = arith.constant dense<0.000000e+00> : vector<288x8xf32>
    %51 = tpu.matmul %48, %50, %cst_55 {dimension_numbers = #tpu.dot_dimension_numbers<[1], [0], [0], [1], [0, 0, 1, 1], [], []>} : vector<288x4xf32>, vector<4x8xf32>, vector<288x8xf32> -> vector<288x8xf32>
    %52 = arith.addf %46, %51 : vector<288x8xf32>
    %c0_56 = arith.constant 0 : index
    %c0_57 = arith.constant 0 : index
    %53 = vector.load %arg4[%c0_56, %c0_57] : memref<1x8xf32, #tpu.memory_space<vmem>>, vector<1x8xf32>
    %54 = vector.broadcast %53 : vector<1x8xf32> to vector<288x8xf32>
    %55 = arith.addf %52, %54 : vector<288x8xf32>
    %cst_58 = arith.constant 0.000000e+00 : f32
    %56 = vector.broadcast %cst_58 : f32 to vector<288x8xf32>
    %57 = arith.subf %56, %55 : vector<288x8xf32>
    %58 = math.exp %57 : vector<288x8xf32>
    %cst_59 = arith.constant 1.000000e+00 : f32
    %59 = vector.broadcast %cst_59 : f32 to vector<288x8xf32>
    %60 = arith.addf %59, %58 : vector<288x8xf32>
    %61 = tpu.reciprocal %60 {approx = true} : vector<288x8xf32> -> vector<288x8xf32>
    %62 = arith.mulf %55, %61 : vector<288x8xf32>
    %c0_60 = arith.constant 0 : index
    %c0_61 = arith.constant 0 : index
    %63 = vector.load %arg5[%c0_60, %c0_61] : memref<4x8xf32, #tpu.memory_space<vmem>>, vector<4x8xf32>
    %cst_62 = arith.constant dense<0.000000e+00> : vector<288x8xf32>
    %64 = tpu.matmul %24, %63, %cst_62 {dimension_numbers = #tpu.dot_dimension_numbers<[1], [0], [0], [1], [0, 0, 1, 1], [], []>} : vector<288x4xf32>, vector<4x8xf32>, vector<288x8xf32> -> vector<288x8xf32>
    %65 = arith.addf %62, %64 : vector<288x8xf32>
    %c0_63 = arith.constant 0 : index
    %c0_64 = arith.constant 0 : index
    %66 = vector.load %arg6[%c0_63, %c0_64] : memref<8x32xf32, #tpu.memory_space<vmem>>, vector<8x32xf32>
    %cst_65 = arith.constant dense<0.000000e+00> : vector<288x32xf32>
    %67 = tpu.matmul %65, %66, %cst_65 {dimension_numbers = #tpu.dot_dimension_numbers<[1], [0], [0], [1], [0, 0, 1, 1], [], []>} : vector<288x8xf32>, vector<8x32xf32>, vector<288x32xf32> -> vector<288x32xf32>
    %c0_66 = arith.constant 0 : index
    %c0_67 = arith.constant 0 : index
    %68 = vector.load %arg7[%c0_66, %c0_67] : memref<1x32xf32, #tpu.memory_space<vmem>>, vector<1x32xf32>
    %69 = vector.broadcast %68 : vector<1x32xf32> to vector<288x32xf32>
    %70 = arith.addf %67, %69 : vector<288x32xf32>
    %c0_68 = arith.constant 0 : index
    %c0_69 = arith.constant 0 : index
    %c0_70 = arith.constant 0 : index
    %c0_71 = arith.constant 0 : index
    %71 = vector.load %arg8[%c0_68, %c0_69, %c0_70, %c0_71] : memref<1x1x288x32xf32, #tpu.memory_space<vmem>>, vector<1x1x288x32xf32>
    %72 = vector.shape_cast %71 : vector<1x1x288x32xf32> to vector<288x32xf32>
    %73 = vector.shape_cast %70 : vector<288x32xf32> to vector<1x1x288x32xf32>
    tpu.vector_store %arg8[%c0_68, %c0_69, %c0_70, %c0_71], %73 {strides = array<i32>} : memref<1x1x288x32xf32, #tpu.memory_space<vmem>>, vector<1x1x288x32xf32>,
    return
  }
  func.func @transform_0(%arg0: i32, %arg1: i32) -> (i32, i32, i32, i32) {
    %c0_i32 = arith.constant 0 : i32
    %c0_i32_0 = arith.constant 0 : i32
    %c0_i32_1 = arith.constant 0 : i32
    return %arg0, %arg1, %c0_i32, %c0_i32_0 : i32, i32, i32, i32
  }
  func.func @transform_1(%arg0: i32, %arg1: i32) -> (i32, i32, i32) {
    %c0_i32 = arith.constant 0 : i32
    %c0_i32_0 = arith.constant 0 : i32
    %c0_i32_1 = arith.constant 0 : i32
    %c0_i32_2 = arith.constant 0 : i32
    return %c0_i32, %c0_i32_0, %c0_i32_1 : i32, i32, i32
  }
  func.func @transform_2(%arg0: i32, %arg1: i32) -> (i32, i32) {
    %c0_i32 = arith.constant 0 : i32
    %c0_i32_0 = arith.constant 0 : i32
    %c0_i32_1 = arith.constant 0 : i32
    return %c0_i32, %c0_i32_0 : i32, i32
  }
  func.func @transform_3(%arg0: i32, %arg1: i32) -> (i32, i32) {
    %c0_i32 = arith.constant 0 : i32
    %c0_i32_0 = arith.constant 0 : i32
    %c0_i32_1 = arith.constant 0 : i32
    return %c0_i32, %c0_i32_0 : i32, i32
  }
  func.func @transform_4(%arg0: i32, %arg1: i32) -> (i32, i32) {
    %c0_i32 = arith.constant 0 : i32
    %c0_i32_0 = arith.constant 0 : i32
    %c0_i32_1 = arith.constant 0 : i32
    return %c0_i32, %c0_i32_0 : i32, i32
  }
  func.func @transform_5(%arg0: i32, %arg1: i32) -> (i32, i32) {
    %c0_i32 = arith.constant 0 : i32
    %c0_i32_0 = arith.constant 0 : i32
    %c0_i32_1 = arith.constant 0 : i32
    return %c0_i32, %c0_i32_0 : i32, i32
  }
  func.func @transform_6(%arg0: i32, %arg1: i32) -> (i32, i32, i32, i32) {
    %c0_i32 = arith.constant 0 : i32
    %c0_i32_0 = arith.constant 0 : i32
    %c0_i32_1 = arith.constant 0 : i32
    return %arg0, %arg1, %c0_i32, %c0_i32_0 : i32, i32, i32, i32
  }
}

</mosaic_0001>

<bundles_post_ra>
// kernel: tile.9
= control target key start
LH: loop header
LB: loop body
LE: loop exit
PB: predicated region body
PF: predicated region fallthrough
CT: control target
= control target key end

     0   :  { %s37_s8 = smov 8   ;;  %s38_s9 = smov 16   ;;  %vm7_vm0 = vcmask 64512   ;;  %vm13_vm1 = vcmask 261312   ;;  %vm19_vm2 = vcmask 195712   ;;  %vm25_vm3 = vcmask 130112   ;;  %s55_s0 = inlined_call_operand.vmem [shape: f32[4,8], index: 0, kind: input, shape index: {}]   ;;  %s56_s1 = inlined_call_operand.vmem [shape: f32[1,32], index: 1, kind: output, shape index: {}]  }
   0x1   :  { %v4_v0 = vld [vmem:[%s55_s0] sm:$0xf]  ;;  %s36_s0 = smov 24  }
   0x2   :  { %5 = vst [vmem:[#allocation1] sm:$0xf] %v4_v0 }
   0x9   :  { %v10_v1 = vld [vmem:[#allocation1 + $0x3] sm:$0x1]   ;;  %v22_v2 = vld [vmem:[#allocation1 + $0x1] sm:$0x1]   ;;  %v16_v3 = vld [vmem:[#allocation1 + $0x2] sm:$0x1]  }
   0xa   :  { %11 = vrot.lane.b32.xlu0 %v10_v1, %s36_s0  ;;  %23 = vrot.lane.b32.xlu1 %v22_v2, %s37_s8  ;;  %v6_v4 = vld [vmem:[#allocation1] sm:$0x1]  }
   0xb   :  { %8 = vst.msk [vmem:[#allocation0] sm:$0x1] %vm7_vm0, %v6_v4  }
  0x12   :  { %17 = vrot.lane.b32.xlu0 %v16_v3, %s38_s9 }
  0x7c   :  { %v12_v5 = vpop.permute.xlu0 %11   ;;  %v24_v6 = vpop.permute.xlu1 %23  }
  0x7d   :  { %14 = vst.msk [vmem:[#allocation0] sm:$0x1] %vm13_vm1, %v12_v5  }
  0x84   :  { %v18_v7 = vpop.permute.xlu0 %17  }
  0x85   :  { %20 = vst.msk [vmem:[#allocation0] sm:$0x1] %vm19_vm2, %v18_v7  }
  0x86   :  { %26 = vst.msk [vmem:[#allocation0] sm:$0x1] %vm25_vm3, %v24_v6  }
  0x8d   :  { %v29_v8 = vld [vmem:[#allocation0] sm:$0x1] }
  0x8e   :  { %32 = vst [vmem:[%s56_s1] sm:$0x1] %v29_v8 }

// kernel: tile.8
= control target key start
LH: loop header
LB: loop body
LE: loop exit
PB: predicated region body
PF: predicated region fallthrough
CT: control target
= control target key end

     0   :  { %s22_s0 = inlined_call_operand.vmem [shape: f32[8], index: 0, kind: input, shape index: {}]   ;;  %s23_s1 = inlined_call_operand.vmem [shape: f32[4,8], index: 1, kind: output, shape index: {}]  }
   0x1   :  { %v4_v0 = vld [vmem:[%s22_s0] ss:$0 sm:$0xff] }
   0x2   :  { %5 = vst [vmem:[%s23_s1] sm:$0xf] %v4_v0 }

// kernel: adaptive_res_block.1
= control target key start
LH: loop header
LB: loop body
LE: loop exit
PB: predicated region body
PF: predicated region fallthrough
CT: control target
= control target key end

     0   :  { %s4485_s21 = smov 0   ;;  %s4487_s22 = smov 0   ;;  %s6182_s0 = inlined_call_operand.vmem [shape: f32[2,1,328,4], index: 0, kind: input, shape index: {}]   ;;  %s6183_s1 = inlined_call_operand.vmem [shape: f32[9,4,8], index: 1, kind: input, shape index: {}]   ;;  %s6184_s2 = inlined_call_operand.vmem [shape: f32[1,8], index: 2, kind: input, shape index: {}]   ;;  %s6185_s3 = inlined_call_operand.vmem [shape: f32[4,8], index: 3, kind: input, shape index: {}]   ;;  %s6186_s4 = inlined_call_operand.vmem [shape: f32[8,32], index: 4, kind: input, shape index: {}]   ;;  %s6187_s5 = inlined_call_operand.vmem [shape: f32[1,32], index: 5, kind: input, shape index: {}]   ;;  %s6188_s6 = inlined_call_operand.vmem [shape: f32[2,1,288,32], index: 6, kind: output, shape index: {}]  }
   0x1   :  { %s4489_s23 = smov 0  }
   0x2 LB: > { %s28_s24 = sadd.s32 1, %s4444_s22  ;;  %p3800_p0 = scmp.ge.s32.totalorder %s4448_s23, 1  ;;  %s4448_s23 = sphi %s4489_s23, %s16_s23   ;;  %s4444_s22 = sphi %s4487_s22, %s6312_s22   ;;  %s4440_s21 = sphi %s4485_s21, %s6311_s21  }
   0x3   : > { %p30_p1 = scmp.ge.s32.totalorder %s28_s24, 2  ;;  %p232_p2 = scmp.lt.s32.totalorder %s4448_s23, 3 }
   0x5   : > { %s6314_s24 = smov (%p30_p1, %s28_s24), 0  ;;  %p233_p3 = pnand %p3800_p0, %p232_p2 }
   0x7   : > { %236 = sbr.rel (%p233_p3) target bundleno = 1100 (0x44c), region = 44 }
   0xc   : > { %v3803_v0 = vld [vmem:[%s6183_s1 + $0x4] sm:$0xf]  ;;  %vm472_vm0 = vcmask 1043456   ;;  %p270_p4 = scmp.lt.s32.totalorder %s4440_s21, 1  ;;  %v324_v1 = vld [vmem:[%s6183_s1] sm:$0xf] }
   0xd   : > { %4219 = vmatpush.msk.msra.mxu3 %vm472_vm0, %v3803_v0  ;;  %v3878_v2 = vld [vmem:[%s6183_s1 + $0x8] sm:$0xf]  ;;  %3804 = vmatpush.msk.msra.mxu0 %vm472_vm0, %v3803_v0  ;;  %v3954_v3 = vld [vmem:[%s6183_s1 + $0x10] sm:$0xf]  ;;  %vm363_vm1 = vcmask 31744   ;;  %vm3433_vm2 = vcmask 64512  }
   0xe   : > { %s6316_s21 = smov (!%p270_p4, %s4440_s21), 1  ;;  %3879 = vmatpush.msk.msra.mxu2 %vm472_vm0, %v3878_v2  ;;  %3841 = vmatpush.msk.msra.mxu1 %vm472_vm0, %v324_v1  ;;  %v3992_v8 = vld [vmem:[%s6183_s1 + $0x14] sm:$0xf]  ;;  %vm3667_vm3 = vcmask 261120  }
   0xf   : > { %4220 = vmatpush.msk.msrb.mxu3 %vm472_vm0, %v324_v1  ;;  %3955 = vmatpush.msk.msrb.mxu0 %vm472_vm0, %v3954_v3  ;;  %s4222_s9 = smul.u32 328, %s6316_s21  ;;  %v3916_v1 = vld [vmem:[%s6183_s1 + $0xc] sm:$0xf] }
  0x10   : > { %3993 = vmatpush.msk.msrb.mxu1 %vm472_vm0, %v3992_v8 }
  0x11   : > { %s4527_s12 = scalar_lea.vmem %s6182_s0, %s4222_s9  ;;  %s4223_s9 = smul.u32 288, %s6316_s21 }
  0x12   : > { %v352_v4 = vld [vmem:[%s4527_s12 + $0xd9] sm:$0xff]  ;;  %v837_v5 = vld [vmem:[%s4527_s12 + $0x2] sm:$0xff]  ;;  %v838_v10 = vld [vmem:[%s4527_s12 + $0xa] sm:$0xff] }
  0x13   : > { %v325_v6 = vld [vmem:[%s4527_s12 + $0x1] sm:$0xff]  ;;  %3832 = vmatmul.msk.f32.vlgmr.msra.gmra.mxu3 %vm363_vm1, %v352_v4  ;;  %3880 = vmatmul.msk.f32.vlgmr.msra.gmra.mxu2 %vm363_vm1, %v837_v5  ;;  %v326_v11 = vld [vmem:[%s4527_s12 + $0x9] sm:$0xff]  ;;  %v4552_v14 = vld [vmem:[%s4527_s12 + $0x12] sm:$0xff]  ;;  %s5976_s21 = scalar_lea.vmem %s6188_s6, %s4223_s9 }
  0x14   : > { %v288_v7 = vld [vmem:[%s4527_s12] sm:$0xff]  ;;  %3805 = vmatmul.msk.f32.vlgmr.msra.gmra.mxu0 %vm363_vm1, %v325_v6  ;;  %4221 = vmatpush.msk.msra.mxu3 %vm472_vm0, %v3878_v2  ;;  %v289_v12 = vld [vmem:[%s4527_s12 + $0x8] sm:$0xff]  ;;  %v327_v15 = vld [vmem:[%s4527_s12 + $0x11] sm:$0xff] }
  0x15   : > { %3842 = vmatmul.msk.f32.vlgmr.msra.gmra.mxu1 %vm363_vm1, %v288_v7  ;;  %v353_v9 = vld [vmem:[%s4527_s12 + $0xe1] sm:$0xff]  ;;  %v354_v13 = vld [vmem:[%s4527_s12 + $0xe9] sm:$0xff]  ;;  %v355_v17 = vld [vmem:[%s4527_s12 + $0xf1] sm:$0xff] }
  0x16   : > { %v290_v16 = vld [vmem:[%s4527_s12 + $0x10] sm:$0xff]  ;;  %v4563_v18 = vld [vmem:[%s4527_s12 + $0x1a] sm:$0xff]  ;;  %v4574_v22 = vld [vmem:[%s4527_s12 + $0x22] sm:$0xff] }
  0x17   : > { %v328_v19 = vld [vmem:[%s4527_s12 + $0x19] sm:$0xff]  ;;  %v329_v23 = vld [vmem:[%s4527_s12 + $0x21] sm:$0xff]  ;;  %v4585_v26 = vld [vmem:[%s4527_s12 + $0x2a] sm:$0xff] }
  0x18   : > { %v291_v20 = vld [vmem:[%s4527_s12 + $0x18] sm:$0xff]  ;;  %v292_v24 = vld [vmem:[%s4527_s12 + $0x20] sm:$0xff]  ;;  %v330_v27 = vld [vmem:[%s4527_s12 + $0x29] sm:$0xff] }
  0x19   : > { %v356_v21 = vld [vmem:[%s4527_s12 + $0xf9] sm:$0xff]  ;;  %v357_v25 = vld [vmem:[%s4527_s12 + $0x101] sm:$0xff]  ;;  %v358_v29 = vld [vmem:[%s4527_s12 + $0x109] sm:$0xff] }
  0x1a   : > { %v293_v28 = vld [vmem:[%s4527_s12 + $0x28] sm:$0xff]  ;;  %v4596_v30 = vld [vmem:[%s4527_s12 + $0x32] sm:$0xff]  ;;  %v4607_v34 = vld [vmem:[%s4527_s12 + $0x3a] sm:$0xff] }
  0x1b   : > { %3833 = vmatmul.msk.f32.gmra.mxu3 %vm363_vm1, %v353_v9  ;;  %3881 = vmatmul.msk.f32.gmra.mxu2 %vm363_vm1, %v838_v10  ;;  %v331_v31 = vld [vmem:[%s4527_s12 + $0x31] sm:$0xff]  ;;  %v332_v35 = vld [vmem:[%s4527_s12 + $0x39] sm:$0xff]  ;;  %v4618_v38 = vld [vmem:[%s4527_s12 + $0x42] sm:$0xff] }
  0x1c   : > { %3806 = vmatmul.msk.f32.gmra.mxu0 %vm363_vm1, %v326_v11  ;;  %v294_v32 = vld [vmem:[%s4527_s12 + $0x30] sm:$0xff]  ;;  %v295_v36 = vld [vmem:[%s4527_s12 + $0x38] sm:$0xff]  ;;  %v333_v39 = vld [vmem:[%s4527_s12 + $0x41] sm:$0xff] }
  0x1d   : > { %3843 = vmatmul.msk.f32.gmra.mxu1 %vm363_vm1, %v289_v12  ;;  %v359_v33 = vld [vmem:[%s4527_s12 + $0x111] sm:$0xff]  ;;  %v360_v37 = vld [vmem:[%s4527_s12 + $0x119] sm:$0xff]  ;;  %v334_v43 = vld [vmem:[%s4527_s12 + $0x49] sm:$0xff] }
  0x1e   : > { %v296_v40 = vld [vmem:[%s4527_s12 + $0x40] sm:$0xff]  ;;  %v315_v41 = vld [vmem:[%s4527_s12 + $0xd8] sm:$0xff]  ;;  %v4629_v42 = vld [vmem:[%s4527_s12 + $0x4a] sm:$0xff] }
  0x1f   : > { %v297_v44 = vld [vmem:[%s4527_s12 + $0x48] sm:$0xff]  ;;  %v316_v45 = vld [vmem:[%s4527_s12 + $0xe0] sm:$0xff]  ;;  %v4640_v46 = vld [vmem:[%s4527_s12 + $0x52] sm:$0xff] }
  0x20   : > { %v335_v47 = vld [vmem:[%s4527_s12 + $0x51] sm:$0xff]  ;;  %v317_v49 = vld [vmem:[%s4527_s12 + $0xe8] sm:$0xff]  ;;  %v4651_v50 = vld [vmem:[%s4527_s12 + $0x5a] sm:$0xff] }
  0x21   : > { %v298_v48 = vld [vmem:[%s4527_s12 + $0x50] sm:$0xff]  ;;  %v336_v51 = vld [vmem:[%s4527_s12 + $0x59] sm:$0xff]  ;;  %v4662_v54 = vld [vmem:[%s4527_s12 + $0x62] sm:$0xff] }
  0x22   : > { %v299_v52 = vld [vmem:[%s4527_s12 + $0x58] sm:$0xff]  ;;  %v318_v53 = vld [vmem:[%s4527_s12 + $0xf0] sm:$0xff]  ;;  %v337_v55 = vld [vmem:[%s4527_s12 + $0x61] sm:$0xff] }
  0x23   : > { %3834 = vmatmul.msk.f32.gmra.mxu3 %vm363_vm1, %v354_v13  ;;  %3882 = vmatmul.msk.f32.gmra.mxu2 %vm363_vm1, %v4552_v14  ;;  %v300_v56 = vld [vmem:[%s4527_s12 + $0x60] sm:$0xff]  ;;  %v319_v57 = vld [vmem:[%s4527_s12 + $0xf8] sm:$0xff]  ;;  %v4673_v58 = vld [vmem:[%s4527_s12 + $0x6a] sm:$0xff] }
  0x24   : > { %3807 = vmatmul.msk.f32.gmra.mxu0 %vm363_vm1, %v327_v15  ;;  %v338_v59 = vld [vmem:[%s4527_s12 + $0x69] sm:$0xff]  ;;  %v320_v61 = vld [vmem:[%s4527_s12 + $0x100] sm:$0xff]  ;;  %v4684_v62 = vld [vmem:[%s4527_s12 + $0x72] sm:$0xff] }
  0x25   : > { %3844 = vmatmul.msk.f32.gmra.mxu1 %vm363_vm1, %v290_v16  ;;  %v301_v60 = vld [vmem:[%s4527_s12 + $0x68] sm:$0xff]  ;;  %v339_v63 = vld [vmem:[%s4527_s12 + $0x71] sm:$0xff]  ;;  %v4699_v3 = vld [vmem:[%s4527_s12 + $0x7a] sm:$0xff] }
  0x26   : > { %v302_v0 = vld [vmem:[%s4527_s12 + $0x70] sm:$0xff]  ;;  %v321_v2 = vld [vmem:[%s4527_s12 + $0x108] sm:$0xff]  ;;  %v340_v4 = vld [vmem:[%s4527_s12 + $0x79] sm:$0xff] }
  0x27   : > { %v303_v5 = vld [vmem:[%s4527_s12 + $0x78] sm:$0xff]  ;;  %v322_v6 = vld [vmem:[%s4527_s12 + $0x110] sm:$0xff]  ;;  %v4710_v7 = vld [vmem:[%s4527_s12 + $0x82] sm:$0xff] }
  0x28   : > { %v341_v10 = vld [vmem:[%s4527_s12 + $0x81] sm:$0xff]  ;;  %v4030_v12 = vld [vmem:[%s6183_s1 + $0x18] sm:$0xf] }
  0x29   : > { %v304_v11 = vld [vmem:[%s4527_s12 + $0x80] sm:$0xff]  ;;  %4031 = vmatpush.msk.msrb.mxu2 %vm472_vm0, %v4030_v12  ;;  %v323_v16 = vld [vmem:[%s4527_s12 + $0x118] sm:$0xff] }
  0x2a   : > { %v347_v12 = vld [vmem:[%s4527_s12 + $0xb1] sm:$0xff] }
  0x2b   : > { %3835 = vmatmul.msk.f32.gmra.mxu3 %vm363_vm1, %v355_v17  ;;  %3883 = vmatmul.msk.f32.gmra.mxu2 %vm363_vm1, %v4563_v18  ;;  %v4733_v17 = vld [vmem:[%s4527_s12 + $0x8a] sm:$0xff] }
  0x2c   : > { %3808 = vmatmul.msk.f32.gmra.mxu0 %vm363_vm1, %v328_v19 }
  0x2d   : > { %3845 = vmatmul.msk.f32.gmra.mxu1 %vm363_vm1, %v291_v20 }
  0x33   : > { %3836 = vmatmul.msk.f32.gmra.mxu3 %vm363_vm1, %v356_v21  ;;  %3884 = vmatmul.msk.f32.gmra.mxu2 %vm363_vm1, %v4574_v22  ;;  %v342_v21 = vld [vmem:[%s4527_s12 + $0x89] sm:$0xff] }
  0x34   : > { %3809 = vmatmul.msk.f32.gmra.mxu0 %vm363_vm1, %v329_v23  ;;  %v305_v23 = vld [vmem:[%s4527_s12 + $0x88] sm:$0xff] }
  0x35   : > { %3846 = vmatmul.msk.f32.gmra.mxu1 %vm363_vm1, %v292_v24 }
  0x3b   : > { %3837 = vmatmul.msk.f32.gmra.mxu3 %vm363_vm1, %v357_v25  ;;  %3885 = vmatmul.msk.f32.gmra.mxu2 %vm363_vm1, %v4585_v26 }
  0x3c   : > { %3810 = vmatmul.msk.f32.gmra.mxu0 %vm363_vm1, %v330_v27  ;;  %v864_v27 = vld [vmem:[%s4527_s12 + $0xda] sm:$0xff] }
  0x3d   : > { %3847 = vmatmul.msk.f32.gmra.mxu1 %vm363_vm1, %v293_v28  ;;  %v4752_v28 = vld [vmem:[%s4527_s12 + $0x92] sm:$0xff] }
  0x43   : > { %3838 = vmatmul.msk.f32.gmra.mxu3 %vm363_vm1, %v358_v29  ;;  %3886 = vmatmul.msk.f32.gmra.mxu2 %vm363_vm1, %v4596_v30 }
  0x44   : > { %3811 = vmatmul.msk.f32.gmra.mxu0 %vm363_vm1, %v331_v31 }
  0x45   : > { %3848 = vmatmul.msk.f32.gmra.mxu1 %vm363_vm1, %v294_v32  ;;  %v343_v32 = vld [vmem:[%s4527_s12 + $0x91] sm:$0xff] }
  0x4b   : > { %3839 = vmatmul.msk.f32.gmra.mxu3 %vm363_vm1, %v359_v33  ;;  %3887 = vmatmul.msk.f32.gmra.mxu2 %vm363_vm1, %v4607_v34  ;;  %v306_v33 = vld [vmem:[%s4527_s12 + $0x90] sm:$0xff] }
  0x4c   : > { %3812 = vmatmul.msk.f32.gmra.mxu0 %vm363_vm1, %v332_v35 }
  0x4d   : > { %3849 = vmatmul.msk.f32.gmra.mxu1 %vm363_vm1, %v295_v36 }
  0x53   : > { %3840 = vmatmul.msk.f32.gmra.mxu3 %vm363_vm1, %v360_v37  ;;  %3888 = vmatmul.msk.f32.gmra.mxu2 %vm363_vm1, %v4618_v38  ;;  %v865_v37 = vld [vmem:[%s4527_s12 + $0xe2] sm:$0xff] }
  0x54   : > { %3813 = vmatmul.msk.f32.gmra.mxu0 %vm363_vm1, %v333_v39  ;;  %v4771_v39 = vld [vmem:[%s4527_s12 + $0x9a] sm:$0xff] }
  0x55   : > { %3850 = vmatmul.msk.f32.gmra.mxu1 %vm363_vm1, %v296_v40 }
  0x5b   : > { %3869 = vmatmul.msk.f32.vlgmr.msrb.gmra.mxu3 %vm363_vm1, %v315_v41  ;;  %3889 = vmatmul.msk.f32.gmra.mxu2 %vm363_vm1, %v4629_v42 }
  0x5c   : > { %3814 = vmatmul.msk.f32.gmra.mxu0 %vm363_vm1, %v334_v43  ;;  %3917 = vmatpush.msk.msrb.mxu3 %vm472_vm0, %v3916_v1  ;;  %v344_v43 = vld [vmem:[%s4527_s12 + $0x99] sm:$0xff]  ;;  %v309_v1 = vld [vmem:[%s4527_s12 + $0xa8] sm:$0xff] }
  0x5d   : > { %3851 = vmatmul.msk.f32.gmra.mxu1 %vm363_vm1, %v297_v44  ;;  %v307_v44 = vld [vmem:[%s4527_s12 + $0x98] sm:$0xff] }
  0x63   : > { %3870 = vmatmul.msk.f32.gmra.mxu3 %vm363_vm1, %v316_v45  ;;  %3890 = vmatmul.msk.f32.gmra.mxu2 %vm363_vm1, %v4640_v46 }
  0x64   : > { %3815 = vmatmul.msk.f32.gmra.mxu0 %vm363_vm1, %v335_v47 }
  0x65   : > { %3852 = vmatmul.msk.f32.gmra.mxu1 %vm363_vm1, %v298_v48  ;;  %v866_v48 = vld [vmem:[%s4527_s12 + $0xea] sm:$0xff] }
  0x6b   : > { %3871 = vmatmul.msk.f32.gmra.mxu3 %vm363_vm1, %v317_v49  ;;  %3891 = vmatmul.msk.f32.gmra.mxu2 %vm363_vm1, %v4651_v50  ;;  %v4790_v49 = vld [vmem:[%s4527_s12 + $0xa2] sm:$0xff] }
  0x6c   : > { %3816 = vmatmul.msk.f32.gmra.mxu0 %vm363_vm1, %v336_v51 }
  0x6d   : > { %3853 = vmatmul.msk.f32.gmra.mxu1 %vm363_vm1, %v299_v52 }
  0x73   : > { %3872 = vmatmul.msk.f32.gmra.mxu3 %vm363_vm1, %v318_v53  ;;  %3892 = vmatmul.msk.f32.gmra.mxu2 %vm363_vm1, %v4662_v54  ;;  %v345_v53 = vld [vmem:[%s4527_s12 + $0xa1] sm:$0xff] }
  0x74   : > { %3817 = vmatmul.msk.f32.gmra.mxu0 %vm363_vm1, %v337_v55  ;;  %v308_v55 = vld [vmem:[%s4527_s12 + $0xa0] sm:$0xff] }
  0x75   : > { %3854 = vmatmul.msk.f32.gmra.mxu1 %vm363_vm1, %v300_v56 }
  0x7b   : > { %3873 = vmatmul.msk.f32.gmra.mxu3 %vm363_vm1, %v319_v57  ;;  %3893 = vmatmul.msk.f32.gmra.mxu2 %vm363_vm1, %v4673_v58 }
  0x7c   : > { %3818 = vmatmul.msk.f32.gmra.mxu0 %vm363_vm1, %v338_v59  ;;  %v867_v59 = vld [vmem:[%s4527_s12 + $0xf2] sm:$0xff] }
  0x7d   : > { %3855 = vmatmul.msk.f32.gmra.mxu1 %vm363_vm1, %v301_v60  ;;  %v4809_v60 = vld [vmem:[%s4527_s12 + $0xaa] sm:$0xff] }
  0x83   : > { %3874 = vmatmul.msk.f32.gmra.mxu3 %vm363_vm1, %v320_v61  ;;  %3894 = vmatmul.msk.f32.gmra.mxu2 %vm363_vm1, %v4684_v62 }
  0x84   : > { %3819 = vmatmul.msk.f32.gmra.mxu0 %vm363_vm1, %v339_v63 }
  0x85   : > { %3856 = vmatmul.msk.f32.gmra.mxu1 %vm363_vm1, %v302_v0  ;;  %v346_v0 = vld [vmem:[%s4527_s12 + $0xa9] sm:$0xff] }
  0x8b   : > { %3875 = vmatmul.msk.f32.gmra.mxu3 %vm363_vm1, %v321_v2  ;;  %3895 = vmatmul.msk.f32.gmra.mxu2 %vm363_vm1, %v4699_v3 }
  0x8c   : > { %3820 = vmatmul.msk.f32.gmra.mxu0 %vm363_vm1, %v340_v4 }
  0x8d   : > { %3857 = vmatmul.msk.f32.gmra.mxu1 %vm363_vm1, %v303_v5  ;;  %v868_v5 = vld [vmem:[%s4527_s12 + $0xfa] sm:$0xff] }
  0x91   : > { %v4712_v8 = vpop.f32.mrf.mxu0 }
  0x92   : > { %v4714_v9 = vpop.f32.mrf.mxu1 }
  0x93   : > { %3876 = vmatmul.msk.f32.gmra.mxu3 %vm363_vm1, %v322_v6  ;;  %3896 = vmatmul.msk.f32.gmra.mxu2 %vm363_vm1, %v4710_v7  ;;  %v4828_v6 = vld [vmem:[%s4527_s12 + $0xb2] sm:$0xff] }
  0x94   : > { %3821 = vmatmul.msk.f32.gmra.mxu0 %vm363_vm1, %v341_v10 }
  0x95   : > { %3858 = vmatmul.msk.f32.gmra.mxu1 %vm363_vm1, %v304_v11 }
  0x96   : > { %v4727_v13 = vpop.f32.mrf.mxu3  ;;  %v4729_v15 = vpop.f32.mrf.mxu2 }
  0x99   : > { %v4735_v19 = vpop.f32.mrf.mxu0 }
  0x9a   : > { %v4737_v20 = vpop.f32.mrf.mxu1 }
  0x9b   : > { %3877 = vmatmul.msk.f32.gmra.mxu3 %vm363_vm1, %v323_v16  ;;  %3897 = vmatmul.msk.f32.gmra.mxu2 %vm363_vm1, %v4733_v17  ;;  %v310_v16 = vld [vmem:[%s4527_s12 + $0xb0] sm:$0xff] }
  0x9c   : > { %3822 = vmatmul.msk.f32.gmra.mxu0 %vm363_vm1, %v342_v21 }
  0x9d   : > { %3859 = vmatmul.msk.f32.gmra.mxu1 %vm363_vm1, %v305_v23 }
  0x9e   : > { %v4746_v24 = vpop.f32.mrf.mxu3  ;;  %v4748_v25 = vpop.f32.mrf.mxu2 }
  0xa1   : > { %v4754_v29 = vpop.f32.mrf.mxu0 }
  0xa2   : > { %v4756_v31 = vpop.f32.mrf.mxu1 }
  0xa3   : > { %3907 = vmatmul.msk.f32.vlgmr.msra.gmra.mxu3 %vm363_vm1, %v864_v27  ;;  %3898 = vmatmul.msk.f32.gmra.mxu2 %vm363_vm1, %v4752_v28  ;;  %v869_v27 = vld [vmem:[%s4527_s12 + $0x102] sm:$0xff] }
  0xa4   : > { %3823 = vmatmul.msk.f32.gmra.mxu0 %vm363_vm1, %v343_v32  ;;  %v4847_v32 = vld [vmem:[%s4527_s12 + $0xba] sm:$0xff] }
  0xa5   : > { %3860 = vmatmul.msk.f32.gmra.mxu1 %vm363_vm1, %v306_v33 }
  0xa6   : > { %v4765_v35 = vpop.f32.mrf.mxu3  ;;  %v4767_v36 = vpop.f32.mrf.mxu2 }
  0xa9   : > { %v4773_v40 = vpop.f32.mrf.mxu0 }
  0xaa   : > { %v4775_v41 = vpop.f32.mrf.mxu1 }
  0xab   : > { %3908 = vmatmul.msk.f32.gmra.mxu3 %vm363_vm1, %v865_v37  ;;  %3899 = vmatmul.msk.f32.gmra.mxu2 %vm363_vm1, %v4771_v39 }
  0xac   : > { %3824 = vmatmul.msk.f32.gmra.mxu0 %vm363_vm1, %v344_v43  ;;  %v348_v43 = vld [vmem:[%s4527_s12 + $0xb9] sm:$0xff] }
  0xad   : > { %3861 = vmatmul.msk.f32.gmra.mxu1 %vm363_vm1, %v307_v44  ;;  %v311_v44 = vld [vmem:[%s4527_s12 + $0xb8] sm:$0xff] }
  0xae   : > { %v4784_v45 = vpop.f32.mrf.mxu3  ;;  %v4786_v47 = vpop.f32.mrf.mxu2 }
  0xb1   : > { %v4792_v51 = vpop.f32.mrf.mxu0 }
  0xb2   : > { %v4794_v52 = vpop.f32.mrf.mxu1 }
  0xb3   : > { %3909 = vmatmul.msk.f32.gmra.mxu3 %vm363_vm1, %v866_v48  ;;  %3900 = vmatmul.msk.f32.gmra.mxu2 %vm363_vm1, %v4790_v49  ;;  %v4068_v48 = vld [vmem:[%s6183_s1 + $0x1c] sm:$0xf] }
  0xb4   : > { %3825 = vmatmul.msk.f32.gmra.mxu0 %vm363_vm1, %v345_v53  ;;  %4069 = vmatpush.msk.msra.mxu3 %vm472_vm0, %v4068_v48  ;;  %v871_v48 = vld [vmem:[%s4527_s12 + $0x112] sm:$0xff] }
  0xb5   : > { %3862 = vmatmul.msk.f32.gmra.mxu1 %vm363_vm1, %v308_v55 }
  0xb6   : > { %v4803_v56 = vpop.f32.mrf.mxu3  ;;  %v4805_v57 = vpop.f32.mrf.mxu2 }
  0xb9   : > { %v4811_v61 = vpop.f32.mrf.mxu0 }
  0xba   : > { %v4813_v63 = vpop.f32.mrf.mxu1 }
  0xbb   : > { %3910 = vmatmul.msk.f32.gmra.mxu3 %vm363_vm1, %v867_v59  ;;  %3901 = vmatmul.msk.f32.gmra.mxu2 %vm363_vm1, %v4809_v60  ;;  %v870_v59 = vld [vmem:[%s4527_s12 + $0x10a] sm:$0xff] }
  0xbc   : > { %3826 = vmatmul.msk.f32.gmra.mxu0 %vm363_vm1, %v346_v0  ;;  %v4870_v0 = vld [vmem:[%s4527_s12 + $0xc2] sm:$0xff] }
  0xbd   : > { %3863 = vmatmul.msk.f32.gmra.mxu1 %vm363_vm1, %v309_v1  ;;  %6201 = vst [vmem:[#allocation6_spill] sm:$0xff] %v4870_v0 }
  0xbe   : > { %v4822_v2 = vpop.f32.mrf.mxu3  ;;  %v4824_v4 = vpop.f32.mrf.mxu2 }
  0xc1   : > { %v4830_v10 = vpop.f32.mrf.mxu0 }
  0xc2   : > { %v4832_v11 = vpop.f32.mrf.mxu1 }
  0xc3   : > { %3911 = vmatmul.msk.f32.gmra.mxu3 %vm363_vm1, %v868_v5  ;;  %3902 = vmatmul.msk.f32.gmra.mxu2 %vm363_vm1, %v4828_v6 }
  0xc4   : > { %3827 = vmatmul.msk.f32.gmra.mxu0 %vm363_vm1, %v347_v12  ;;  %v349_v12 = vld [vmem:[%s4527_s12 + $0xc1] sm:$0xff] }
  0xc5   : > { %3864 = vmatmul.msk.f32.gmra.mxu1 %vm363_vm1, %v310_v16  ;;  %v312_v16 = vld [vmem:[%s4527_s12 + $0xc0] sm:$0xff] }
  0xc6   : > { %v4841_v21 = vpop.f32.mrf.mxu3  ;;  %v4843_v23 = vpop.f32.mrf.mxu2 }
  0xc7   : > { %6197 = vst [vmem:[#allocation2_spill] sm:$0xff] %v4843_v23  ;;  %v1768_v23 = vld [vmem:[%s4527_s12 + $0x1c] sm:$0xff] }
  0xc9   : > { %v4849_v33 = vpop.f32.mrf.mxu0 }
  0xca   : > { %6198 = vst [vmem:[#allocation3_spill] sm:$0xff] %v4849_v33  ;;  %v4851_v37 = vpop.f32.mrf.mxu1  ;;  %v1767_v33 = vld [vmem:[%s4527_s12 + $0x14] sm:$0xff] }
  0xcb   : > { %6199 = vst [vmem:[#allocation4_spill] sm:$0xff] %v4851_v37  ;;  %3912 = vmatmul.msk.f32.gmra.mxu3 %vm363_vm1, %v869_v27  ;;  %3903 = vmatmul.msk.f32.gmra.mxu2 %vm363_vm1, %v4847_v32  ;;  %v4106_v27 = vld [vmem:[%s6183_s1 + $0x20] sm:$0xf]  ;;  %v351_v37 = vld [vmem:[%s4527_s12 + $0xd1] sm:$0xff] }
  0xcc   : > { %3828 = vmatmul.msk.f32.gmra.mxu0 %vm363_vm1, %v348_v43 }
  0xcd   : > { %3865 = vmatmul.msk.f32.gmra.mxu1 %vm363_vm1, %v311_v44  ;;  %4107 = vmatpush.msk.msra.mxu0 %vm472_vm0, %v4106_v27 }
  0xce   : > { %v4864_v53 = vpop.f32.mrf.mxu3  ;;  %v4866_v55 = vpop.f32.mrf.mxu2 }
  0xcf   : > { %6200 = vst [vmem:[#allocation5_spill] sm:$0xff] %v4866_v55  ;;  %v313_v55 = vld [vmem:[%s4527_s12 + $0xc8] sm:$0xff] }
  0xd1   : > { %v4872_v1 = vpop.f32.mrf.mxu0 }
  0xd2   : > { %6202 = vst [vmem:[#allocation7_spill] sm:$0xff] %v4872_v1  ;;  %v4874_v5 = vpop.f32.mrf.mxu1 }
  0xd3   : > { %6203 = vst [vmem:[#allocation8_spill] sm:$0xff] %v4874_v5  ;;  %3913 = vmatmul.msk.f32.gmra.mxu3 %vm363_vm1, %v870_v59  ;;  %3904 = vmatmul.msk.f32.gmra.mxu2 %vm363_vm1, %v4870_v0  ;;  %v4893_v59 = vld [vmem:[%s4527_s12 + $0xca] sm:$0xff]  ;;  %v1465_v0 = vld [vmem:[%s4527_s12 + $0x53] sm:$0xff] }
  0xd4   : > { %3829 = vmatmul.msk.f32.gmra.mxu0 %vm363_vm1, %v349_v12  ;;  %6205 = vst [vmem:[#allocation10_spill] sm:$0xff] %v4893_v59  ;;  %v350_v12 = vld [vmem:[%s4527_s12 + $0xc9] sm:$0xff] }
  0xd5   : > { %3866 = vmatmul.msk.f32.gmra.mxu1 %vm363_vm1, %v312_v16 }
  0xd6   : > { %v4887_v43 = vpop.f32.mrf.mxu3  ;;  %v4889_v44 = vpop.f32.mrf.mxu2 }
  0xd7   : > { %6204 = vst [vmem:[#allocation9_spill] sm:$0xff] %v4889_v44 }
  0xd9   : > { %v4895_v5 = vpop.f32.mrf.mxu0 }
  0xda   : > { %6206 = vst [vmem:[#allocation11_spill] sm:$0xff] %v4895_v5  ;;  %v4897_v1 = vpop.f32.mrf.mxu1  ;;  %v872_v5 = vld [vmem:[%s4527_s12 + $0x11a] sm:$0xff] }
  0xdb   : > { %6207 = vst [vmem:[#allocation12_spill] sm:$0xff] %v4897_v1  ;;  %3914 = vmatmul.msk.f32.gmra.mxu3 %vm363_vm1, %v871_v48  ;;  %3905 = vmatmul.msk.f32.gmra.mxu2 %vm363_vm1, %v4893_v59  ;;  %v4912_v1 = vld [vmem:[%s4527_s12 + $0xd2] sm:$0xff] }
  0xdc   : > { %3830 = vmatmul.msk.f32.gmra.mxu0 %vm363_vm1, %v350_v12  ;;  %6209 = vst [vmem:[#allocation14_spill] sm:$0xff] %v4912_v1  ;;  %v314_v59 = vld [vmem:[%s4527_s12 + $0xd0] sm:$0xff] }
  0xdd   : > { %3867 = vmatmul.msk.f32.gmra.mxu1 %vm363_vm1, %v313_v55 }
  0xde   : > { %v4906_v16 = vpop.f32.mrf.mxu3  ;;  %v4908_v27 = vpop.f32.mrf.mxu2 }
  0xdf   : > { %6208 = vst [vmem:[#allocation13_spill] sm:$0xff] %v4908_v27  ;;  %v2077_v27 = vld [vmem:[%s4527_s12 + $0x24] sm:$0xff] }
  0xe1   : > { %v4914_v44 = vpop.f32.mrf.mxu0 }
  0xe2   : > { %6210 = vst [vmem:[#allocation15_spill] sm:$0xff] %v4914_v44  ;;  %v4916_v48 = vpop.f32.mrf.mxu1 }
  0xe3   : > { %6211 = vst [vmem:[#allocation16_spill] sm:$0xff] %v4916_v48  ;;  %3915 = vmatmul.msk.f32.gmra.mxu3 %vm363_vm1, %v872_v5  ;;  %3906 = vmatmul.msk.f32.gmra.mxu2 %vm363_vm1, %v4912_v1  ;;  %v4935_v5 = vld [vmem:[%s4527_s12 + $0x13] sm:$0xff]  ;;  %v4958_v1 = vld [vmem:[%s4527_s12 + $0x1b] sm:$0xff] }
  0xe4   : > { %3831 = vmatmul.msk.f32.gmra.mxu0 %vm363_vm1, %v351_v37  ;;  %6215 = vst [vmem:[#allocation20_spill] sm:$0xff] %v4935_v5  ;;  %v3263_v37 = vld [vmem:[%s6185_s3] sm:$0xf] }
  0xe5   : > { %3868 = vmatmul.msk.f32.gmra.mxu1 %vm363_vm1, %v314_v59  ;;  %6219 = vst [vmem:[#allocation24_spill] sm:$0xff] %v4958_v1 }
  0xe6   : > { %v4925_v55 = vpop.f32.mrf.mxu3  ;;  %v4927_v12 = vpop.f32.mrf.mxu2  ;;  %4144 = vmatpush.msk.msra.mxu1 %vm472_vm0, %v3263_v37 }
  0xe7   : > { %6212 = vst [vmem:[#allocation17_spill] sm:$0xff] %v4927_v12 }
  0xe9   : > { %v4930_v44 = vpop.f32.mrf.mxu0 }
  0xea   : > { %6213 = vst [vmem:[#allocation18_spill] sm:$0xff] %v4930_v44  ;;  %v4932_v48 = vpop.f32.mrf.mxu1 }
  0xeb   : > { %6214 = vst [vmem:[#allocation19_spill] sm:$0xff] %v4932_v48  ;;  %3918 = vmatmul.msk.f32.vlgmr.msrb.gmra.mxu3 %vm363_vm1, %v4552_v14  ;;  %4032 = vmatmul.msk.f32.vlgmr.msrb.gmra.mxu2 %vm363_vm1, %v2077_v27  ;;  %v2078_v14 = vld [vmem:[%s4527_s12 + $0x2c] sm:$0xff] }
  0xec   : > { %3956 = vmatmul.msk.f32.vlgmr.msrb.gmra.mxu0 %vm363_vm1, %v4935_v5  ;;  %v2079_v5 = vld [vmem:[%s4527_s12 + $0x34] sm:$0xff] }
  0xed   : > { %3994 = vmatmul.msk.f32.vlgmr.msrb.gmra.mxu1 %vm363_vm1, %v1767_v33 }
  0xee   : > { %v4948_v59 = vpop.f32.mrf.mxu3  ;;  %v4950_v48 = vpop.f32.mrf.mxu2 }
  0xef   : > { %6216 = vst [vmem:[#allocation21_spill] sm:$0xff] %v4950_v48  ;;  %v4977_v48 = vld [vmem:[%s4527_s12 + $0x23] sm:$0xff] }
  0xf0   : > { %6223 = vst [vmem:[#allocation28_spill] sm:$0xff] %v4977_v48 }
  0xf1   : > { %v4953_v44 = vpop.f32.mrf.mxu0 }
  0xf2   : > { %6217 = vst [vmem:[#allocation22_spill] sm:$0xff] %v4953_v44  ;;  %v4955_v12 = vpop.f32.mrf.mxu1 }
  0xf3   : > { %6218 = vst [vmem:[#allocation23_spill] sm:$0xff] %v4955_v12  ;;  %3919 = vmatmul.msk.f32.gmra.mxu3 %vm363_vm1, %v4563_v18  ;;  %4033 = vmatmul.msk.f32.gmra.mxu2 %vm363_vm1, %v2078_v14 }
  0xf4   : > { %3957 = vmatmul.msk.f32.gmra.mxu0 %vm363_vm1, %v4958_v1  ;;  %v2080_v1 = vld [vmem:[%s4527_s12 + $0x3c] sm:$0xff] }
  0xf5   : > { %3995 = vmatmul.msk.f32.gmra.mxu1 %vm363_vm1, %v1768_v23 }
  0xf6   : > { %v4967_v33 = vpop.f32.mrf.mxu3  ;;  %v4969_v37 = vpop.f32.mrf.mxu2 }
  0xf7   : > { %6220 = vst [vmem:[#allocation25_spill] sm:$0xff] %v4969_v37  ;;  %v4995_v37 = vld [vmem:[%s4527_s12 + $0x2b] sm:$0xff] }
  0xf8   : > { %6227 = vst [vmem:[#allocation32_spill] sm:$0xff] %v4995_v37 }
  0xf9   : > { %v4972_v12 = vpop.f32.mrf.mxu0 }
  0xfa   : > { %6221 = vst [vmem:[#allocation26_spill] sm:$0xff] %v4972_v12  ;;  %v4974_v44 = vpop.f32.mrf.mxu1 }
  0xfb   : > { %6222 = vst [vmem:[#allocation27_spill] sm:$0xff] %v4974_v44  ;;  %3920 = vmatmul.msk.f32.gmra.mxu3 %vm363_vm1, %v4574_v22  ;;  %4034 = vmatmul.msk.f32.gmra.mxu2 %vm363_vm1, %v2079_v5 }
  0xfc   : > { %3958 = vmatmul.msk.f32.gmra.mxu0 %vm363_vm1, %v4977_v48  ;;  %v2081_v48 = vld [vmem:[%s4527_s12 + $0x44] sm:$0xff] }
  0xfd   : > { %3996 = vmatmul.msk.f32.gmra.mxu1 %vm363_vm1, %v2077_v27 }
  0xfe   : > { %v4985_v18 = vpop.f32.mrf.mxu3  ;;  %v4987_v23 = vpop.f32.mrf.mxu2 }
  0xff   : > { %6224 = vst [vmem:[#allocation29_spill] sm:$0xff] %v4987_v23  ;;  %v5013_v23 = vld [vmem:[%s4527_s12 + $0x33] sm:$0xff] }
 0x100   : > { %6231 = vst [vmem:[#allocation36_spill] sm:$0xff] %v5013_v23 }
 0x101   : > { %v4990_v44 = vpop.f32.mrf.mxu0 }
 0x102   : > { %6225 = vst [vmem:[#allocation30_spill] sm:$0xff] %v4990_v44  ;;  %v4992_v12 = vpop.f32.mrf.mxu1 }
 0x103   : > { %6226 = vst [vmem:[#allocation31_spill] sm:$0xff] %v4992_v12  ;;  %3921 = vmatmul.msk.f32.gmra.mxu3 %vm363_vm1, %v4585_v26  ;;  %4035 = vmatmul.msk.f32.gmra.mxu2 %vm363_vm1, %v2080_v1 }
 0x104   : > { %3959 = vmatmul.msk.f32.gmra.mxu0 %vm363_vm1, %v4995_v37  ;;  %v2082_v37 = vld [vmem:[%s4527_s12 + $0x4c] sm:$0xff] }
 0x105   : > { %3997 = vmatmul.msk.f32.gmra.mxu1 %vm363_vm1, %v2078_v14 }
 0x106   : > { %v5003_v22 = vpop.f32.mrf.mxu3  ;;  %v5005_v27 = vpop.f32.mrf.mxu2 }
 0x107   : > { %6228 = vst [vmem:[#allocation33_spill] sm:$0xff] %v5005_v27  ;;  %v1462_v27 = vld [vmem:[%s4527_s12 + $0x3b] sm:$0xff] }
 0x109   : > { %v5008_v12 = vpop.f32.mrf.mxu0 }
 0x10a   : > { %6229 = vst [vmem:[#allocation34_spill] sm:$0xff] %v5008_v12  ;;  %v5010_v44 = vpop.f32.mrf.mxu1 }
 0x10b   : > { %6230 = vst [vmem:[#allocation35_spill] sm:$0xff] %v5010_v44  ;;  %3922 = vmatmul.msk.f32.gmra.mxu3 %vm363_vm1, %v4596_v30  ;;  %4036 = vmatmul.msk.f32.gmra.mxu2 %vm363_vm1, %v2081_v48 }
 0x10c   : > { %3960 = vmatmul.msk.f32.gmra.mxu0 %vm363_vm1, %v5013_v23  ;;  %v2083_v23 = vld [vmem:[%s4527_s12 + $0x54] sm:$0xff] }
 0x10d   : > { %3998 = vmatmul.msk.f32.gmra.mxu1 %vm363_vm1, %v2079_v5 }
 0x10e   : > { %v5021_v26 = vpop.f32.mrf.mxu3  ;;  %v5023_v14 = vpop.f32.mrf.mxu2 }
 0x10f   : > { %6232 = vst [vmem:[#allocation37_spill] sm:$0xff] %v5023_v14  ;;  %v1463_v14 = vld [vmem:[%s4527_s12 + $0x43] sm:$0xff] }
 0x111   : > { %v5026_v44 = vpop.f32.mrf.mxu0 }
 0x112   : > { %6233 = vst [vmem:[#allocation38_spill] sm:$0xff] %v5026_v44  ;;  %v5028_v12 = vpop.f32.mrf.mxu1 }
 0x113   : > { %6234 = vst [vmem:[#allocation39_spill] sm:$0xff] %v5028_v12  ;;  %3923 = vmatmul.msk.f32.gmra.mxu3 %vm363_vm1, %v4607_v34  ;;  %4037 = vmatmul.msk.f32.gmra.mxu2 %vm363_vm1, %v2082_v37 }
 0x114   : > { %3961 = vmatmul.msk.f32.gmra.mxu0 %vm363_vm1, %v1462_v27  ;;  %v2084_v27 = vld [vmem:[%s4527_s12 + $0x5c] sm:$0xff] }
 0x115   : > { %3999 = vmatmul.msk.f32.gmra.mxu1 %vm363_vm1, %v2080_v1 }
 0x116   : > { %v5036_v30 = vpop.f32.mrf.mxu3  ;;  %v5038_v5 = vpop.f32.mrf.mxu2 }
 0x117   : > { %6235 = vst [vmem:[#allocation40_spill] sm:$0xff] %v5038_v5  ;;  %v1464_v5 = vld [vmem:[%s4527_s12 + $0x4b] sm:$0xff] }
 0x119   : > { %v5041_v44 = vpop.f32.mrf.mxu0 }
 0x11a   : > { %6236 = vst [vmem:[#allocation41_spill] sm:$0xff] %v5041_v44  ;;  %v5043_v12 = vpop.f32.mrf.mxu1 }
 0x11b   : > { %6237 = vst [vmem:[#allocation42_spill] sm:$0xff] %v5043_v12  ;;  %3924 = vmatmul.msk.f32.gmra.mxu3 %vm363_vm1, %v4618_v38  ;;  %4038 = vmatmul.msk.f32.gmra.mxu2 %vm363_vm1, %v2083_v23  ;;  %v811_v38 = vadd.f32 %v4906_v16, %v4727_v13  ;;  %v814_v13 = vadd.f32 %v4925_v55, %v4746_v24 }
 0x11c   : > { %3962 = vmatmul.msk.f32.gmra.mxu0 %vm363_vm1, %v1463_v14  ;;  %v817_v24 = vadd.f32 %v4948_v59, %v4765_v35  ;;  %v820_v35 = vadd.f32 %v4967_v33, %v4784_v45  ;;  %v823_v45 = vadd.f32 %v4985_v18, %v4803_v56  ;;  %v826_v56 = vadd.f32 %v5003_v22, %v4822_v2 }
 0x11d   : > { %4000 = vmatmul.msk.f32.gmra.mxu1 %vm363_vm1, %v2081_v48  ;;  %v829_v2 = vadd.f32 %v5021_v26, %v4841_v21  ;;  %v832_v21 = vadd.f32 %v5036_v30, %v4864_v53 }
 0x11e   : > { %v5051_v34 = vpop.f32.mrf.mxu3  ;;  %v5053_v1 = vpop.f32.mrf.mxu2 }
 0x11f   : > { %6238 = vst [vmem:[#allocation43_spill] sm:$0xff] %v5053_v1  ;;  %v835_v53 = vadd.f32 %v5051_v34, %v4887_v43  ;;  %v3428_v34 = vld [vmem:[%s6186_s4] sm:$0xff] }
 0x120   : > { %3557 = vmatpush.msra.mxu2 %v3428_v34 }
 0x121   : > { %v5056_v44 = vpop.f32.mrf.mxu0 }
 0x122   : > { %6239 = vst [vmem:[#allocation44_spill] sm:$0xff] %v5056_v44  ;;  %v5058_v12 = vpop.f32.mrf.mxu1 }
 0x123   : > { %6240 = vst [vmem:[#allocation45_spill] sm:$0xff] %v5058_v12  ;;  %3925 = vmatmul.msk.f32.gmra.mxu3 %vm363_vm1, %v4629_v42  ;;  %4039 = vmatmul.msk.f32.gmra.mxu2 %vm363_vm1, %v2084_v27  ;;  %v2085_v12 = vld [vmem:[%s4527_s12 + $0x64] sm:$0xff] }
 0x124   : > { %3963 = vmatmul.msk.f32.gmra.mxu0 %vm363_vm1, %v1464_v5 }
 0x125   : > { %4001 = vmatmul.msk.f32.gmra.mxu1 %vm363_vm1, %v2082_v37 }
 0x126   : > { %v1084_v48 = vpop.f32.mrf.mxu3  ;;  %v5068_v14 = vpop.f32.mrf.mxu2 }
 0x127   : > { %v5070_v44 = vadd.f32 %v1084_v48, %v811_v38  ;;  %v2086_v38 = vld [vmem:[%s4527_s12 + $0x6c] sm:$0xff] }
 0x129   : > { %6241 = vst [vmem:[#allocation46_spill] sm:$0xff] %v5070_v44  ;;  %v5073_v1 = vpop.f32.mrf.mxu0  ;;  %v1466_v44 = vld [vmem:[%s4527_s12 + $0x5b] sm:$0xff] }
 0x12a   : > { %v5075_v42 = vpop.f32.mrf.mxu1 }
 0x12b   : > { %3926 = vmatmul.msk.f32.gmra.mxu3 %vm363_vm1, %v4640_v46  ;;  %4040 = vmatmul.msk.f32.gmra.mxu2 %vm363_vm1, %v2085_v12 }
 0x12c   : > { %3964 = vmatmul.msk.f32.gmra.mxu0 %vm363_vm1, %v1465_v0 }
 0x12d   : > { %4002 = vmatmul.msk.f32.gmra.mxu1 %vm363_vm1, %v2083_v23 }
 0x12e   : > { %v1087_v16 = vpop.f32.mrf.mxu3  ;;  %v5085_v37 = vpop.f32.mrf.mxu2 }
 0x12f   : > { %v5087_v5 = vadd.f32 %v1087_v16, %v814_v13  ;;  %v2087_v13 = vld [vmem:[%s4527_s12 + $0x74] sm:$0xff] }
 0x131   : > { %6242 = vst [vmem:[#allocation47_spill] sm:$0xff] %v5087_v5  ;;  %v5090_v48 = vpop.f32.mrf.mxu0  ;;  %v1467_v5 = vld [vmem:[%s4527_s12 + $0x63] sm:$0xff] }
 0x132   : > { %v5092_v46 = vpop.f32.mrf.mxu1 }
 0x133   : > { %3927 = vmatmul.msk.f32.gmra.mxu3 %vm363_vm1, %v4651_v50  ;;  %4041 = vmatmul.msk.f32.gmra.mxu2 %vm363_vm1, %v2086_v38 }
 0x134   : > { %3965 = vmatmul.msk.f32.gmra.mxu0 %vm363_vm1, %v1466_v44 }
 0x135   : > { %4003 = vmatmul.msk.f32.gmra.mxu1 %vm363_vm1, %v2084_v27 }
 0x136   : > { %v1090_v0 = vpop.f32.mrf.mxu3  ;;  %v5102_v55 = vpop.f32.mrf.mxu2 }
 0x137   : > { %v5104_v23 = vadd.f32 %v1090_v0, %v817_v24  ;;  %v2088_v24 = vld [vmem:[%s4527_s12 + $0x7c] sm:$0xff] }
 0x139   : > { %6243 = vst [vmem:[#allocation48_spill] sm:$0xff] %v5104_v23  ;;  %v5107_v16 = vpop.f32.mrf.mxu0  ;;  %v1468_v23 = vld [vmem:[%s4527_s12 + $0x6b] sm:$0xff] }
 0x13a   : > { %v5109_v50 = vpop.f32.mrf.mxu1 }
 0x13b   : > { %3928 = vmatmul.msk.f32.gmra.mxu3 %vm363_vm1, %v4662_v54  ;;  %4042 = vmatmul.msk.f32.gmra.mxu2 %vm363_vm1, %v2087_v13 }
 0x13c   : > { %3966 = vmatmul.msk.f32.gmra.mxu0 %vm363_vm1, %v1467_v5 }
 0x13d   : > { %4004 = vmatmul.msk.f32.gmra.mxu1 %vm363_vm1, %v2085_v12 }
 0x13e   : > { %v1093_v44 = vpop.f32.mrf.mxu3  ;;  %v5119_v59 = vpop.f32.mrf.mxu2 }
 0x13f   : > { %v5121_v27 = vadd.f32 %v1093_v44, %v820_v35  ;;  %v2089_v35 = vld [vmem:[%s4527_s12 + $0x84] sm:$0xff] }
 0x141   : > { %6244 = vst [vmem:[#allocation49_spill] sm:$0xff] %v5121_v27  ;;  %v5124_v0 = vpop.f32.mrf.mxu0  ;;  %v1469_v27 = vld [vmem:[%s4527_s12 + $0x73] sm:$0xff] }
 0x142   : > { %v5126_v54 = vpop.f32.mrf.mxu1 }
 0x143   : > { %3929 = vmatmul.msk.f32.gmra.mxu3 %vm363_vm1, %v4673_v58  ;;  %4043 = vmatmul.msk.f32.gmra.mxu2 %vm363_vm1, %v2088_v24 }
 0x144   : > { %3967 = vmatmul.msk.f32.gmra.mxu0 %vm363_vm1, %v1468_v23 }
 0x145   : > { %4005 = vmatmul.msk.f32.gmra.mxu1 %vm363_vm1, %v2086_v38 }
 0x146   : > { %v1096_v12 = vpop.f32.mrf.mxu3  ;;  %v5136_v33 = vpop.f32.mrf.mxu2 }
 0x147   : > { %v5138_v5 = vadd.f32 %v1096_v12, %v823_v45  ;;  %v2090_v45 = vld [vmem:[%s4527_s12 + $0x8c] sm:$0xff] }
 0x149   : > { %6245 = vst [vmem:[#allocation50_spill] sm:$0xff] %v5138_v5  ;;  %v5141_v44 = vpop.f32.mrf.mxu0  ;;  %v1470_v5 = vld [vmem:[%s4527_s12 + $0x7b] sm:$0xff] }
 0x14a   : > { %v5143_v58 = vpop.f32.mrf.mxu1 }
 0x14b   : > { %3930 = vmatmul.msk.f32.gmra.mxu3 %vm363_vm1, %v4684_v62  ;;  %4044 = vmatmul.msk.f32.gmra.mxu2 %vm363_vm1, %v2089_v35 }
 0x14c   : > { %3968 = vmatmul.msk.f32.gmra.mxu0 %vm363_vm1, %v1469_v27 }
 0x14d   : > { %4006 = vmatmul.msk.f32.gmra.mxu1 %vm363_vm1, %v2087_v13 }
 0x14e   : > { %v1099_v18 = vpop.f32.mrf.mxu3  ;;  %v5153_v38 = vpop.f32.mrf.mxu2 }
 0x14f   : > { %v5155_v23 = vadd.f32 %v1099_v18, %v826_v56  ;;  %v2091_v56 = vld [vmem:[%s4527_s12 + $0x94] sm:$0xff] }
 0x151   : > { %6246 = vst [vmem:[#allocation51_spill] sm:$0xff] %v5155_v23  ;;  %v5158_v12 = vpop.f32.mrf.mxu0  ;;  %v1471_v23 = vld [vmem:[%s4527_s12 + $0x83] sm:$0xff] }
 0x152   : > { %v5160_v62 = vpop.f32.mrf.mxu1 }
 0x153   : > { %3931 = vmatmul.msk.f32.gmra.mxu3 %vm363_vm1, %v4699_v3  ;;  %4045 = vmatmul.msk.f32.gmra.mxu2 %vm363_vm1, %v2090_v45 }
 0x154   : > { %3969 = vmatmul.msk.f32.gmra.mxu0 %vm363_vm1, %v1470_v5 }
 0x155   : > { %4007 = vmatmul.msk.f32.gmra.mxu1 %vm363_vm1, %v2088_v24 }
 0x156   : > { %v1102_v22 = vpop.f32.mrf.mxu3  ;;  %v5170_v13 = vpop.f32.mrf.mxu2 }
 0x157   : > { %v5172_v27 = vadd.f32 %v1102_v22, %v829_v2  ;;  %v2092_v2 = vld [vmem:[%s4527_s12 + $0x9c] sm:$0xff] }
 0x159   : > { %6247 = vst [vmem:[#allocation52_spill] sm:$0xff] %v5172_v27  ;;  %v5175_v18 = vpop.f32.mrf.mxu0  ;;  %v1472_v27 = vld [vmem:[%s4527_s12 + $0x8b] sm:$0xff] }
 0x15a   : > { %v5177_v3 = vpop.f32.mrf.mxu1 }
 0x15b   : > { %3932 = vmatmul.msk.f32.gmra.mxu3 %vm363_vm1, %v4710_v7  ;;  %4046 = vmatmul.msk.f32.gmra.mxu2 %vm363_vm1, %v2091_v56 }
 0x15c   : > { %3970 = vmatmul.msk.f32.gmra.mxu0 %vm363_vm1, %v1471_v23 }
 0x15d   : > { %4008 = vmatmul.msk.f32.gmra.mxu1 %vm363_vm1, %v2089_v35 }
 0x15e   : > { %v1105_v26 = vpop.f32.mrf.mxu3  ;;  %v5187_v24 = vpop.f32.mrf.mxu2 }
 0x15f   : > { %v5189_v5 = vadd.f32 %v1105_v26, %v832_v21  ;;  %v2093_v21 = vld [vmem:[%s4527_s12 + $0xa4] sm:$0xff]  ;;  %v730_v26 = vadd.f32 %v4714_v9, %v4712_v8 }
 0x161   : > { %6248 = vst [vmem:[#allocation53_spill] sm:$0xff] %v5189_v5  ;;  %v5192_v22 = vpop.f32.mrf.mxu0  ;;  %v1111_v43 = vadd.f32 %v4729_v15, %v730_v26 }
 0x162   : > { %v5194_v7 = vpop.f32.mrf.mxu1 }
 0x163   : > { %6249 = vst [vmem:[#allocation54_spill] sm:$0xff] %v5194_v7  ;;  %3933 = vmatmul.msk.f32.gmra.mxu3 %vm363_vm1, %v4733_v17  ;;  %4047 = vmatmul.msk.f32.gmra.mxu2 %vm363_vm1, %v2092_v2  ;;  %v1473_v7 = vld [vmem:[%s4527_s12 + $0x93] sm:$0xff] }
 0x164   : > { %3971 = vmatmul.msk.f32.gmra.mxu0 %vm363_vm1, %v1472_v27  ;;  %v2094_v27 = vld [vmem:[%s4527_s12 + $0xac] sm:$0xff] }
 0x165   : > { %4009 = vmatmul.msk.f32.gmra.mxu1 %vm363_vm1, %v2090_v45 }
 0x166   : > { %v1108_v30 = vpop.f32.mrf.mxu3  ;;  %v5204_v35 = vpop.f32.mrf.mxu2 }
 0x167   : > { %v5206_v23 = vadd.f32 %v1108_v30, %v835_v53 }
 0x169   : > { %6250 = vst [vmem:[#allocation55_spill] sm:$0xff] %v5206_v23  ;;  %v1623_v17 = vpop.f32.mrf.mxu0  ;;  %v1474_v23 = vld [vmem:[%s4527_s12 + $0x9b] sm:$0xff] }
 0x16a   : > { %v1933_v5 = vpop.f32.mrf.mxu1 }
 0x16b   : > { %3934 = vmatmul.msk.f32.gmra.mxu3 %vm363_vm1, %v4752_v28  ;;  %4048 = vmatmul.msk.f32.gmra.mxu2 %vm363_vm1, %v2093_v21  ;;  %v733_v28 = vadd.f32 %v4737_v20, %v4735_v19 }
 0x16c   : > { %3972 = vmatmul.msk.f32.gmra.mxu0 %vm363_vm1, %v1473_v7 }
 0x16d   : > { %4010 = vmatmul.msk.f32.gmra.mxu1 %vm363_vm1, %v2091_v56  ;;  %v1112_v15 = vadd.f32 %v4748_v25, %v733_v28  ;;  %v2096_v28 = vld [vmem:[%s4527_s12 + $0xbc] sm:$0xff] }
 0x16e   : > { %v1313_v8 = vpop.f32.mrf.mxu3  ;;  %v2243_v9 = vpop.f32.mrf.mxu2 }
 0x16f   : > { %v1421_v45 = vadd.f32 %v1313_v8, %v1111_v43  ;;  %v2095_v43 = vld [vmem:[%s4527_s12 + $0xb4] sm:$0xff] }
 0x171   : > { %v1731_v53 = vadd.f32 %v1623_v17, %v1421_v45  ;;  %v1626_v30 = vpop.f32.mrf.mxu0  ;;  %v1475_v45 = vld [vmem:[%s4527_s12 + $0xa3] sm:$0xff] }
 0x172   : > { %v1936_v7 = vpop.f32.mrf.mxu1 }
 0x173   : > { %v2041_v56 = vadd.f32 %v1933_v5, %v1731_v53  ;;  %3935 = vmatmul.msk.f32.gmra.mxu3 %vm363_vm1, %v4771_v39  ;;  %4049 = vmatmul.msk.f32.gmra.mxu2 %vm363_vm1, %v2094_v27  ;;  %v736_v5 = vadd.f32 %v4756_v31, %v4754_v29  ;;  %v739_v53 = vadd.f32 %v4775_v41, %v4773_v40 }
 0x174   : > { %3973 = vmatmul.msk.f32.gmra.mxu0 %vm363_vm1, %v1474_v23 }
 0x175   : > { %4011 = vmatmul.msk.f32.gmra.mxu1 %vm363_vm1, %v2092_v2  ;;  %v5231_v26 = vadd.f32 %v2243_v9, %v2041_v56  ;;  %v1113_v25 = vadd.f32 %v4767_v36, %v736_v5  ;;  %v1476_v56 = vld [vmem:[%s4527_s12 + $0xab] sm:$0xff]  ;;  %v1114_v36 = vadd.f32 %v4786_v47, %v739_v53 }
 0x176   : > { %v1316_v19 = vpop.f32.mrf.mxu3  ;;  %v2246_v20 = vpop.f32.mrf.mxu2 }
 0x177   : > { %v1422_v17 = vadd.f32 %v1316_v19, %v1112_v15 }
 0x179   : > { %v1732_v34 = vadd.f32 %v1626_v30, %v1422_v17  ;;  %v1629_v39 = vpop.f32.mrf.mxu0  ;;  %v742_v17 = vadd.f32 %v4794_v52, %v4792_v51 }
 0x17a   : > { %v1939_v8 = vpop.f32.mrf.mxu1 }
 0x17b   : > { %v2042_v23 = vadd.f32 %v1936_v7, %v1732_v34  ;;  %3936 = vmatmul.msk.f32.gmra.mxu3 %vm363_vm1, %v4790_v49  ;;  %4050 = vmatmul.msk.f32.gmra.mxu2 %vm363_vm1, %v2095_v43  ;;  %v1115_v47 = vadd.f32 %v4805_v57, %v742_v17 }
 0x17c   : > { %3974 = vmatmul.msk.f32.gmra.mxu0 %vm363_vm1, %v1475_v45 }
 0x17d   : > { %4012 = vmatmul.msk.f32.gmra.mxu1 %vm363_vm1, %v2093_v21  ;;  %v5243_v2 = vadd.f32 %v2246_v20, %v2042_v23  ;;  %v2097_v20 = vld [vmem:[%s4527_s12 + $0xc4] sm:$0xff]  ;;  %v2098_v23 = vld [vmem:[%s4527_s12 + $0xcc] sm:$0xff] }
 0x17e   : > { %v1319_v29 = vpop.f32.mrf.mxu3  ;;  %v2249_v31 = vpop.f32.mrf.mxu2 }
 0x17f   : > { %v1423_v9 = vadd.f32 %v1319_v29, %v1113_v25  ;;  %v745_v25 = vadd.f32 %v4813_v63, %v4811_v61 }
 0x181   : > { %v1733_v30 = vadd.f32 %v1629_v39, %v1423_v9  ;;  %v1632_v49 = vpop.f32.mrf.mxu0  ;;  %v1477_v39 = vld [vmem:[%s4527_s12 + $0xb3] sm:$0xff]  ;;  %v1478_v9 = vld [vmem:[%s4527_s12 + $0xbb] sm:$0xff]  ;;  %v1116_v57 = vadd.f32 %v4824_v4, %v745_v25 }
 0x182   : > { %v1942_v7 = vpop.f32.mrf.mxu1  ;;  %v6252_v4 = vld [vmem:[#allocation2_spill] sm:$0xff] }
 0x183   : > { %v2043_v15 = vadd.f32 %v1939_v8, %v1733_v30  ;;  %3937 = vmatmul.msk.f32.gmra.mxu3 %vm363_vm1, %v4809_v60  ;;  %4051 = vmatmul.msk.f32.gmra.mxu2 %vm363_vm1, %v2096_v28  ;;  %v6255_v25 = vld [vmem:[#allocation10_spill] sm:$0xff] }
 0x184   : > { %3975 = vmatmul.msk.f32.gmra.mxu0 %vm363_vm1, %v1476_v56 }
 0x185   : > { %4013 = vmatmul.msk.f32.gmra.mxu1 %vm363_vm1, %v2094_v27  ;;  %v5255_v21 = vadd.f32 %v2249_v31, %v2043_v15 }
 0x186   : > { %v1322_v40 = vpop.f32.mrf.mxu3  ;;  %v2252_v41 = vpop.f32.mrf.mxu2 }
 0x187   : > { %v1424_v19 = vadd.f32 %v1322_v40, %v1114_v36  ;;  %v1479_v36 = vld [vmem:[%s4527_s12 + $0xc3] sm:$0xff] }
 0x189   : > { %v1734_v5 = vadd.f32 %v1632_v49, %v1424_v19  ;;  %v1635_v60 = vpop.f32.mrf.mxu0  ;;  %v2099_v49 = vld [vmem:[%s4527_s12 + $0xd4] sm:$0xff] }
 0x18a   : > { %v1945_v34 = vpop.f32.mrf.mxu1 }
 0x18b   : > { %v2044_v8 = vadd.f32 %v1942_v7, %v1734_v5  ;;  %3938 = vmatmul.msk.f32.gmra.mxu3 %vm363_vm1, %v4828_v6  ;;  %4052 = vmatmul.msk.f32.gmra.mxu2 %vm363_vm1, %v2097_v20  ;;  %v748_v7 = vadd.f32 %v4832_v11, %v4830_v10  ;;  %v2100_v5 = vld [vmem:[%s4527_s12 + $0xdc] sm:$0xff] }
 0x18c   : > { %3976 = vmatmul.msk.f32.gmra.mxu0 %vm363_vm1, %v1477_v39 }
 0x18d   : > { %4014 = vmatmul.msk.f32.gmra.mxu1 %vm363_vm1, %v2095_v43  ;;  %v5267_v27 = vadd.f32 %v2252_v41, %v2044_v8  ;;  %v6251_v41 = vld [vmem:[#allocation6_spill] sm:$0xff] }
 0x18e   : > { %v1325_v51 = vpop.f32.mrf.mxu3  ;;  %v2255_v52 = vpop.f32.mrf.mxu2 }
 0x18f   : > { %v1425_v45 = vadd.f32 %v1325_v51, %v1115_v47 }
 0x191   : > { %v1735_v29 = vadd.f32 %v1635_v60, %v1425_v45  ;;  %v1638_v6 = vpop.f32.mrf.mxu0  ;;  %v6253_v60 = vld [vmem:[#allocation3_spill] sm:$0xff] }
 0x192   : > { %v1948_v31 = vpop.f32.mrf.mxu1 }
 0x193   : > { %v2045_v53 = vadd.f32 %v1945_v34, %v1735_v29  ;;  %3939 = vmatmul.msk.f32.gmra.mxu3 %vm363_vm1, %v4847_v32  ;;  %4053 = vmatmul.msk.f32.gmra.mxu2 %vm363_vm1, %v2098_v23  ;;  %v6254_v34 = vld [vmem:[#allocation4_spill] sm:$0xff] }
 0x194   : > { %3977 = vmatmul.msk.f32.gmra.mxu0 %vm363_vm1, %v1478_v9  ;;  %v751_v39 = vadd.f32 %v6254_v34, %v6253_v60  ;;  %v2102_v60 = vld [vmem:[%s4527_s12 + $0xec] sm:$0xff] }
 0x195   : > { %4015 = vmatmul.msk.f32.gmra.mxu1 %vm363_vm1, %v2096_v28  ;;  %v5279_v43 = vadd.f32 %v2255_v52, %v2045_v53  ;;  %v1117_v28 = vadd.f32 %v6252_v4, %v748_v7  ;;  %v1480_v52 = vld [vmem:[%s4527_s12 + $0xcb] sm:$0xff] }
 0x196   : > { %v1328_v61 = vpop.f32.mrf.mxu3  ;;  %v2258_v63 = vpop.f32.mrf.mxu2  ;;  %v6261_v34 = vld [vmem:[#allocation11_spill] sm:$0xff] }
 0x197   : > { %v1426_v30 = vadd.f32 %v1328_v61, %v1116_v57  ;;  %v2101_v57 = vld [vmem:[%s4527_s12 + $0xe4] sm:$0xff] }
 0x198   : > { %v6257_v61 = vld [vmem:[#allocation7_spill] sm:$0xff] }
 0x199   : > { %v1736_v56 = vadd.f32 %v1638_v6, %v1426_v30  ;;  %v1641_v32 = vpop.f32.mrf.mxu0 }
 0x19a   : > { %v1951_v15 = vpop.f32.mrf.mxu1 }
 0x19b   : > { %v2046_v40 = vadd.f32 %v1948_v31, %v1736_v56  ;;  %3940 = vmatmul.msk.f32.gmra.mxu3 %vm363_vm1, %v6251_v41  ;;  %4054 = vmatmul.msk.f32.gmra.mxu2 %vm363_vm1, %v2099_v49 }
 0x19c   : > { %3978 = vmatmul.msk.f32.gmra.mxu0 %vm363_vm1, %v1479_v36 }
 0x19d   : > { %4016 = vmatmul.msk.f32.gmra.mxu1 %vm363_vm1, %v2097_v20  ;;  %v5291_v19 = vadd.f32 %v2258_v63, %v2046_v40  ;;  %v6256_v20 = vld [vmem:[#allocation5_spill] sm:$0xff]  ;;  %v6258_v63 = vld [vmem:[#allocation8_spill] sm:$0xff]  ;;  %v6259_v40 = vld [vmem:[#allocation14_spill] sm:$0xff] }
 0x19e   : > { %v1331_v10 = vpop.f32.mrf.mxu3  ;;  %v2261_v11 = vpop.f32.mrf.mxu2  ;;  %v1118_v29 = vadd.f32 %v6256_v20, %v751_v39  ;;  %v754_v30 = vadd.f32 %v6258_v63, %v6257_v61  ;;  %v6262_v39 = vld [vmem:[#allocation12_spill] sm:$0xff]  ;;  %v1173_v61 = vld [vmem:[%s4527_s12 + $0xe2] sm:$0xff] }
 0x19f   : > { %v1427_v17 = vadd.f32 %v1331_v10, %v1117_v28  ;;  %v2103_v63 = vld [vmem:[%s4527_s12 + $0xf4] sm:$0xff] }
 0x1a1   : > { %v1737_v8 = vadd.f32 %v1641_v32, %v1427_v17  ;;  %v1644_v47 = vpop.f32.mrf.mxu0  ;;  %v1172_v17 = vld [vmem:[%s4527_s12 + $0xda] sm:$0xff] }
 0x1a2   : > { %v1954_v51 = vpop.f32.mrf.mxu1 }
 0x1a3   : > { %v2047_v45 = vadd.f32 %v1951_v15, %v1737_v8  ;;  %3941 = vmatmul.msk.f32.gmra.mxu3 %vm363_vm1, %v6255_v25  ;;  %4055 = vmatmul.msk.f32.gmra.mxu2 %vm363_vm1, %v2100_v5  ;;  %v1481_v15 = vld [vmem:[%s4527_s12 + $0xd3] sm:$0xff]  ;;  %v757_v8 = vadd.f32 %v6262_v39, %v6261_v34  ;;  %v2104_v39 = vld [vmem:[%s4527_s12 + $0xfc] sm:$0xff] }
 0x1a4   : > { %3979 = vmatmul.msk.f32.gmra.mxu0 %vm363_vm1, %v1480_v52 }
 0x1a5   : > { %4017 = vmatmul.msk.f32.gmra.mxu1 %vm363_vm1, %v2098_v23  ;;  %v5303_v6 = vadd.f32 %v2261_v11, %v2047_v45  ;;  %v6260_v23 = vld [vmem:[#allocation9_spill] sm:$0xff] }
 0x1a6   : > { %v1334_v31 = vpop.f32.mrf.mxu3  ;;  %v2264_v9 = vpop.f32.mrf.mxu2  ;;  %v1119_v41 = vadd.f32 %v6260_v23, %v754_v30  ;;  %v1482_v45 = vld [vmem:[%s4527_s12 + $0xdb] sm:$0xff]  ;;  %v6264_v30 = vld [vmem:[#allocation15_spill] sm:$0xff] }
 0x1a7   : > { %v1428_v53 = vadd.f32 %v1334_v31, %v1118_v29 }
 0x1a9   : > { %v1738_v7 = vadd.f32 %v1644_v47, %v1428_v53  ;;  %v1647_v56 = vpop.f32.mrf.mxu0 }
 0x1aa   : > { %v1957_v32 = vpop.f32.mrf.mxu1 }
 0x1ab   : > { %v2048_v36 = vadd.f32 %v1954_v51, %v1738_v7  ;;  %3942 = vmatmul.msk.f32.gmra.mxu3 %vm363_vm1, %v6259_v40  ;;  %4056 = vmatmul.msk.f32.gmra.mxu2 %vm363_vm1, %v2101_v57  ;;  %v6265_v7 = vld [vmem:[#allocation16_spill] sm:$0xff]  ;;  %v1483_v40 = vld [vmem:[%s4527_s12 + $0xe3] sm:$0xff] }
 0x1ac   : > { %3980 = vmatmul.msk.f32.gmra.mxu0 %vm363_vm1, %v1481_v15 }
 0x1ad   : > { %4018 = vmatmul.msk.f32.gmra.mxu1 %vm363_vm1, %v2099_v49  ;;  %v5315_v4 = vadd.f32 %v2264_v9, %v2048_v36  ;;  %v6263_v49 = vld [vmem:[#allocation13_spill] sm:$0xff] }
 0x1ae   : > { %v1337_v28 = vpop.f32.mrf.mxu3  ;;  %v2267_v10 = vpop.f32.mrf.mxu2  ;;  %v1120_v20 = vadd.f32 %v6263_v49, %v757_v8  ;;  %v6267_v8 = vld [vmem:[#allocation18_spill] sm:$0xff]  ;;  %v1484_v49 = vld [vmem:[%s4527_s12 + $0xeb] sm:$0xff] }
 0x1af   : > { %v1429_v11 = vadd.f32 %v1337_v28, %v1119_v41 }
 0x1b1   : > { %v1739_v47 = vadd.f32 %v1647_v56, %v1429_v11  ;;  %v1650_v51 = vpop.f32.mrf.mxu0  ;;  %v760_v56 = vadd.f32 %v6265_v7, %v6264_v30  ;;  %v1175_v30 = vld [vmem:[%s4527_s12 + $0xf2] sm:$0xff]  ;;  %v2105_v7 = vld [vmem:[%s4527_s12 + $0x104] sm:$0xff] }
 0x1b2   : > { %v1960_v52 = vpop.f32.mrf.mxu1 }
 0x1b3   : > { %v2049_v25 = vadd.f32 %v1957_v32, %v1739_v47  ;;  %3943 = vmatmul.msk.f32.gmra.mxu3 %vm363_vm1, %v1172_v17  ;;  %4057 = vmatmul.msk.f32.gmra.mxu2 %vm363_vm1, %v2102_v60  ;;  %v1174_v17 = vld [vmem:[%s4527_s12 + $0xea] sm:$0xff] }
 0x1b4   : > { %3981 = vmatmul.msk.f32.gmra.mxu0 %vm363_vm1, %v1482_v45  ;;  %v6268_v47 = vld [vmem:[#allocation19_spill] sm:$0xff] }
 0x1b5   : > { %4019 = vmatmul.msk.f32.gmra.mxu1 %vm363_vm1, %v2100_v5  ;;  %v5327_v29 = vadd.f32 %v2267_v10, %v2049_v25  ;;  %v6266_v5 = vld [vmem:[#allocation17_spill] sm:$0xff] }
 0x1b6   : > { %v1340_v31 = vpop.f32.mrf.mxu3  ;;  %v2270_v9 = vpop.f32.mrf.mxu2  ;;  %v1121_v41 = vadd.f32 %v6266_v5, %v760_v56  ;;  %v6270_v56 = vld [vmem:[#allocation22_spill] sm:$0xff]  ;;  %v1485_v5 = vld [vmem:[%s4527_s12 + $0xf3] sm:$0xff] }
 0x1b7   : > { %v1430_v53 = vadd.f32 %v1340_v31, %v1120_v20  ;;  %v6269_v20 = vld [vmem:[#allocation21_spill] sm:$0xff] }
 0x1b9   : > { %v1740_v32 = vadd.f32 %v1650_v51, %v1430_v53  ;;  %v1653_v15 = vpop.f32.mrf.mxu0  ;;  %v763_v51 = vadd.f32 %v6268_v47, %v6267_v8  ;;  %v1176_v47 = vld [vmem:[%s4527_s12 + $0xfa] sm:$0xff] }
 0x1ba   : > { %v1963_v36 = vpop.f32.mrf.mxu1 }
 0x1bb   : > { %v2050_v23 = vadd.f32 %v1960_v52, %v1740_v32  ;;  %3944 = vmatmul.msk.f32.gmra.mxu3 %vm363_vm1, %v1173_v61  ;;  %4058 = vmatmul.msk.f32.gmra.mxu2 %vm363_vm1, %v2103_v63  ;;  %v1122_v31 = vadd.f32 %v6269_v20, %v763_v51  ;;  %v6271_v32 = vld [vmem:[#allocation23_spill] sm:$0xff] }
 0x1bc   : > { %3982 = vmatmul.msk.f32.gmra.mxu0 %vm363_vm1, %v1483_v40  ;;  %v2106_v51 = vld [vmem:[%s4527_s12 + $0x10c] sm:$0xff] }
 0x1bd   : > { %4020 = vmatmul.msk.f32.gmra.mxu1 %vm363_vm1, %v2101_v57  ;;  %v5339_v28 = vadd.f32 %v2270_v9, %v2050_v23 }
 0x1be   : > { %v1343_v10 = vpop.f32.mrf.mxu3  ;;  %v2273_v34 = vpop.f32.mrf.mxu2 }
 0x1bf   : > { %v1431_v11 = vadd.f32 %v1343_v10, %v1121_v41  ;;  %v6272_v10 = vld [vmem:[#allocation25_spill] sm:$0xff] }
 0x1c1   : > { %v1741_v52 = vadd.f32 %v1653_v15, %v1431_v11  ;;  %v1656_v45 = vpop.f32.mrf.mxu0  ;;  %v766_v15 = vadd.f32 %v6271_v32, %v6270_v56  ;;  %v1177_v32 = vld [vmem:[%s4527_s12 + $0x102] sm:$0xff] }
 0x1c2   : > { %v1966_v25 = vpop.f32.mrf.mxu1 }
 0x1c3   : > { %v2051_v57 = vadd.f32 %v1963_v36, %v1741_v52  ;;  %3945 = vmatmul.msk.f32.gmra.mxu3 %vm363_vm1, %v1174_v17  ;;  %4059 = vmatmul.msk.f32.gmra.mxu2 %vm363_vm1, %v2104_v39  ;;  %v1123_v11 = vadd.f32 %v6272_v10, %v766_v15  ;;  %v6273_v52 = vld [vmem:[#allocation26_spill] sm:$0xff]  ;;  %v2107_v15 = vld [vmem:[%s4527_s12 + $0x114] sm:$0xff] }
 0x1c4   : > { %3983 = vmatmul.msk.f32.gmra.mxu0 %vm363_vm1, %v1484_v49  ;;  %v1487_v10 = vld [vmem:[%s4527_s12 + $0x103] sm:$0xff] }
 0x1c5   : > { %4021 = vmatmul.msk.f32.gmra.mxu1 %vm363_vm1, %v2102_v60  ;;  %v5351_v9 = vadd.f32 %v2273_v34, %v2051_v57 }
 0x1c6   : > { %v1346_v53 = vpop.f32.mrf.mxu3  ;;  %v2276_v41 = vpop.f32.mrf.mxu2 }
 0x1c7   : > { %v1432_v61 = vadd.f32 %v1346_v53, %v1122_v31  ;;  %v1486_v31 = vld [vmem:[%s4527_s12 + $0xfb] sm:$0xff] }
 0x1c9   : > { %v1742_v36 = vadd.f32 %v1656_v45, %v1432_v61  ;;  %v1659_v40 = vpop.f32.mrf.mxu0  ;;  %v6274_v45 = vld [vmem:[#allocation27_spill] sm:$0xff] }
 0x1ca   : > { %v1969_v23 = vpop.f32.mrf.mxu1 }
 0x1cb   : > { %v2052_v60 = vadd.f32 %v1966_v25, %v1742_v36  ;;  %3946 = vmatmul.msk.f32.gmra.mxu3 %vm363_vm1, %v1175_v30  ;;  %4060 = vmatmul.msk.f32.gmra.mxu2 %vm363_vm1, %v2105_v7  ;;  %v769_v25 = vadd.f32 %v6274_v45, %v6273_v52  ;;  %v6276_v36 = vld [vmem:[#allocation30_spill] sm:$0xff]  ;;  %v1178_v52 = vld [vmem:[%s4527_s12 + $0x10a] sm:$0xff] }
 0x1cc   : > { %3984 = vmatmul.msk.f32.gmra.mxu0 %vm363_vm1, %v1485_v5  ;;  %v2108_v45 = vld [vmem:[%s4527_s12 + $0x11c] sm:$0xff] }
 0x1cd   : > { %4022 = vmatmul.msk.f32.gmra.mxu1 %vm363_vm1, %v2103_v63  ;;  %v5363_v17 = vadd.f32 %v2276_v41, %v2052_v60  ;;  %v6275_v63 = vld [vmem:[#allocation29_spill] sm:$0xff] }
 0x1ce   : > { %v1349_v34 = vpop.f32.mrf.mxu3  ;;  %v1124_v61 = vadd.f32 %v6275_v63, %v769_v25  ;;  %v6279_v25 = vld [vmem:[#allocation34_spill] sm:$0xff] }
 0x1cf   : > { %v1433_v8 = vadd.f32 %v1349_v34, %v1123_v11 }
 0x1d1   : > { %v1743_v49 = vadd.f32 %v1659_v40, %v1433_v8  ;;  %v1662_v57 = vpop.f32.mrf.mxu0  ;;  %v6277_v40 = vld [vmem:[#allocation31_spill] sm:$0xff] }
 0x1d2   : > { %v1972_v20 = vpop.f32.mrf.mxu1 }
 0x1d3   : > { %v5370_v53 = vadd.f32 %v1969_v23, %v1743_v49  ;;  %3947 = vmatmul.msk.f32.gmra.mxu3 %vm363_vm1, %v1176_v47  ;;  %4061 = vmatmul.msk.f32.gmra.mxu2 %vm363_vm1, %v2106_v51  ;;  %v772_v23 = vadd.f32 %v6277_v40, %v6276_v36  ;;  %v6280_v49 = vld [vmem:[#allocation35_spill] sm:$0xff]  ;;  %v1179_v40 = vld [vmem:[%s4527_s12 + $0x112] sm:$0xff] }
 0x1d4   : > { %3985 = vmatmul.msk.f32.gmra.mxu0 %vm363_vm1, %v1486_v31 }
 0x1d5   : > { %4023 = vmatmul.msk.f32.gmra.mxu1 %vm363_vm1, %v2104_v39  ;;  %v6278_v39 = vld [vmem:[#allocation33_spill] sm:$0xff] }
 0x1d6   : > { %v1352_v30 = vpop.f32.mrf.mxu3  ;;  %v1125_v34 = vadd.f32 %v6278_v39, %v772_v23  ;;  %v2109_v23 = vld [vmem:[%s4527_s12 + $0x124] sm:$0xff] }
 0x1d7   : > { %v1434_v56 = vadd.f32 %v1352_v30, %v1124_v61  ;;  %v1488_v61 = vld [vmem:[%s4527_s12 + $0x10b] sm:$0xff] }
 0x1d9   : > { %v1744_v5 = vadd.f32 %v1662_v57, %v1434_v56  ;;  %v1665_v41 = vpop.f32.mrf.mxu0  ;;  %v775_v57 = vadd.f32 %v6280_v49, %v6279_v25 }
 0x1da   : > { %v1975_v60 = vpop.f32.mrf.mxu1 }
 0x1db   : > { %v5382_v11 = vadd.f32 %v1972_v20, %v1744_v5  ;;  %3948 = vmatmul.msk.f32.gmra.mxu3 %vm363_vm1, %v1177_v32  ;;  %4062 = vmatmul.msk.f32.gmra.mxu2 %vm363_vm1, %v2107_v15  ;;  %v6282_v5 = vld [vmem:[#allocation38_spill] sm:$0xff] }
 0x1dc   : > { %3986 = vmatmul.msk.f32.gmra.mxu0 %vm363_vm1, %v1487_v10 }
 0x1dd   : > { %4024 = vmatmul.msk.f32.gmra.mxu1 %vm363_vm1, %v2105_v7  ;;  %v6281_v7 = vld [vmem:[#allocation37_spill] sm:$0xff] }
 0x1de   : > { %v1355_v8 = vpop.f32.mrf.mxu3  ;;  %v1126_v56 = vadd.f32 %v6281_v7, %v775_v57  ;;  %v1180_v57 = vld [vmem:[%s4527_s12 + $0x11a] sm:$0xff] }
 0x1df   : > { %v1435_v47 = vadd.f32 %v1355_v8, %v1125_v34  ;;  %v1489_v8 = vld [vmem:[%s4527_s12 + $0x113] sm:$0xff] }
 0x1e1   : > { %v1745_v20 = vadd.f32 %v1665_v41, %v1435_v47  ;;  %v1668_v31 = vpop.f32.mrf.mxu0  ;;  %v6283_v41 = vld [vmem:[#allocation39_spill] sm:$0xff] }
 0x1e2   : > { %v1978_v63 = vpop.f32.mrf.mxu1 }
 0x1e3   : > { %v5394_v30 = vadd.f32 %v1975_v60, %v1745_v20  ;;  %3949 = vmatmul.msk.f32.gmra.mxu3 %vm363_vm1, %v1178_v52  ;;  %4063 = vmatmul.msk.f32.gmra.mxu2 %vm363_vm1, %v2108_v45  ;;  %v778_v60 = vadd.f32 %v6283_v41, %v6282_v5  ;;  %v2110_v20 = vld [vmem:[%s4527_s12 + $0x12c] sm:$0xff] }
 0x1e4   : > { %3987 = vmatmul.msk.f32.gmra.mxu0 %vm363_vm1, %v1488_v61  ;;  %v6286_v61 = vld [vmem:[#allocation42_spill] sm:$0xff] }
 0x1e5   : > { %4025 = vmatmul.msk.f32.gmra.mxu1 %vm363_vm1, %v2106_v51  ;;  %v6284_v51 = vld [vmem:[#allocation40_spill] sm:$0xff] }
 0x1e6   : > { %v1358_v32 = vpop.f32.mrf.mxu3  ;;  %v1127_v52 = vadd.f32 %v6284_v51, %v778_v60  ;;  %v6289_v51 = vld [vmem:[#allocation45_spill] sm:$0xff] }
 0x1e7   : > { %v1436_v36 = vadd.f32 %v1358_v32, %v1126_v56 }
 0x1e9   : > { %v1746_v10 = vadd.f32 %v1668_v31, %v1436_v36  ;;  %v1671_v39 = vpop.f32.mrf.mxu0  ;;  %v6285_v31 = vld [vmem:[#allocation41_spill] sm:$0xff] }
 0x1ea   : > { %v1981_v34 = vpop.f32.mrf.mxu1  ;;  %v1490_v36 = vld [vmem:[%s4527_s12 + $0x11b] sm:$0xff] }
 0x1eb   : > { %v5406_v47 = vadd.f32 %v1978_v63, %v1746_v10  ;;  %3950 = vmatmul.msk.f32.gmra.mxu3 %vm363_vm1, %v1179_v40  ;;  %4064 = vmatmul.msk.f32.gmra.mxu2 %vm363_vm1, %v2109_v23  ;;  %v781_v63 = vadd.f32 %v6286_v61, %v6285_v31  ;;  %v1181_v10 = vld [vmem:[%s4527_s12 + $0x122] sm:$0xff] }
 0x1ec   : > { %3988 = vmatmul.msk.f32.gmra.mxu0 %vm363_vm1, %v1489_v8  ;;  %v6288_v8 = vld [vmem:[#allocation44_spill] sm:$0xff] }
 0x1ed   : > { %4026 = vmatmul.msk.f32.gmra.mxu1 %vm363_vm1, %v2107_v15  ;;  %v6287_v15 = vld [vmem:[#allocation43_spill] sm:$0xff] }
 0x1ee   : > { %v1361_v25 = vpop.f32.mrf.mxu3  ;;  %v1128_v5 = vadd.f32 %v6287_v15, %v781_v63 }
 0x1ef   : > { %v1437_v49 = vadd.f32 %v1361_v25, %v1127_v52 }
 0x1f1   : > { %v1747_v7 = vadd.f32 %v1671_v39, %v1437_v49  ;;  %v1674_v56 = vpop.f32.mrf.mxu0  ;;  %v2111_v39 = vld [vmem:[%s4527_s12 + $0x134] sm:$0xff] }
 0x1f2   : > { %v1984_v32 = vpop.f32.mrf.mxu1 }
 0x1f3   : > { %v5418_v40 = vadd.f32 %v1981_v34, %v1747_v7  ;;  %3951 = vmatmul.msk.f32.gmra.mxu3 %vm363_vm1, %v1180_v57  ;;  %4065 = vmatmul.msk.f32.gmra.mxu2 %vm363_vm1, %v2110_v20  ;;  %v784_v34 = vadd.f32 %v6289_v51, %v6288_v8  ;;  %v1491_v57 = vld [vmem:[%s4527_s12 + $0x123] sm:$0xff] }
 0x1f4   : > { %3989 = vmatmul.msk.f32.gmra.mxu0 %vm363_vm1, %v1490_v36  ;;  %v1182_v7 = vld [vmem:[%s4527_s12 + $0x12a] sm:$0xff]  ;;  %v787_v36 = vadd.f32 %v5075_v42, %v5073_v1 }
 0x1f5   : > { %4027 = vmatmul.msk.f32.gmra.mxu1 %vm363_vm1, %v2108_v45  ;;  %v1129_v45 = vadd.f32 %v5068_v14, %v784_v34  ;;  %v2387_v42 = vld [vmem:[%s4527_s12 + $0x25] sm:$0xff] }
 0x1f6   : > { %v1364_v41 = vpop.f32.mrf.mxu3  ;;  %v1130_v14 = vadd.f32 %v5085_v37, %v787_v36  ;;  %v2697_v34 = vld [vmem:[%s4527_s12 + $0x26] sm:$0xff] }
 0x1f7   : > { %v1438_v60 = vadd.f32 %v1364_v41, %v1128_v5  ;;  %v1492_v41 = vld [vmem:[%s4527_s12 + $0x12b] sm:$0xff] }
 0x1f9   : > { %v1748_v52 = vadd.f32 %v1674_v56, %v1438_v60  ;;  %v1677_v25 = vpop.f32.mrf.mxu0  ;;  %v2112_v56 = vld [vmem:[%s4527_s12 + $0x13c] sm:$0xff] }
 0x1fa   : > { %v1987_v49 = vpop.f32.mrf.mxu1 }
 0x1fb   : > { %v5430_v31 = vadd.f32 %v1984_v32, %v1748_v52  ;;  %3952 = vmatmul.msk.f32.gmra.mxu3 %vm363_vm1, %v1181_v10  ;;  %4066 = vmatmul.msk.f32.gmra.mxu2 %vm363_vm1, %v2111_v39  ;;  %v790_v10 = vadd.f32 %v5092_v46, %v5090_v48  ;;  %v2388_v48 = vld [vmem:[%s4527_s12 + $0x2d] sm:$0xff]  ;;  %v793_v46 = vadd.f32 %v5109_v50, %v5107_v16  ;;  %v2389_v16 = vld [vmem:[%s4527_s12 + $0x35] sm:$0xff] }
 0x1fc   : > { %3990 = vmatmul.msk.f32.gmra.mxu0 %vm363_vm1, %v1491_v57  ;;  %v796_v50 = vadd.f32 %v5126_v54, %v5124_v0  ;;  %v2390_v0 = vld [vmem:[%s4527_s12 + $0x3d] sm:$0xff]  ;;  %v799_v54 = vadd.f32 %v5143_v58, %v5141_v44  ;;  %v2391_v44 = vld [vmem:[%s4527_s12 + $0x45] sm:$0xff]  ;;  %v802_v58 = vadd.f32 %v5160_v62, %v5158_v12  ;;  %v2392_v62 = vld [vmem:[%s4527_s12 + $0x4d] sm:$0xff] }
 0x1fd   : > { %4028 = vmatmul.msk.f32.gmra.mxu1 %vm363_vm1, %v2109_v23  ;;  %v1131_v37 = vadd.f32 %v5102_v55, %v790_v10  ;;  %v1132_v55 = vadd.f32 %v5119_v59, %v793_v46 }
 0x1fe   : > { %v1367_v61 = vpop.f32.mrf.mxu3  ;;  %v1133_v59 = vadd.f32 %v5136_v33, %v796_v50  ;;  %v1134_v33 = vadd.f32 %v5153_v38, %v799_v54  ;;  %v6294_v38 = vld [vmem:[#allocation36_spill] sm:$0xff] }
 0x1ff   : > { %v1439_v63 = vadd.f32 %v1367_v61, %v1129_v45  ;;  %v2702_v50 = vld [vmem:[%s4527_s12 + $0x4e] sm:$0xff] }
 0x201   : > { %v1749_v32 = vadd.f32 %v1677_v25, %v1439_v63  ;;  %v1680_v15 = vpop.f32.mrf.mxu0  ;;  %v2698_v63 = vld [vmem:[%s4527_s12 + $0x2e] sm:$0xff] }
 0x202   : > { %v1990_v5 = vpop.f32.mrf.mxu1 }
 0x203   : > { %v5442_v60 = vadd.f32 %v1987_v49, %v1749_v32  ;;  %3953 = vmatmul.msk.f32.gmra.mxu3 %vm363_vm1, %v1182_v7  ;;  %4067 = vmatmul.msk.f32.gmra.mxu2 %vm363_vm1, %v2112_v56  ;;  %v6291_v56 = vld [vmem:[#allocation24_spill] sm:$0xff] }
 0x204   : > { %3991 = vmatmul.msk.f32.gmra.mxu0 %vm363_vm1, %v1492_v41 }
 0x205   : > { %4029 = vmatmul.msk.f32.gmra.mxu1 %vm363_vm1, %v2110_v20  ;;  %v6290_v20 = vld [vmem:[#allocation20_spill] sm:$0xff] }
 0x206   : > { %v1370_v23 = vpop.f32.mrf.mxu3 }
 0x207   : > { %v1440_v1 = vadd.f32 %v1370_v23, %v1130_v14  ;;  %v2699_v14 = vld [vmem:[%s4527_s12 + $0x36] sm:$0xff] }
 0x209   : > { %v1750_v39 = vadd.f32 %v1680_v15, %v1440_v1  ;;  %v1683_v8 = vpop.f32.mrf.mxu0  ;;  %v6292_v1 = vld [vmem:[#allocation28_spill] sm:$0xff] }
 0x20a   : > { %v1993_v51 = vpop.f32.mrf.mxu1 }
 0x20b   : > { %v5453_v52 = vadd.f32 %v1990_v5, %v1750_v39  ;;  %4070 = vmatmul.msk.f32.vlgmr.msra.gmra.mxu3 %vm363_vm1, %v2387_v42 }
 0x20c   : > { %4108 = vmatmul.msk.f32.vlgmr.msra.gmra.mxu0 %vm363_vm1, %v2697_v34  ;;  %v2700_v34 = vld [vmem:[%s4527_s12 + $0x3e] sm:$0xff] }
 0x20d   : > { %4145 = vmatmul.msk.f32.vlgmr.msra.gmra.mxu1 %vm363_vm1, %v6290_v20 }
 0x20e   : > { %v1373_v25 = vpop.f32.mrf.mxu3 }
 0x20f   : > { %v1441_v49 = vadd.f32 %v1373_v25, %v1131_v37  ;;  %v6293_v37 = vld [vmem:[#allocation32_spill] sm:$0xff] }
 0x211   : > { %v1751_v57 = vadd.f32 %v1683_v8, %v1441_v49  ;;  %v1686_v45 = vpop.f32.mrf.mxu0 }
 0x212   : > { %v1996_v61 = vpop.f32.mrf.mxu1 }
 0x213   : > { %v5464_v7 = vadd.f32 %v1993_v51, %v1751_v57  ;;  %4071 = vmatmul.msk.f32.gmra.mxu3 %vm363_vm1, %v2388_v48 }
 0x214   : > { %4109 = vmatmul.msk.f32.gmra.mxu0 %vm363_vm1, %v2698_v63  ;;  %v1135_v63 = vadd.f32 %v5170_v13, %v802_v58  ;;  %v4394_v13 = vld [vmem:[%s4527_s12 + $0x3b] sm:$0xff]  ;;  %v4396_v58 = vld [vmem:[%s4527_s12 + $0x4b] sm:$0xff] }
 0x215   : > { %4146 = vmatmul.msk.f32.gmra.mxu1 %vm363_vm1, %v6291_v56 }
 0x216   : > { %v1376_v36 = vpop.f32.mrf.mxu3 }
 0x217   : > { %v1442_v32 = vadd.f32 %v1376_v36, %v1132_v55  ;;  %v805_v55 = vadd.f32 %v5177_v3, %v5175_v18  ;;  %v2393_v3 = vld [vmem:[%s4527_s12 + $0x55] sm:$0xff] }
 0x219   : > { %v1752_v15 = vadd.f32 %v1686_v45, %v1442_v32  ;;  %v1689_v5 = vpop.f32.mrf.mxu0  ;;  %v2701_v45 = vld [vmem:[%s4527_s12 + $0x46] sm:$0xff] }
 0x21a   : > { %v1999_v41 = vpop.f32.mrf.mxu1 }
 0x21b   : > { %v5475_v23 = vadd.f32 %v1996_v61, %v1752_v15  ;;  %4072 = vmatmul.msk.f32.gmra.mxu3 %vm363_vm1, %v2389_v16 }
 0x21c   : > { %4110 = vmatmul.msk.f32.gmra.mxu0 %vm363_vm1, %v2699_v14  ;;  %v6295_v14 = vld [vmem:[#allocation54_spill] sm:$0xff] }
 0x21d   : > { %4147 = vmatmul.msk.f32.gmra.mxu1 %vm363_vm1, %v6292_v1  ;;  %v808_v1 = vadd.f32 %v6295_v14, %v5192_v22  ;;  %v4398_v14 = vld [vmem:[%s4527_s12 + $0x5b] sm:$0xff] }
 0x21e   : > { %v1379_v42 = vpop.f32.mrf.mxu3 }
 0x21f   : > { %v1443_v10 = vadd.f32 %v1379_v42, %v1133_v59 }
 0x221   : > { %v1753_v39 = vadd.f32 %v1689_v5, %v1443_v10  ;;  %v1692_v8 = vpop.f32.mrf.mxu0  ;;  %v1136_v5 = vadd.f32 %v5187_v24, %v805_v55  ;;  %v4395_v24 = vld [vmem:[%s4527_s12 + $0x43] sm:$0xff]  ;;  %v4397_v55 = vld [vmem:[%s4527_s12 + $0x53] sm:$0xff] }
 0x222   : > { %v2002_v51 = vpop.f32.mrf.mxu1 }
 0x223   : > { %v5486_v20 = vadd.f32 %v1999_v41, %v1753_v39  ;;  %4073 = vmatmul.msk.f32.gmra.mxu3 %vm363_vm1, %v2390_v0  ;;  %v2703_v0 = vld [vmem:[%s4527_s12 + $0x56] sm:$0xff]  ;;  %v1137_v39 = vadd.f32 %v5204_v35, %v808_v1 }
 0x224   : > { %4111 = vmatmul.msk.f32.gmra.mxu0 %vm363_vm1, %v2700_v34 }
 0x225   : > { %4148 = vmatmul.msk.f32.gmra.mxu1 %vm363_vm1, %v6293_v37 }
 0x226   : > { %v1382_v25 = vpop.f32.mrf.mxu3 }
 0x227   : > { %v1444_v49 = vadd.f32 %v1382_v25, %v1134_v33  ;;  %v2704_v25 = vld [vmem:[%s4527_s12 + $0x5e] sm:$0xff] }
 0x229   : > { %v1754_v48 = vadd.f32 %v1692_v8, %v1444_v49  ;;  %v1695_v46 = vpop.f32.mrf.mxu0  ;;  %v5528_v49 = vpop.f32.mrf.mxu2 }
 0x22a   : > { %v2005_v57 = vpop.f32.mrf.mxu1 }
 0x22b   : > { %v5497_v61 = vadd.f32 %v2002_v51, %v1754_v48  ;;  %4074 = vmatmul.msk.f32.gmra.mxu3 %vm363_vm1, %v2391_v44  ;;  %v2394_v51 = vld [vmem:[%s4527_s12 + $0x5d] sm:$0xff] }
 0x22c   : > { %4112 = vmatmul.msk.f32.gmra.mxu0 %vm363_vm1, %v2701_v45  ;;  %v6296_v48 = vld [vmem:[#allocation46_spill] sm:$0xff] }
 0x22d   : > { %4149 = vmatmul.msk.f32.gmra.mxu1 %vm363_vm1, %v6294_v38 }
 0x22e   : > { %v1385_v56 = vpop.f32.mrf.mxu3 }
 0x22f   : > { %v1445_v12 = vadd.f32 %v1385_v56, %v1135_v63  ;;  %v2705_v56 = vld [vmem:[%s4527_s12 + $0x66] sm:$0xff] }
 0x231   : > { %v1755_v36 = vadd.f32 %v1695_v46, %v1445_v12  ;;  %v1698_v32 = vpop.f32.mrf.mxu0 }
 0x232   : > { %v2008_v16 = vpop.f32.mrf.mxu1 }
 0x233   : > { %v5508_v15 = vadd.f32 %v2005_v57, %v1755_v36  ;;  %4075 = vmatmul.msk.f32.gmra.mxu3 %vm363_vm1, %v2392_v62  ;;  %v2395_v57 = vld [vmem:[%s4527_s12 + $0x65] sm:$0xff]  ;;  %v5542_v62 = vpop.f32.mrf.mxu2 }
 0x234   : > { %4113 = vmatmul.msk.f32.gmra.mxu0 %vm363_vm1, %v2702_v50  ;;  %v2396_v50 = vld [vmem:[%s4527_s12 + $0x6d] sm:$0xff] }
 0x235   : > { %4150 = vmatmul.msk.f32.gmra.mxu1 %vm363_vm1, %v4394_v13 }
 0x236   : > { %v1388_v41 = vpop.f32.mrf.mxu3 }
 0x237   : > { %v1446_v18 = vadd.f32 %v1388_v41, %v1136_v5 }
 0x239   : > { %v1756_v59 = vadd.f32 %v1698_v32, %v1446_v18  ;;  %v1701_v42 = vpop.f32.mrf.mxu0  ;;  %v6297_v32 = vld [vmem:[#allocation47_spill] sm:$0xff] }
 0x23a   : > { %v2011_v10 = vpop.f32.mrf.mxu1  ;;  %v2706_v18 = vld [vmem:[%s4527_s12 + $0x6e] sm:$0xff] }
 0x23b   : > { %v5519_v54 = vadd.f32 %v2008_v16, %v1756_v59  ;;  %4076 = vmatmul.msk.f32.gmra.mxu3 %vm363_vm1, %v2393_v3  ;;  %v5556_v1 = vpop.f32.mrf.mxu2 }
 0x23c   : > { %4114 = vmatmul.msk.f32.gmra.mxu0 %vm363_vm1, %v2703_v0  ;;  %v2397_v0 = vld [vmem:[%s4527_s12 + $0x75] sm:$0xff] }
 0x23d   : > { %4151 = vmatmul.msk.f32.gmra.mxu1 %vm363_vm1, %v4395_v24 }
 0x23e   : > { %v1391_v8 = vpop.f32.mrf.mxu3 }
 0x23f   : > { %v1447_v22 = vadd.f32 %v1391_v8, %v1137_v39 }
 0x241   : > { %v1757_v34 = vadd.f32 %v1701_v42, %v1447_v22  ;;  %v1704_v37 = vpop.f32.mrf.mxu0  ;;  %v6298_v42 = vld [vmem:[#allocation48_spill] sm:$0xff] }
 0x242   : > { %v2014_v33 = vpop.f32.mrf.mxu1  ;;  %v2707_v22 = vld [vmem:[%s4527_s12 + $0x76] sm:$0xff] }
 0x243   : > { %v5530_v44 = vadd.f32 %v2011_v10, %v1757_v34  ;;  %4077 = vmatmul.msk.f32.gmra.mxu3 %vm363_vm1, %v2394_v51  ;;  %v4399_v34 = vld [vmem:[%s4527_s12 + $0x63] sm:$0xff] }
 0x244   : > { %4115 = vmatmul.msk.f32.gmra.mxu0 %vm363_vm1, %v2704_v25 }
 0x245   : > { %4152 = vmatmul.msk.f32.gmra.mxu1 %vm363_vm1, %v4396_v58  ;;  %v5568_v58 = vpop.f32.mrf.mxu2 }
 0x246   : > { %v1394_v35 = vpop.f32.mrf.mxu3 }
 0x247   : > { %v1448_v46 = vadd.f32 %v1394_v35, %v6296_v48  ;;  %v2398_v35 = vld [vmem:[%s4527_s12 + $0x7d] sm:$0xff] }
 0x249   : > { %v1758_v45 = vadd.f32 %v1704_v37, %v1448_v46  ;;  %v1707_v38 = vpop.f32.mrf.mxu0 }
 0x24a   : > { %v2017_v63 = vpop.f32.mrf.mxu1 }
 0x24b   : > { %v5539_v12 = vadd.f32 %v2014_v33, %v1758_v45  ;;  %4078 = vmatmul.msk.f32.gmra.mxu3 %vm363_vm1, %v2395_v57  ;;  %v6299_v33 = vld [vmem:[#allocation49_spill] sm:$0xff] }
 0x24c   : > { %4116 = vmatmul.msk.f32.gmra.mxu0 %vm363_vm1, %v2705_v56  ;;  %v2708_v45 = vld [vmem:[%s4527_s12 + $0x7e] sm:$0xff] }
 0x24d   : > { %4153 = vmatmul.msk.f32.gmra.mxu1 %vm363_vm1, %v4397_v55  ;;  %v6300_v55 = vld [vmem:[#allocation50_spill] sm:$0xff] }
 0x24e   : > { %v1397_v36 = vpop.f32.mrf.mxu3 }
 0x24f   : > { %v1449_v16 = vadd.f32 %v1397_v36, %v6297_v32  ;;  %v2399_v32 = vld [vmem:[%s4527_s12 + $0x85] sm:$0xff] }
 0x251   : > { %v1759_v13 = vadd.f32 %v1707_v38, %v1449_v16  ;;  %v1710_v5 = vpop.f32.mrf.mxu0 }
 0x252   : > { %v2020_v41 = vpop.f32.mrf.mxu1 }
 0x253   : > { %v5550_v3 = vadd.f32 %v2017_v63, %v1759_v13  ;;  %4079 = vmatmul.msk.f32.gmra.mxu3 %vm363_vm1, %v2396_v50  ;;  %v4400_v63 = vld [vmem:[%s4527_s12 + $0x6b] sm:$0xff] }
 0x254   : > { %4117 = vmatmul.msk.f32.gmra.mxu0 %vm363_vm1, %v2706_v18 }
 0x255   : > { %4154 = vmatmul.msk.f32.gmra.mxu1 %vm363_vm1, %v4398_v14  ;;  %v4401_v14 = vld [vmem:[%s4527_s12 + $0x73] sm:$0xff] }
 0x256   : > { %v1400_v59 = vpop.f32.mrf.mxu3 }
 0x257   : > { %v1450_v10 = vadd.f32 %v1400_v59, %v6298_v42  ;;  %v6301_v42 = vld [vmem:[#allocation51_spill] sm:$0xff] }
 0x259   : > { %v1760_v24 = vadd.f32 %v1710_v5, %v1450_v10  ;;  %v1713_v39 = vpop.f32.mrf.mxu0  ;;  %v2709_v5 = vld [vmem:[%s4527_s12 + $0x86] sm:$0xff] }
 0x25a   : > { %v2023_v8 = vpop.f32.mrf.mxu1 }
 0x25b   : > { %v5561_v51 = vadd.f32 %v2020_v41, %v1760_v24  ;;  %4080 = vmatmul.msk.f32.gmra.mxu3 %vm363_vm1, %v2397_v0  ;;  %v5581_v41 = vpop.f32.mrf.mxu2  ;;  %v2400_v0 = vld [vmem:[%s4527_s12 + $0x8d] sm:$0xff] }
 0x25c   : > { %4118 = vmatmul.msk.f32.gmra.mxu0 %vm363_vm1, %v2707_v22  ;;  %v2710_v22 = vld [vmem:[%s4527_s12 + $0x8e] sm:$0xff] }
 0x25d   : > { %4155 = vmatmul.msk.f32.gmra.mxu1 %vm363_vm1, %v4399_v34 }
 0x25e   : > { %v1403_v37 = vpop.f32.mrf.mxu3 }
 0x25f   : > { %v1451_v25 = vadd.f32 %v1403_v37, %v6299_v33  ;;  %v4402_v33 = vld [vmem:[%s4527_s12 + $0x7b] sm:$0xff] }
 0x261   : > { %v1761_v48 = vadd.f32 %v1713_v39, %v1451_v25  ;;  %v1716_v46 = vpop.f32.mrf.mxu0 }
 0x262   : > { %v2026_v57 = vpop.f32.mrf.mxu1 }
 0x263   : > { %v5572_v38 = vadd.f32 %v2023_v8, %v1761_v48  ;;  %4081 = vmatmul.msk.f32.gmra.mxu3 %vm363_vm1, %v2398_v35  ;;  %v5595_v37 = vpop.f32.mrf.mxu2  ;;  %v6302_v35 = vld [vmem:[#allocation52_spill] sm:$0xff] }
 0x264   : > { %4119 = vmatmul.msk.f32.gmra.mxu0 %vm363_vm1, %v2708_v45 }
 0x265   : > { %4156 = vmatmul.msk.f32.gmra.mxu1 %vm363_vm1, %v4400_v63 }
 0x266   : > { %v1406_v56 = vpop.f32.mrf.mxu3 }
 0x267   : > { %v1452_v36 = vadd.f32 %v1406_v56, %v6300_v55  ;;  %v2711_v56 = vld [vmem:[%s4527_s12 + $0x96] sm:$0xff] }
 0x269   : > { %v1762_v16 = vadd.f32 %v1716_v46, %v1452_v36  ;;  %v1719_v50 = vpop.f32.mrf.mxu0  ;;  %v2401_v46 = vld [vmem:[%s4527_s12 + $0x95] sm:$0xff]  ;;  %v4403_v36 = vld [vmem:[%s4527_s12 + $0x83] sm:$0xff] }
 0x26a   : > { %v2029_v13 = vpop.f32.mrf.mxu1 }
 0x26b   : > { %v5583_v18 = vadd.f32 %v2026_v57, %v1762_v16  ;;  %4082 = vmatmul.msk.f32.gmra.mxu3 %vm363_vm1, %v2399_v32  ;;  %v5609_v32 = vpop.f32.mrf.mxu2 }
 0x26c   : > { %4120 = vmatmul.msk.f32.gmra.mxu0 %vm363_vm1, %v2709_v5  ;;  %v2402_v5 = vld [vmem:[%s4527_s12 + $0x9d] sm:$0xff] }
 0x26d   : > { %4157 = vmatmul.msk.f32.gmra.mxu1 %vm363_vm1, %v4401_v14 }
 0x26e   : > { %v1409_v59 = vpop.f32.mrf.mxu3 }
 0x26f   : > { %v1453_v10 = vadd.f32 %v1409_v59, %v6301_v42  ;;  %v2712_v42 = vld [vmem:[%s4527_s12 + $0x9e] sm:$0xff] }
 0x271   : > { %v1763_v24 = vadd.f32 %v1719_v50, %v1453_v10  ;;  %v1722_v39 = vpop.f32.mrf.mxu0  ;;  %v6304_v50 = vld [vmem:[#allocation53_spill] sm:$0xff] }
 0x272   : > { %v2032_v8 = vpop.f32.mrf.mxu1 }
 0x273   : > { %v5592_v34 = vadd.f32 %v2029_v13, %v1763_v24  ;;  %4083 = vmatmul.msk.f32.gmra.mxu3 %vm363_vm1, %v2400_v0  ;;  %v4404_v24 = vld [vmem:[%s4527_s12 + $0x8b] sm:$0xff] }
 0x274   : > { %4121 = vmatmul.msk.f32.gmra.mxu0 %vm363_vm1, %v2710_v22 }
 0x275   : > { %4158 = vmatmul.msk.f32.gmra.mxu1 %vm363_vm1, %v4402_v33  ;;  %v5621_v33 = vpop.f32.mrf.mxu2 }
 0x276   : > { %v1412_v25 = vpop.f32.mrf.mxu3 }
 0x277   : > { %v1454_v48 = vadd.f32 %v1412_v25, %v6302_v35  ;;  %v2403_v25 = vld [vmem:[%s4527_s12 + $0xa5] sm:$0xff] }
 0x279   : > { %v1764_v57 = vadd.f32 %v1722_v39, %v1454_v48  ;;  %v1725_v45 = vpop.f32.mrf.mxu0 }
 0x27a   : > { %v2035_v63 = vpop.f32.mrf.mxu1 }
 0x27b   : > { %v5603_v55 = vadd.f32 %v2032_v8, %v1764_v57  ;;  %4084 = vmatmul.msk.f32.gmra.mxu3 %vm363_vm1, %v2401_v46  ;;  %v6306_v8 = vld [vmem:[#allocation55_spill] sm:$0xff] }
 0x27c   : > { %4122 = vmatmul.msk.f32.gmra.mxu0 %vm363_vm1, %v2711_v56  ;;  %v2713_v46 = vld [vmem:[%s4527_s12 + $0xa6] sm:$0xff] }
 0x27d   : > { %6303 = vst [vmem:[#allocation6_spill] sm:$0xff] %v5603_v55  ;;  %4159 = vmatmul.msk.f32.gmra.mxu1 %vm363_vm1, %v4403_v36 }
 0x27e   : > { %v1415_v16 = vpop.f32.mrf.mxu3 }
 0x27f   : > { %v1455_v13 = vadd.f32 %v1415_v16, %v6304_v50  ;;  %v5637_v16 = vld [vmem:[%s6184_s2] ss:$0 sm:$0xff]  ;;  %v2404_v50 = vld [vmem:[%s4527_s12 + $0xad] sm:$0xff] }
 0x281   : > { %v1765_v14 = vadd.f32 %v1725_v45, %v1455_v13  ;;  %v1728_v59 = vpop.f32.mrf.mxu0 }
 0x282   : > { %v2038_v10 = vpop.f32.mrf.mxu1 }
 0x283   : > { %v5614_v0 = vadd.f32 %v2035_v63, %v1765_v14  ;;  %4085 = vmatmul.msk.f32.gmra.mxu3 %vm363_vm1, %v2402_v5  ;;  %v4405_v63 = vld [vmem:[%s4527_s12 + $0x93] sm:$0xff] }
 0x284   : > { %4123 = vmatmul.msk.f32.gmra.mxu0 %vm363_vm1, %v2712_v42  ;;  %v2714_v14 = vld [vmem:[%s4527_s12 + $0xae] sm:$0xff] }
 0x285   : > { %6305 = vst [vmem:[#allocation2_spill] sm:$0xff] %v5614_v0  ;;  %4160 = vmatmul.msk.f32.gmra.mxu1 %vm363_vm1, %v4404_v24  ;;  %v2717_v0 = vld [vmem:[%s4527_s12 + $0xc6] sm:$0xff] }
 0x286   : > { %v1418_v39 = vpop.f32.mrf.mxu3 }
 0x287   : > { %v1456_v22 = vadd.f32 %v1418_v39, %v6306_v8 }
 0x289   : > { %v1766_v35 = vadd.f32 %v1728_v59, %v1456_v22  ;;  %v2863_v48 = vpop.f32.mrf.mxu0  ;;  %v5641_v59 = vpop.f32.mrf.mxu2 }
 0x28a   : > { %v5625_v57 = vpop.f32.mrf.mxu1 }
 0x28b   : > { %v5627_v45 = vadd.f32 %v2038_v10, %v1766_v35  ;;  %4086 = vmatmul.msk.f32.gmra.mxu3 %vm363_vm1, %v2403_v25  ;;  %v2405_v25 = vld [vmem:[%s4527_s12 + $0xb5] sm:$0xff] }
 0x28c   : > { %4124 = vmatmul.msk.f32.gmra.mxu0 %vm363_vm1, %v2713_v46  ;;  %v2715_v46 = vld [vmem:[%s4527_s12 + $0xb6] sm:$0xff] }
 0x28d   : > { %6307 = vst [vmem:[#allocation3_spill] sm:$0xff] %v5627_v45  ;;  %4161 = vmatmul.msk.f32.gmra.mxu1 %vm363_vm1, %v4405_v63 }
 0x28e   : > { %v2553_v56 = vpop.f32.mrf.mxu3 }
 0x28f   : > { %v2661_v36 = vadd.f32 %v2553_v56, %v5231_v26  ;;  %v4406_v26 = vld [vmem:[%s4527_s12 + $0x9b] sm:$0xff] }
 0x291   : > { %v2971_v13 = vadd.f32 %v2863_v48, %v2661_v36  ;;  %v2866_v5 = vpop.f32.mrf.mxu0  ;;  %v5657_v36 = vpop.f32.mrf.mxu2 }
 0x292   : > { %v5643_v42 = vpop.f32.mrf.mxu1 }
 0x293   : > { %v3011_v10 = vadd.f32 %v5637_v16, %v2971_v13  ;;  %4087 = vmatmul.msk.f32.gmra.mxu3 %vm363_vm1, %v2404_v50  ;;  %v4407_v50 = vld [vmem:[%s4527_s12 + $0xa3] sm:$0xff] }
 0x294   : > { %4125 = vmatmul.msk.f32.gmra.mxu0 %vm363_vm1, %v2714_v14 }
 0x295   : > { %4162 = vmatmul.msk.f32.gmra.mxu1 %vm363_vm1, %v4406_v26  ;;  %v3047_v24 = vsub.f32 0.0, %v3011_v10 }
 0x296   : > { %v2556_v39 = vpop.f32.mrf.mxu3 }
 0x297   : > { %v3083_v8 = vmul.f32 1.442695, %v3047_v24  ;;  %v2662_v22 = vadd.f32 %v2556_v39, %v5243_v2  ;;  %v2406_v39 = vld [vmem:[%s4527_s12 + $0xbd] sm:$0xff] }
 0x299   : > { %4250 = vpow2.f32 %v3083_v8  ;;  %v2972_v35 = vadd.f32 %v2866_v5, %v2662_v22  ;;  %v2869_v48 = vpop.f32.mrf.mxu0 }
 0x29a   : > { %v5653_v63 = vpop.f32.mrf.mxu1 }
 0x29b   : > { %v3012_v56 = vadd.f32 %v5637_v16, %v2972_v35  ;;  %4088 = vmatmul.msk.f32.gmra.mxu3 %vm363_vm1, %v2405_v25  ;;  %v2716_v25 = vld [vmem:[%s4527_s12 + $0xbe] sm:$0xff] }
 0x29c   : > { %4126 = vmatmul.msk.f32.gmra.mxu0 %vm363_vm1, %v2715_v46 }
 0x29d   : > { %4163 = vmatmul.msk.f32.gmra.mxu1 %vm363_vm1, %v4407_v50  ;;  %v3048_v2 = vsub.f32 0.0, %v3012_v56  ;;  %v4408_v50 = vld [vmem:[%s4527_s12 + $0xab] sm:$0xff] }
 0x29e   : > { %v2559_v13 = vpop.f32.mrf.mxu3 }
 0x29f   : > { %v4251_v5 = vpop.eup %4250  ;;  %v3085_v14 = vmul.f32 1.442695, %v3048_v2  ;;  %v2663_v26 = vadd.f32 %v2559_v13, %v5255_v21  ;;  %v5672_v2 = vpop.f32.mrf.mxu2 }
 0x2a0   : > { %v3155_v24 = vadd.f32 1.0, %v4251_v5 }
 0x2a1   : > { %4252 = vpow2.f32 %v3085_v14  ;;  %v2973_v8 = vadd.f32 %v2869_v48, %v2663_v26  ;;  %v2872_v22 = vpop.f32.mrf.mxu0 }
 0x2a2   : > { %4254 = vrcp.f32 %v3155_v24  ;;  %v5665_v35 = vpop.f32.mrf.mxu1 }
 0x2a3   : > { %v3013_v46 = vadd.f32 %v5637_v16, %v2973_v8  ;;  %4089 = vmatmul.msk.f32.gmra.mxu3 %vm363_vm1, %v2406_v39  ;;  %v2407_v8 = vld [vmem:[%s4527_s12 + $0xc5] sm:$0xff] }
 0x2a4   : > { %4127 = vmatmul.msk.f32.gmra.mxu0 %vm363_vm1, %v2716_v25 }
 0x2a5   : > { %4164 = vmatmul.msk.f32.gmra.mxu1 %vm363_vm1, %v4408_v50  ;;  %v3049_v21 = vsub.f32 0.0, %v3013_v46 }
 0x2a6   : > { %v2562_v48 = vpop.f32.mrf.mxu3 }
 0x2a7   : > { %v4253_v13 = vpop.eup %4252  ;;  %v3087_v5 = vmul.f32 1.442695, %v3049_v21  ;;  %v2664_v14 = vadd.f32 %v2562_v48, %v5267_v27  ;;  %v4409_v27 = vld [vmem:[%s4527_s12 + $0xb3] sm:$0xff] }
 0x2a8   : > { %v4255_v26 = vpop.eup %4254  ;;  %v3156_v24 = vadd.f32 1.0, %v4253_v13 }
 0x2a9   : > { %4256 = vpow2.f32 %v3087_v5  ;;  %v2974_v39 = vadd.f32 %v2872_v22, %v2664_v14  ;;  %v3227_v45 = vmul.f32 %v4255_v26, %v3011_v10  ;;  %v2875_v25 = vpop.f32.mrf.mxu0  ;;  %v2408_v26 = vld [vmem:[%s4527_s12 + $0xcd] sm:$0xff] }
 0x2aa   : > { %4258 = vrcp.f32 %v3156_v24  ;;  %v5677_v50 = vpop.f32.mrf.mxu1 }
 0x2ab   : > { %v5680_v55 = vadd.f32 %v5637_v16, %v2974_v39  ;;  %v3392_v21 = vadd.f32 %v5625_v57, %v3227_v45  ;;  %4090 = vmatmul.msk.f32.gmra.mxu3 %vm363_vm1, %v2407_v8  ;;  %v5690_v57 = vpop.f32.mrf.mxu2  ;;  %v2718_v39 = vld [vmem:[%s4527_s12 + $0xce] sm:$0xff] }
 0x2ac   : > { %4128 = vmatmul.msk.f32.gmra.mxu0 %vm363_vm1, %v2717_v0 }
 0x2ad   : > { %4165 = vmatmul.msk.f32.gmra.mxu1 %vm363_vm1, %v4409_v27  ;;  %v3050_v10 = vsub.f32 0.0, %v5680_v55  ;;  %4181 = vmatmul.msk.f32.vlgmr.msra.gmra.mxu2 %vm3433_vm2, %v3392_v21 }
 0x2ae   : > { %v2565_v22 = vpop.f32.mrf.mxu3 }
 0x2af   : > { %v4257_v48 = vpop.eup %4256  ;;  %v3089_v13 = vmul.f32 1.442695, %v3050_v10  ;;  %v2665_v5 = vadd.f32 %v2565_v22, %v5279_v43  ;;  %v4410_v10 = vld [vmem:[%s4527_s12 + $0xbb] sm:$0xff] }
 0x2b0   : > { %v4259_v14 = vpop.eup %4258  ;;  %v3157_v45 = vadd.f32 1.0, %v4257_v48 }
 0x2b1   : > { %4260 = vpow2.f32 %v3089_v13  ;;  %v2975_v0 = vadd.f32 %v2875_v25, %v2665_v5  ;;  %v3228_v24 = vmul.f32 %v4259_v14, %v3012_v56  ;;  %v2878_v8 = vpop.f32.mrf.mxu0  ;;  %v2409_v14 = vld [vmem:[%s4527_s12 + $0xd5] sm:$0xff] }
 0x2b2   : > { %4262 = vrcp.f32 %v3157_v45  ;;  %v5694_v27 = vpop.f32.mrf.mxu1 }
 0x2b3   : > { %v5697_v21 = vadd.f32 %v5637_v16, %v2975_v0  ;;  %v3393_v43 = vadd.f32 %v5643_v42, %v3228_v24  ;;  %4091 = vmatmul.msk.f32.gmra.mxu3 %vm363_vm1, %v2408_v26  ;;  %v2719_v24 = vld [vmem:[%s4527_s12 + $0xd6] sm:$0xff] }
 0x2b4   : > { %4129 = vmatmul.msk.f32.gmra.mxu0 %vm363_vm1, %v2718_v39  ;;  %v5709_v39 = vpop.f32.mrf.mxu2 }
 0x2b5   : > { %4166 = vmatmul.msk.f32.gmra.mxu1 %vm363_vm1, %v4410_v10  ;;  %v3051_v56 = vsub.f32 0.0, %v5697_v21  ;;  %4182 = vmatmul.msk.f32.gmra.mxu2 %vm3433_vm2, %v3393_v43 }
 0x2b6   : > { %v2568_v25 = vpop.f32.mrf.mxu3 }
 0x2b7   : > { %v4261_v22 = vpop.eup %4260  ;;  %v3091_v48 = vmul.f32 1.442695, %v3051_v56  ;;  %v2666_v13 = vadd.f32 %v2568_v25, %v5291_v19 }
 0x2b8   : > { %v4263_v5 = vpop.eup %4262  ;;  %v3158_v42 = vadd.f32 1.0, %v4261_v22 }
 0x2b9   : > { %4264 = vpow2.f32 %v3091_v48  ;;  %v2976_v45 = vadd.f32 %v2878_v8, %v2666_v13  ;;  %v3229_v26 = vmul.f32 %v4263_v5, %v3013_v46  ;;  %v2881_v0 = vpop.f32.mrf.mxu0  ;;  %v4411_v8 = vld [vmem:[%s4527_s12 + $0xc3] sm:$0xff] }
 0x2ba   : > { %4266 = vrcp.f32 %v3158_v42  ;;  %v5711_v10 = vpop.f32.mrf.mxu1  ;;  %v2410_v5 = vld [vmem:[%s4527_s12 + $0xdd] sm:$0xff] }
 0x2bb   : > { %v5714_v43 = vadd.f32 %v5637_v16, %v2976_v45  ;;  %v3394_v19 = vadd.f32 %v5653_v63, %v3229_v26  ;;  %4092 = vmatmul.msk.f32.gmra.mxu3 %vm363_vm1, %v2409_v14  ;;  %v2720_v26 = vld [vmem:[%s4527_s12 + $0xde] sm:$0xff] }
 0x2bc   : > { %4130 = vmatmul.msk.f32.gmra.mxu0 %vm363_vm1, %v2719_v24 }
 0x2bd   : > { %4167 = vmatmul.msk.f32.gmra.mxu1 %vm363_vm1, %v4411_v8  ;;  %v3052_v46 = vsub.f32 0.0, %v5714_v43  ;;  %4183 = vmatmul.msk.f32.gmra.mxu2 %vm3433_vm2, %v3394_v19 }
 0x2be   : > { %v2571_v56 = vpop.f32.mrf.mxu3 }
 0x2bf   : > { %v4265_v25 = vpop.eup %4264  ;;  %v3093_v22 = vmul.f32 1.442695, %v3052_v46  ;;  %v2667_v48 = vadd.f32 %v2571_v56, %v5303_v6  ;;  %v5734_v6 = vpop.f32.mrf.mxu2 }
 0x2c0   : > { %v4267_v13 = vpop.eup %4266  ;;  %v3159_v63 = vadd.f32 1.0, %v4265_v25 }
 0x2c1   : > { %4268 = vpow2.f32 %v3093_v22  ;;  %v2977_v42 = vadd.f32 %v2881_v0, %v2667_v48  ;;  %v3230_v14 = vmul.f32 %v4267_v13, %v5680_v55  ;;  %v2884_v45 = vpop.f32.mrf.mxu0  ;;  %v4412_v0 = vld [vmem:[%s4527_s12 + $0xcb] sm:$0xff] }
 0x2c2   : > { %4270 = vrcp.f32 %v3159_v63  ;;  %v5727_v24 = vpop.f32.mrf.mxu1  ;;  %v2411_v13 = vld [vmem:[%s4527_s12 + $0xe5] sm:$0xff] }
 0x2c3   : > { %v5730_v19 = vadd.f32 %v5637_v16, %v2977_v42  ;;  %v3395_v8 = vadd.f32 %v5665_v35, %v3230_v14  ;;  %4093 = vmatmul.msk.f32.gmra.mxu3 %vm363_vm1, %v2410_v5  ;;  %v2721_v14 = vld [vmem:[%s4527_s12 + $0xe6] sm:$0xff] }
 0x2c4   : > { %4131 = vmatmul.msk.f32.gmra.mxu0 %vm363_vm1, %v2720_v26 }
 0x2c5   : > { %4168 = vmatmul.msk.f32.gmra.mxu1 %vm363_vm1, %v4412_v0  ;;  %v3053_v55 = vsub.f32 0.0, %v5730_v19  ;;  %4184 = vmatmul.msk.f32.gmra.mxu2 %vm3433_vm2, %v3395_v8 }
 0x2c6   : > { %v2574_v46 = vpop.f32.mrf.mxu3 }
 0x2c7   : > { %v4269_v56 = vpop.eup %4268  ;;  %v3095_v25 = vmul.f32 1.442695, %v3053_v55  ;;  %v2668_v35 = vadd.f32 %v2574_v46, %v5315_v4  ;;  %v4413_v4 = vld [vmem:[%s4527_s12 + $0xd3] sm:$0xff] }
 0x2c8   : > { %v4271_v22 = vpop.eup %4270  ;;  %v3160_v48 = vadd.f32 1.0, %v4269_v56 }
 0x2c9   : > { %4272 = vpow2.f32 %v3095_v25  ;;  %v2978_v63 = vadd.f32 %v2884_v45, %v2668_v35  ;;  %v3231_v5 = vmul.f32 %v4271_v22, %v5697_v21  ;;  %v2887_v42 = vpop.f32.mrf.mxu0  ;;  %v5757_v45 = vpop.f32.mrf.mxu2  ;;  %v2412_v22 = vld [vmem:[%s4527_s12 + $0xed] sm:$0xff] }
 0x2ca   : > { %4274 = vrcp.f32 %v3160_v48  ;;  %v5745_v26 = vpop.f32.mrf.mxu1 }
 0x2cb   : > { %v5748_v8 = vadd.f32 %v5637_v16, %v2978_v63  ;;  %v3396_v0 = vadd.f32 %v5677_v50, %v3231_v5  ;;  %4094 = vmatmul.msk.f32.gmra.mxu3 %vm363_vm1, %v2411_v13  ;;  %v2722_v5 = vld [vmem:[%s4527_s12 + $0xee] sm:$0xff] }
 0x2cc   : > { %4132 = vmatmul.msk.f32.gmra.mxu0 %vm363_vm1, %v2721_v14 }
 0x2cd   : > { %4169 = vmatmul.msk.f32.gmra.mxu1 %vm363_vm1, %v4413_v4  ;;  %v3054_v21 = vsub.f32 0.0, %v5748_v8  ;;  %4185 = vmatmul.msk.f32.gmra.mxu2 %vm3433_vm2, %v3396_v0 }
 0x2ce   : > { %v2577_v55 = vpop.f32.mrf.mxu3 }
 0x2cf   : > { %v4273_v46 = vpop.eup %4272  ;;  %v3097_v56 = vmul.f32 1.442695, %v3054_v21  ;;  %v2669_v50 = vadd.f32 %v2577_v55, %v5327_v29  ;;  %v4414_v29 = vld [vmem:[%s4527_s12 + $0xdb] sm:$0xff] }
 0x2d0   : > { %v4275_v25 = vpop.eup %4274  ;;  %v3161_v35 = vadd.f32 1.0, %v4273_v46 }
 0x2d1   : > { %4276 = vpow2.f32 %v3097_v56  ;;  %v2979_v48 = vadd.f32 %v2887_v42, %v2669_v50  ;;  %v3232_v13 = vmul.f32 %v4275_v25, %v5714_v43  ;;  %v2890_v63 = vpop.f32.mrf.mxu0  ;;  %v2413_v25 = vld [vmem:[%s4527_s12 + $0xf5] sm:$0xff] }
 0x2d2   : > { %4278 = vrcp.f32 %v3161_v35  ;;  %v5763_v14 = vpop.f32.mrf.mxu1 }
 0x2d3   : > { %v5766_v0 = vadd.f32 %v5637_v16, %v2979_v48  ;;  %v3397_v4 = vadd.f32 %v5694_v27, %v3232_v13  ;;  %4095 = vmatmul.msk.f32.gmra.mxu3 %vm363_vm1, %v2412_v22  ;;  %v5776_v27 = vpop.f32.mrf.mxu2  ;;  %v2723_v13 = vld [vmem:[%s4527_s12 + $0xf6] sm:$0xff] }
 0x2d4   : > { %4133 = vmatmul.msk.f32.gmra.mxu0 %vm363_vm1, %v2722_v5 }
 0x2d5   : > { %4170 = vmatmul.msk.f32.gmra.mxu1 %vm363_vm1, %v4414_v29  ;;  %v3055_v43 = vsub.f32 0.0, %v5766_v0  ;;  %4186 = vmatmul.msk.f32.gmra.mxu2 %vm3433_vm2, %v3397_v4  ;;  %v4415_v29 = vld [vmem:[%s4527_s12 + $0xe3] sm:$0xff] }
 0x2d6   : > { %v2580_v42 = vpop.f32.mrf.mxu3 }
 0x2d7   : > { %v4277_v21 = vpop.eup %4276  ;;  %v3099_v55 = vmul.f32 1.442695, %v3055_v43  ;;  %v2670_v46 = vadd.f32 %v2580_v42, %v5339_v28 }
 0x2d8   : > { %v4279_v56 = vpop.eup %4278  ;;  %v3162_v50 = vadd.f32 1.0, %v4277_v21 }
 0x2d9   : > { %4280 = vpow2.f32 %v3099_v55  ;;  %v2980_v35 = vadd.f32 %v2890_v63, %v2670_v46  ;;  %v3233_v22 = vmul.f32 %v4279_v56, %v5730_v19  ;;  %v2893_v48 = vpop.f32.mrf.mxu0  ;;  %v2414_v46 = vld [vmem:[%s4527_s12 + $0xfd] sm:$0xff] }
 0x2da   : > { %4282 = vrcp.f32 %v3162_v50  ;;  %v5781_v5 = vpop.f32.mrf.mxu1 }
 0x2db   : > { %v5784_v4 = vadd.f32 %v5637_v16, %v2980_v35  ;;  %v3398_v28 = vadd.f32 %v5711_v10, %v3233_v22  ;;  %4096 = vmatmul.msk.f32.gmra.mxu3 %vm363_vm1, %v2413_v25  ;;  %v2724_v35 = vld [vmem:[%s4527_s12 + $0xfe] sm:$0xff]  ;;  %v5797_v22 = vpop.f32.mrf.mxu2 }
 0x2dc   : > { %4134 = vmatmul.msk.f32.gmra.mxu0 %vm363_vm1, %v2723_v13 }
 0x2dd   : > { %4171 = vmatmul.msk.f32.gmra.mxu1 %vm363_vm1, %v4415_v29  ;;  %v3056_v19 = vsub.f32 0.0, %v5784_v4  ;;  %4187 = vmatmul.msk.f32.gmra.mxu2 %vm3433_vm2, %v3398_v28 }
 0x2de   : > { %v2583_v63 = vpop.f32.mrf.mxu3 }
 0x2df   : > { %v4281_v43 = vpop.eup %4280  ;;  %v3101_v42 = vmul.f32 1.442695, %v3056_v19  ;;  %v2671_v21 = vadd.f32 %v2583_v63, %v5351_v9 }
 0x2e0   : > { %v4283_v55 = vpop.eup %4282  ;;  %v3163_v10 = vadd.f32 1.0, %v4281_v43 }
 0x2e1   : > { %4284 = vpow2.f32 %v3101_v42  ;;  %v2981_v56 = vadd.f32 %v2893_v48, %v2671_v21  ;;  %v3234_v50 = vmul.f32 %v4283_v55, %v5748_v8  ;;  %v2896_v25 = vpop.f32.mrf.mxu0  ;;  %v4416_v48 = vld [vmem:[%s4527_s12 + $0xeb] sm:$0xff] }
 0x2e2   : > { %4286 = vrcp.f32 %v3163_v10  ;;  %v5799_v13 = vpop.f32.mrf.mxu1  ;;  %v2415_v21 = vld [vmem:[%s4527_s12 + $0x105] sm:$0xff] }
 0x2e3   : > { %v5802_v28 = vadd.f32 %v5637_v16, %v2981_v56  ;;  %v3399_v9 = vadd.f32 %v5727_v24, %v3234_v50  ;;  %4097 = vmatmul.msk.f32.gmra.mxu3 %vm363_vm1, %v2414_v46  ;;  %v2725_v56 = vld [vmem:[%s4527_s12 + $0x106] sm:$0xff] }
 0x2e4   : > { %4135 = vmatmul.msk.f32.gmra.mxu0 %vm363_vm1, %v2724_v35 }
 0x2e5   : > { %4172 = vmatmul.msk.f32.gmra.mxu1 %vm363_vm1, %v4416_v48  ;;  %v3057_v8 = vsub.f32 0.0, %v5802_v28  ;;  %4188 = vmatmul.msk.f32.gmra.mxu2 %vm3433_vm2, %v3399_v9 }
 0x2e6   : > { %v2586_v29 = vpop.f32.mrf.mxu3 }
 0x2e7   : > { %v4285_v19 = vpop.eup %4284  ;;  %v3103_v63 = vmul.f32 1.442695, %v3057_v8  ;;  %v2672_v43 = vadd.f32 %v2586_v29, %v5363_v17  ;;  %v5822_v17 = vpop.f32.mrf.mxu2 }
 0x2e8   : > { %v4287_v42 = vpop.eup %4286  ;;  %v3164_v24 = vadd.f32 1.0, %v4285_v19 }
 0x2e9   : > { %4288 = vpow2.f32 %v3103_v63  ;;  %v2982_v55 = vadd.f32 %v2896_v25, %v2672_v43  ;;  %v3235_v10 = vmul.f32 %v4287_v42, %v5766_v0  ;;  %v2899_v46 = vpop.f32.mrf.mxu0  ;;  %v4417_v25 = vld [vmem:[%s4527_s12 + $0xf3] sm:$0xff]  ;;  %v2363_v0 = vadd.f32 %v5528_v49, %v5370_v53 }
 0x2ea   : > { %4290 = vrcp.f32 %v3164_v24  ;;  %v5815_v50 = vpop.f32.mrf.mxu1  ;;  %v2416_v42 = vld [vmem:[%s4527_s12 + $0x10d] sm:$0xff] }
 0x2eb   : > { %v5818_v35 = vadd.f32 %v5637_v16, %v2982_v55  ;;  %v3400_v9 = vadd.f32 %v5745_v26, %v3235_v10  ;;  %4098 = vmatmul.msk.f32.gmra.mxu3 %vm363_vm1, %v2415_v21  ;;  %v2726_v10 = vld [vmem:[%s4527_s12 + $0x10e] sm:$0xff] }
 0x2ec   : > { %4136 = vmatmul.msk.f32.gmra.mxu0 %vm363_vm1, %v2725_v56 }
 0x2ed   : > { %4173 = vmatmul.msk.f32.gmra.mxu1 %vm363_vm1, %v4417_v25  ;;  %v3058_v48 = vsub.f32 0.0, %v5818_v35  ;;  %4189 = vmatmul.msk.f32.gmra.mxu2 %vm3433_vm2, %v3400_v9  ;;  %v4418_v9 = vld [vmem:[%s4527_s12 + $0xfb] sm:$0xff] }
 0x2ee   : > { %v2589_v8 = vpop.f32.mrf.mxu3 }
 0x2ef   : > { %v4289_v29 = vpop.eup %4288  ;;  %v3105_v26 = vmul.f32 1.442695, %v3058_v48  ;;  %v2673_v19 = vadd.f32 %v2589_v8, %v2363_v0  ;;  %v5848_v25 = vpop.f32.mrf.mxu2 }
 0x2f0   : > { %v4291_v63 = vpop.eup %4290  ;;  %v3165_v43 = vadd.f32 1.0, %v4289_v29 }
 0x2f1   : > { %4292 = vpow2.f32 %v3105_v26  ;;  %v2983_v24 = vadd.f32 %v2899_v46, %v2673_v19  ;;  %v3236_v21 = vmul.f32 %v4291_v63, %v5784_v4  ;;  %v2902_v55 = vpop.f32.mrf.mxu0  ;;  %v2364_v4 = vadd.f32 %v5542_v62, %v5382_v11  ;;  %v2417_v19 = vld [vmem:[%s4527_s12 + $0x115] sm:$0xff] }
 0x2f2   : > { %4294 = vrcp.f32 %v3165_v43  ;;  %v5834_v53 = vpop.f32.mrf.mxu1  ;;  %v2727_v11 = vld [vmem:[%s4527_s12 + $0x116] sm:$0xff] }
 0x2f3   : > { %v5837_v49 = vadd.f32 %v5637_v16, %v2983_v24  ;;  %v3401_v56 = vadd.f32 %v5763_v14, %v3236_v21  ;;  %4099 = vmatmul.msk.f32.gmra.mxu3 %vm363_vm1, %v2416_v42 }
 0x2f4   : > { %4137 = vmatmul.msk.f32.gmra.mxu0 %vm363_vm1, %v2726_v10  ;;  %v4419_v10 = vld [vmem:[%s4527_s12 + $0x103] sm:$0xff] }
 0x2f5   : > { %4174 = vmatmul.msk.f32.gmra.mxu1 %vm363_vm1, %v4418_v9  ;;  %v3059_v46 = vsub.f32 0.0, %v5837_v49  ;;  %4190 = vmatmul.msk.f32.gmra.mxu2 %vm3433_vm2, %v3401_v56 }
 0x2f6   : > { %v2592_v0 = vpop.f32.mrf.mxu3 }
 0x2f7   : > { %v4293_v48 = vpop.eup %4292  ;;  %v3107_v14 = vmul.f32 1.442695, %v3059_v46  ;;  %v2674_v8 = vadd.f32 %v2592_v0, %v2364_v4  ;;  %v5867_v0 = vpop.f32.mrf.mxu2 }
 0x2f8   : > { %v4295_v29 = vpop.eup %4294  ;;  %v3166_v26 = vadd.f32 1.0, %v4293_v48 }
 0x2f9   : > { %4296 = vpow2.f32 %v3107_v14  ;;  %v2984_v63 = vadd.f32 %v2902_v55, %v2674_v8  ;;  %v3237_v43 = vmul.f32 %v4295_v29, %v5802_v28  ;;  %v2905_v42 = vpop.f32.mrf.mxu0  ;;  %v2365_v28 = vadd.f32 %v5556_v1, %v5394_v30  ;;  %v2418_v14 = vld [vmem:[%s4527_s12 + $0x11d] sm:$0xff] }
 0x2fa   : > { %4298 = vrcp.f32 %v3166_v26  ;;  %v5853_v62 = vpop.f32.mrf.mxu1  ;;  %v2728_v30 = vld [vmem:[%s4527_s12 + $0x11e] sm:$0xff] }
 0x2fb   : > { %v5856_v24 = vadd.f32 %v5637_v16, %v2984_v63  ;;  %v3402_v21 = vadd.f32 %v5781_v5, %v3237_v43  ;;  %4100 = vmatmul.msk.f32.gmra.mxu3 %vm363_vm1, %v2417_v19  ;;  %v4420_v43 = vld [vmem:[%s4527_s12 + $0x10b] sm:$0xff] }
 0x2fc   : > { %4138 = vmatmul.msk.f32.gmra.mxu0 %vm363_vm1, %v2727_v11 }
 0x2fd   : > { %4175 = vmatmul.msk.f32.gmra.mxu1 %vm363_vm1, %v4419_v10  ;;  %v3060_v55 = vsub.f32 0.0, %v5856_v24  ;;  %4191 = vmatmul.msk.f32.gmra.mxu2 %vm3433_vm2, %v3402_v21 }
 0x2fe   : > { %v2595_v56 = vpop.f32.mrf.mxu3 }
 0x2ff   : > { %v4297_v9 = vpop.eup %4296  ;;  %v3109_v4 = vmul.f32 1.442695, %v3060_v55  ;;  %v2675_v46 = vadd.f32 %v2595_v56, %v2365_v28  ;;  %v2419_v56 = vld [vmem:[%s4527_s12 + $0x125] sm:$0xff] }
 0x300   : > { %v4299_v5 = vpop.eup %4298  ;;  %v3167_v48 = vadd.f32 1.0, %v4297_v9 }
 0x301   : > { %4300 = vpow2.f32 %v3109_v4  ;;  %v2985_v8 = vadd.f32 %v2905_v42, %v2675_v46  ;;  %v3238_v29 = vmul.f32 %v4299_v5, %v5818_v35  ;;  %v2908_v26 = vpop.f32.mrf.mxu0  ;;  %v2366_v35 = vadd.f32 %v5568_v58, %v5406_v47  ;;  %v2729_v5 = vld [vmem:[%s4527_s12 + $0x126] sm:$0xff] }
 0x302   : > { %4302 = vrcp.f32 %v3167_v48  ;;  %v5872_v1 = vpop.f32.mrf.mxu1  ;;  %v5889_v48 = vpop.f32.mrf.mxu2 }
 0x303   : > { %v5875_v19 = vadd.f32 %v5637_v16, %v2985_v8  ;;  %v3403_v63 = vadd.f32 %v5799_v13, %v3238_v29  ;;  %4101 = vmatmul.msk.f32.gmra.mxu3 %vm363_vm1, %v2418_v14  ;;  %v4421_v8 = vld [vmem:[%s4527_s12 + $0x113] sm:$0xff] }
 0x304   : > { %4139 = vmatmul.msk.f32.gmra.mxu0 %vm363_vm1, %v2728_v30 }
 0x305   : > { %4176 = vmatmul.msk.f32.gmra.mxu1 %vm363_vm1, %v4420_v43  ;;  %v3061_v42 = vsub.f32 0.0, %v5875_v19  ;;  %4192 = vmatmul.msk.f32.gmra.mxu2 %vm3433_vm2, %v3403_v63 }
 0x306   : > { %v2598_v11 = vpop.f32.mrf.mxu3 }
 0x307   : > { %v4301_v21 = vpop.eup %4300  ;;  %v3111_v10 = vmul.f32 1.442695, %v3061_v42  ;;  %v2676_v28 = vadd.f32 %v2598_v11, %v2366_v35  ;;  %v2420_v42 = vld [vmem:[%s4527_s12 + $0x12d] sm:$0xff] }
 0x308   : > { %v4303_v13 = vpop.eup %4302  ;;  %v3168_v55 = vadd.f32 1.0, %v4301_v21 }
 0x309   : > { %4304 = vpow2.f32 %v3111_v10  ;;  %v2986_v9 = vadd.f32 %v2908_v26, %v2676_v28  ;;  %v3239_v4 = vmul.f32 %v4303_v13, %v5837_v49  ;;  %v2911_v46 = vpop.f32.mrf.mxu0  ;;  %v2367_v49 = vadd.f32 %v5581_v41, %v5418_v40  ;;  %v2730_v28 = vld [vmem:[%s4527_s12 + $0x12e] sm:$0xff] }
 0x30a   : > { %4306 = vrcp.f32 %v3168_v55  ;;  %v5891_v47 = vpop.f32.mrf.mxu1  ;;  %v5915_v55 = vpop.f32.mrf.mxu2 }
 0x30b   : > { %v5894_v58 = vadd.f32 %v5637_v16, %v2986_v9  ;;  %v3404_v14 = vadd.f32 %v5815_v50, %v3239_v4  ;;  %4102 = vmatmul.msk.f32.gmra.mxu3 %vm363_vm1, %v2419_v56  ;;  %v4422_v56 = vld [vmem:[%s4527_s12 + $0x11b] sm:$0xff] }
 0x30c   : > { %4140 = vmatmul.msk.f32.gmra.mxu0 %vm363_vm1, %v2729_v5 }
 0x30d   : > { %4177 = vmatmul.msk.f32.gmra.mxu1 %vm363_vm1, %v4421_v8  ;;  %v3062_v29 = vsub.f32 0.0, %v5894_v58  ;;  %4193 = vmatmul.msk.f32.gmra.mxu2 %vm3433_vm2, %v3404_v14 }
 0x30e   : > { %v2601_v26 = vpop.f32.mrf.mxu3 }
 0x30f   : > { %v4305_v30 = vpop.eup %4304  ;;  %v3113_v63 = vmul.f32 1.442695, %v3062_v29  ;;  %v2677_v43 = vadd.f32 %v2601_v26, %v2367_v49  ;;  %v2421_v49 = vld [vmem:[%s4527_s12 + $0x135] sm:$0xff] }
 0x310   : > { %v4307_v50 = vpop.eup %4306  ;;  %v3169_v35 = vadd.f32 1.0, %v4305_v30 }
 0x311   : > { %4308 = vpow2.f32 %v3113_v63  ;;  %v2987_v11 = vadd.f32 %v2911_v46, %v2677_v43  ;;  %v3240_v21 = vmul.f32 %v4307_v50, %v5856_v24  ;;  %v2914_v10 = vpop.f32.mrf.mxu0  ;;  %v2368_v24 = vadd.f32 %v5595_v37, %v5430_v31  ;;  %v2731_v63 = vld [vmem:[%s4527_s12 + $0x136] sm:$0xff]  ;;  %v4423_v50 = vld [vmem:[%s4527_s12 + $0x123] sm:$0xff] }
 0x312   : > { %4310 = vrcp.f32 %v3169_v35  ;;  %v5908_v40 = vpop.f32.mrf.mxu1 }
 0x313   : > { %v5911_v41 = vadd.f32 %v5637_v16, %v2987_v11  ;;  %v3405_v13 = vadd.f32 %v5834_v53, %v3240_v21  ;;  %4103 = vmatmul.msk.f32.gmra.mxu3 %vm363_vm1, %v2420_v42  ;;  %v5941_v42 = vpop.f32.mrf.mxu2 }
 0x314   : > { %4141 = vmatmul.msk.f32.gmra.mxu0 %vm363_vm1, %v2730_v28 }
 0x315   : > { %4178 = vmatmul.msk.f32.gmra.mxu1 %vm363_vm1, %v4422_v56  ;;  %v3063_v9 = vsub.f32 0.0, %v5911_v41  ;;  %4194 = vmatmul.msk.f32.gmra.mxu2 %vm3433_vm2, %v3405_v13  ;;  %v2422_v56 = vld [vmem:[%s4527_s12 + $0x13d] sm:$0xff] }
 0x316   : > { %v2604_v4 = vpop.f32.mrf.mxu3 }
 0x317   : > { %v4309_v46 = vpop.eup %4308  ;;  %v3115_v53 = vmul.f32 1.442695, %v3063_v9  ;;  %v2678_v5 = vadd.f32 %v2604_v4, %v2368_v24 }
 0x318   : > { %v4311_v14 = vpop.eup %4310  ;;  %v3170_v8 = vadd.f32 1.0, %v4309_v46 }
 0x319   : > { %4312 = vpow2.f32 %v3115_v53  ;;  %v2988_v29 = vadd.f32 %v2914_v10, %v2678_v5  ;;  %v3241_v26 = vmul.f32 %v4311_v14, %v5875_v19  ;;  %v2917_v30 = vpop.f32.mrf.mxu0  ;;  %v2369_v19 = vadd.f32 %v5609_v32, %v5442_v60  ;;  %v2732_v60 = vld [vmem:[%s4527_s12 + $0x13e] sm:$0xff]  ;;  %v4424_v5 = vld [vmem:[%s4527_s12 + $0x12b] sm:$0xff] }
 0x31a   : > { %4314 = vrcp.f32 %v3170_v8  ;;  %v5927_v31 = vpop.f32.mrf.mxu1  ;;  %v2370_v14 = vadd.f32 %v5621_v33, %v5453_v52 }
 0x31b   : > { %v5930_v37 = vadd.f32 %v5637_v16, %v2988_v29  ;;  %v3406_v43 = vadd.f32 %v5853_v62, %v3241_v26  ;;  %4104 = vmatmul.msk.f32.gmra.mxu3 %vm363_vm1, %v2421_v49 }
 0x31c   : > { %4142 = vmatmul.msk.f32.gmra.mxu0 %vm363_vm1, %v2731_v63 }
 0x31d   : > { %4179 = vmatmul.msk.f32.gmra.mxu1 %vm363_vm1, %v4423_v50  ;;  %v3064_v35 = vsub.f32 0.0, %v5930_v37  ;;  %4195 = vmatmul.msk.f32.gmra.mxu2 %vm3433_vm2, %v3406_v43 }
 0x31e   : > { %v2607_v11 = vpop.f32.mrf.mxu3 }
 0x31f   : > { %v4313_v21 = vpop.eup %4312  ;;  %v3117_v62 = vmul.f32 1.442695, %v3064_v35  ;;  %v2679_v10 = vadd.f32 %v2607_v11, %v2369_v19  ;;  %v2371_v11 = vadd.f32 %v5641_v59, %v5464_v7 }
 0x320   : > { %v4315_v28 = vpop.eup %4314  ;;  %v3171_v13 = vadd.f32 1.0, %v4313_v21 }
 0x321   : > { %4316 = vpow2.f32 %v3117_v62  ;;  %v2989_v24 = vadd.f32 %v2917_v30, %v2679_v10  ;;  %v3242_v9 = vmul.f32 %v4315_v28, %v5894_v58  ;;  %v2920_v4 = vpop.f32.mrf.mxu0  ;;  %v5971_v62 = vld [vmem:[%s6187_s5] ss:$0 sm:$0xff] }
 0x322   : > { %4318 = vrcp.f32 %v3171_v13  ;;  %v5946_v32 = vpop.f32.mrf.mxu1 }
 0x323   : > { %v3029_v46 = vadd.f32 %v5637_v16, %v2989_v24  ;;  %v3407_v53 = vadd.f32 %v5872_v1, %v3242_v9  ;;  %4105 = vmatmul.msk.f32.gmra.mxu3 %vm363_vm1, %v2422_v56  ;;  %v5957_v1 = vpop.f32.mrf.mxu2 }
 0x324   : > { %4143 = vmatmul.msk.f32.gmra.mxu0 %vm363_vm1, %v2732_v60 }
 0x325   : > { %4180 = vmatmul.msk.f32.gmra.mxu1 %vm363_vm1, %v4424_v5  ;;  %v3065_v58 = vsub.f32 0.0, %v3029_v46  ;;  %4196 = vmatmul.msk.f32.gmra.mxu2 %vm3433_vm2, %v3407_v53 }
 0x326   : > { %v2610_v8 = vpop.f32.mrf.mxu3 }
 0x327   : > { %v4317_v49 = vpop.eup %4316  ;;  %v3119_v29 = vmul.f32 1.442695, %v3065_v58  ;;  %v2680_v26 = vadd.f32 %v2610_v8, %v2370_v14  ;;  %v2372_v14 = vadd.f32 %v5657_v36, %v5475_v23 }
 0x328   : > { %v4319_v30 = vpop.eup %4318  ;;  %v3172_v63 = vadd.f32 1.0, %v4317_v49 }
 0x329   : > { %4320 = vpow2.f32 %v3119_v29  ;;  %v2990_v43 = vadd.f32 %v2920_v4, %v2680_v26  ;;  %v3243_v50 = vmul.f32 %v4319_v30, %v5911_v41  ;;  %v2923_v19 = vpop.f32.mrf.mxu0 }
 0x32a   : > { %4322 = vrcp.f32 %v3172_v63  ;;  %v5960_v35 = vpop.f32.mrf.mxu1 }
 0x32b   : > { %v3030_v52 = vadd.f32 %v5637_v16, %v2990_v43  ;;  %v3408_v33 = vadd.f32 %v5891_v47, %v3243_v50 }
 0x32d   : > { %v3066_v21 = vsub.f32 0.0, %v3030_v52  ;;  %4197 = vmatmul.msk.f32.gmra.mxu2 %vm3433_vm2, %v3408_v33  ;;  %v2373_v33 = vadd.f32 %v5672_v2, %v5486_v20 }
 0x32e   : > { %v2613_v41 = vpop.f32.mrf.mxu3 }
 0x32f   : > { %v4321_v10 = vpop.eup %4320  ;;  %v3121_v28 = vmul.f32 1.442695, %v3066_v21  ;;  %v2681_v13 = vadd.f32 %v2613_v41, %v2371_v11 }
 0x330   : > { %v4323_v56 = vpop.eup %4322  ;;  %v3173_v24 = vadd.f32 1.0, %v4321_v10  ;;  %v3559_v7 = vpop.f32.mrf.mxu2 }
 0x331   : > { %4324 = vpow2.f32 %v3121_v28  ;;  %v2991_v59 = vadd.f32 %v2923_v19, %v2681_v13  ;;  %v3560_v47 = vadd.f32 %v5971_v62, %v3559_v7  ;;  %v3244_v9 = vmul.f32 %v4323_v56, %v5930_v37  ;;  %v2926_v4 = vpop.f32.mrf.mxu0 }
 0x332   : > { %4326 = vrcp.f32 %v3173_v24  ;;  %v5984_v5 = vpop.f32.mrf.mxu1 }
 0x333   : > { %v3031_v60 = vadd.f32 %v5637_v16, %v2991_v59  ;;  %3668 = vst.msk [vmem:[%s5976_s21] sm:$0xff] %vm3667_vm3, %v3560_v47  ;;  %v3409_v53 = vadd.f32 %v5908_v40, %v3244_v9  ;;  %v2374_v9 = vadd.f32 %v5690_v57, %v5497_v61 }
 0x335   : > { %v3067_v58 = vsub.f32 0.0, %v3031_v60  ;;  %4198 = vmatmul.msk.f32.gmra.mxu2 %vm3433_vm2, %v3409_v53 }
 0x336   : > { %v2616_v8 = vpop.f32.mrf.mxu3 }
 0x337   : > { %v4325_v49 = vpop.eup %4324  ;;  %v3123_v37 = vmul.f32 1.442695, %v3067_v58  ;;  %v2682_v29 = vadd.f32 %v2616_v8, %v2372_v14 }
 0x338   : > { %v4327_v26 = vpop.eup %4326  ;;  %v3174_v30 = vadd.f32 1.0, %v4325_v49  ;;  %v3562_v63 = vpop.f32.mrf.mxu2 }
 0x339   : > { %4328 = vpow2.f32 %v3123_v37  ;;  %v2992_v43 = vadd.f32 %v2926_v4, %v2682_v29  ;;  %v3563_v40 = vadd.f32 %v5971_v62, %v3562_v63  ;;  %v3245_v50 = vmul.f32 %v4327_v26, %v3029_v46  ;;  %v2929_v19 = vpop.f32.mrf.mxu0 }
 0x33a   : > { %4330 = vrcp.f32 %v3174_v30  ;;  %v5997_v41 = vpop.f32.mrf.mxu1 }
 0x33b   : > { %v3032_v23 = vadd.f32 %v5637_v16, %v2992_v43  ;;  %3669 = vst.msk [vmem:[%s5976_s21 + $0x8] sm:$0xff] %vm3667_vm3, %v3563_v40  ;;  %v3410_v36 = vadd.f32 %v5927_v31, %v3245_v50  ;;  %v2375_v43 = vadd.f32 %v5709_v39, %v5508_v15  ;;  %v6023_v15 = vld [vmem:[%s6184_s2] ss:$0 sm:$0xff] }
 0x33d   : > { %v3068_v11 = vsub.f32 0.0, %v3032_v23  ;;  %4199 = vmatmul.msk.f32.gmra.mxu2 %vm3433_vm2, %v3410_v36 }
 0x33e   : > { %v2619_v21 = vpop.f32.mrf.mxu3 }
 0x33f   : > { %v4329_v10 = vpop.eup %4328  ;;  %v3125_v46 = vmul.f32 1.442695, %v3068_v11  ;;  %v2683_v28 = vadd.f32 %v2619_v21, %v2373_v33 }
 0x340   : > { %v4331_v13 = vpop.eup %4330  ;;  %v3175_v56 = vadd.f32 1.0, %v4329_v10  ;;  %v3565_v24 = vpop.f32.mrf.mxu2 }
 0x341   : > { %4332 = vpow2.f32 %v3125_v46  ;;  %v2993_v7 = vadd.f32 %v2929_v19, %v2683_v28  ;;  %v3566_v31 = vadd.f32 %v5971_v62, %v3565_v24  ;;  %v3246_v59 = vmul.f32 %v4331_v13, %v3030_v52  ;;  %v2932_v47 = vpop.f32.mrf.mxu0 }
 0x342   : > { %4334 = vrcp.f32 %v3175_v56  ;;  %v6007_v29 = vpop.f32.mrf.mxu1  ;;  %v2376_v56 = vadd.f32 %v5734_v6, %v5519_v54 }
 0x343   : > { %v3033_v20 = vadd.f32 %v5637_v16, %v2993_v7  ;;  %3670 = vst.msk [vmem:[%s5976_s21 + $0x10] sm:$0xff] %vm3667_vm3, %v3566_v31  ;;  %v3411_v2 = vadd.f32 %v5946_v32, %v3246_v59 }
 0x345   : > { %v3069_v4 = vsub.f32 0.0, %v3033_v20  ;;  %4200 = vmatmul.msk.f32.gmra.mxu2 %vm3433_vm2, %v3411_v2 }
 0x346   : > { %v2622_v53 = vpop.f32.mrf.mxu3 }
 0x347   : > { %v4333_v14 = vpop.eup %4332  ;;  %v3127_v58 = vmul.f32 1.442695, %v3069_v4  ;;  %v2684_v8 = vadd.f32 %v2622_v53, %v2374_v9 }
 0x348   : > { %v4335_v52 = vpop.eup %4334  ;;  %v3176_v49 = vadd.f32 1.0, %v4333_v14  ;;  %v3568_v37 = vpop.f32.mrf.mxu2 }
 0x349   : > { %4336 = vpow2.f32 %v3127_v58  ;;  %v2994_v26 = vadd.f32 %v2932_v47, %v2684_v8  ;;  %v3569_v32 = vadd.f32 %v5971_v62, %v3568_v37  ;;  %v3247_v30 = vmul.f32 %v4335_v52, %v3031_v60  ;;  %v2935_v63 = vpop.f32.mrf.mxu0 }
 0x34a   : > { %4338 = vrcp.f32 %v3176_v49  ;;  %v6018_v28 = vpop.f32.mrf.mxu1  ;;  %v2377_v8 = vadd.f32 %v5757_v45, %v5530_v44 }
 0x34b   : > { %v3034_v61 = vadd.f32 %v5637_v16, %v2994_v26  ;;  %3671 = vst.msk [vmem:[%s5976_s21 + $0x18] sm:$0xff] %vm3667_vm3, %v3569_v32  ;;  %v3412_v57 = vadd.f32 %v5960_v35, %v3247_v30 }
 0x34d   : > { %v3070_v40 = vsub.f32 0.0, %v3034_v61  ;;  %4201 = vmatmul.msk.f32.gmra.mxu2 %vm3433_vm2, %v3412_v57 }
 0x34e   : > { %v2625_v50 = vpop.f32.mrf.mxu3 }
 0x34f   : > { %v4337_v19 = vpop.eup %4336  ;;  %v3129_v36 = vmul.f32 1.442695, %v3070_v40  ;;  %v2685_v33 = vadd.f32 %v2625_v50, %v2375_v43  ;;  %v2378_v50 = vadd.f32 %v5776_v27, %v5539_v12 }
 0x350   : > { %v4339_v60 = vpop.eup %4338  ;;  %v3177_v11 = vadd.f32 1.0, %v4337_v19  ;;  %v3571_v21 = vpop.f32.mrf.mxu2 }
 0x351   : > { %4340 = vpow2.f32 %v3129_v36  ;;  %v2995_v16 = vadd.f32 %v2935_v63, %v2685_v33  ;;  %v3572_v10 = vadd.f32 %v5971_v62, %v3571_v21  ;;  %v3248_v46 = vmul.f32 %v4339_v60, %v3032_v23  ;;  %v2938_v35 = vpop.f32.mrf.mxu0 }
 0x352   : > { %4342 = vrcp.f32 %v3177_v11  ;;  %v3359_v58 = vpop.f32.mrf.mxu1 }
 0x353   : > { %v3035_v39 = vadd.f32 %v6023_v15, %v2995_v16  ;;  %3672 = vst.msk [vmem:[%s5976_s21 + $0x20] sm:$0xff] %vm3667_vm3, %v3572_v10  ;;  %v3413_v13 = vadd.f32 %v5984_v5, %v3248_v46 }
 0x355   : > { %v3071_v24 = vsub.f32 0.0, %v3035_v39  ;;  %4202 = vmatmul.msk.f32.gmra.mxu2 %vm3433_vm2, %v3413_v13 }
 0x356   : > { %v2628_v23 = vpop.f32.mrf.mxu3 }
 0x357   : > { %v4341_v7 = vpop.eup %4340  ;;  %v3131_v31 = vmul.f32 1.442695, %v3071_v24  ;;  %v2686_v59 = vadd.f32 %v2628_v23, %v2376_v56  ;;  %v2379_v56 = vadd.f32 %v5797_v22, %v5550_v3 }
 0x358   : > { %v4343_v47 = vpop.eup %4342  ;;  %v3178_v2 = vadd.f32 1.0, %v4341_v7  ;;  %v3574_v9 = vpop.f32.mrf.mxu2 }
 0x359   : > { %4344 = vpow2.f32 %v3131_v31  ;;  %v2996_v4 = vadd.f32 %v2938_v35, %v2686_v59  ;;  %v3575_v53 = vadd.f32 %v5971_v62, %v3574_v9  ;;  %v3249_v14 = vmul.f32 %v4343_v47, %v3033_v20  ;;  %v2941_v5 = vpop.f32.mrf.mxu0 }
 0x35a   : > { %4346 = vrcp.f32 %v3178_v2  ;;  %v3362_v33 = vpop.f32.mrf.mxu1 }
 0x35b   : > { %v3036_v54 = vadd.f32 %v6023_v15, %v2996_v4  ;;  %3673 = vst.msk [vmem:[%s5976_s21 + $0x28] sm:$0xff] %vm3667_vm3, %v3575_v53  ;;  %v3414_v6 = vadd.f32 %v5997_v41, %v3249_v14 }
 0x35d   : > { %v3072_v52 = vsub.f32 0.0, %v3036_v54  ;;  %4203 = vmatmul.msk.f32.gmra.mxu2 %vm3433_vm2, %v3414_v6 }
 0x35e   : > { %v2631_v49 = vpop.f32.mrf.mxu3 }
 0x35f   : > { %v4345_v37 = vpop.eup %4344  ;;  %v3133_v26 = vmul.f32 1.442695, %v3072_v52  ;;  %v2687_v20 = vadd.f32 %v2631_v49, %v2377_v8 }
 0x360   : > { %v4347_v32 = vpop.eup %4346  ;;  %v3179_v30 = vadd.f32 1.0, %v4345_v37  ;;  %v3577_v63 = vpop.f32.mrf.mxu2 }
 0x361   : > { %4348 = vpow2.f32 %v3133_v26  ;;  %v2997_v57 = vadd.f32 %v2941_v5, %v2687_v20  ;;  %v3578_v43 = vadd.f32 %v5971_v62, %v3577_v63  ;;  %v3250_v41 = vmul.f32 %v4347_v32, %v3034_v61  ;;  %v2944_v40 = vpop.f32.mrf.mxu0 }
 0x362   : > { %4350 = vrcp.f32 %v3179_v30  ;;  %v3365_v9 = vpop.f32.mrf.mxu1  ;;  %v2380_v5 = vadd.f32 %v5822_v17, %v5561_v51 }
 0x363   : > { %v3037_v44 = vadd.f32 %v6023_v15, %v2997_v57  ;;  %3674 = vst.msk [vmem:[%s5976_s21 + $0x30] sm:$0xff] %vm3667_vm3, %v3578_v43  ;;  %v3415_v45 = vadd.f32 %v6007_v29, %v3250_v41  ;;  %v2381_v43 = vadd.f32 %v5848_v25, %v5572_v38 }
 0x365   : > { %v3073_v19 = vsub.f32 0.0, %v3037_v44  ;;  %4204 = vmatmul.msk.f32.gmra.mxu2 %vm3433_vm2, %v3415_v45 }
 0x366   : > { %v2634_v36 = vpop.f32.mrf.mxu3 }
 0x367   : > { %v4349_v60 = vpop.eup %4348  ;;  %v3135_v11 = vmul.f32 1.442695, %v3073_v19  ;;  %v2688_v61 = vadd.f32 %v2634_v36, %v2378_v50 }
 0x368   : > { %v4351_v21 = vpop.eup %4350  ;;  %v3180_v16 = vadd.f32 1.0, %v4349_v60  ;;  %v3580_v10 = vpop.f32.mrf.mxu2 }
 0x369   : > { %4352 = vpow2.f32 %v3135_v11  ;;  %v2998_v46 = vadd.f32 %v2944_v40, %v2688_v61  ;;  %v3581_v35 = vadd.f32 %v5971_v62, %v3580_v10  ;;  %v3251_v29 = vmul.f32 %v4351_v21, %v3035_v39  ;;  %v2947_v13 = vpop.f32.mrf.mxu0 }
 0x36a   : > { %4354 = vrcp.f32 %v3180_v16  ;;  %v3368_v57 = vpop.f32.mrf.mxu1  ;;  %v2382_v10 = vadd.f32 %v5867_v0, %v5583_v18 }
 0x36b   : > { %v3038_v12 = vadd.f32 %v6023_v15, %v2998_v46  ;;  %3675 = vst.msk [vmem:[%s5976_s21 + $0x38] sm:$0xff] %vm3667_vm3, %v3581_v35  ;;  %v3416_v27 = vadd.f32 %v6018_v28, %v3251_v29 }
 0x36d   : > { %v3074_v24 = vsub.f32 0.0, %v3038_v12  ;;  %4205 = vmatmul.msk.f32.gmra.mxu2 %vm3433_vm2, %v3416_v27 }
 0x36e   : > { %v2637_v23 = vpop.f32.mrf.mxu3 }
 0x36f   : > { %v4353_v7 = vpop.eup %4352  ;;  %v3137_v31 = vmul.f32 1.442695, %v3074_v24  ;;  %v2689_v59 = vadd.f32 %v2637_v23, %v2379_v56 }
 0x370   : > { %v4355_v39 = vpop.eup %4354  ;;  %v3181_v47 = vadd.f32 1.0, %v4353_v7  ;;  %v3583_v2 = vpop.f32.mrf.mxu2 }
 0x371   : > { %4356 = vpow2.f32 %v3137_v31  ;;  %v2999_v4 = vadd.f32 %v2947_v13, %v2689_v59  ;;  %v3584_v53 = vadd.f32 %v5971_v62, %v3583_v2  ;;  %v3252_v28 = vmul.f32 %v4355_v39, %v3036_v54  ;;  %v2950_v14 = vpop.f32.mrf.mxu0 }
 0x372   : > { %4358 = vrcp.f32 %v3181_v47  ;;  %v3371_v16 = vpop.f32.mrf.mxu1  ;;  %v2383_v39 = vadd.f32 %v5889_v48, %v5592_v34 }
 0x373   : > { %v3039_v3 = vadd.f32 %v6023_v15, %v2999_v4  ;;  %3676 = vst.msk [vmem:[%s5976_s21 + $0x40] sm:$0xff] %vm3667_vm3, %v3584_v53  ;;  %v3417_v22 = vadd.f32 %v3359_v58, %v3252_v28 }
 0x375   : > { %v3075_v6 = vsub.f32 0.0, %v3039_v3  ;;  %4206 = vmatmul.msk.f32.gmra.mxu2 %vm3433_vm2, %v3417_v22 }
 0x376   : > { %v2640_v8 = vpop.f32.mrf.mxu3 }
 0x377   : > { %v4357_v52 = vpop.eup %4356  ;;  %v3139_v49 = vmul.f32 1.442695, %v3075_v6  ;;  %v2690_v37 = vadd.f32 %v2640_v8, %v2380_v5 }
 0x378   : > { %v4359_v26 = vpop.eup %4358  ;;  %v3182_v54 = vadd.f32 1.0, %v4357_v52  ;;  %v3586_v20 = vpop.f32.mrf.mxu2 }
 0x379   : > { %4360 = vpow2.f32 %v3139_v49  ;;  %v3000_v32 = vadd.f32 %v2950_v14, %v2690_v37  ;;  %v3587_v30 = vadd.f32 %v5971_v62, %v3586_v20  ;;  %v3253_v63 = vmul.f32 %v4359_v26, %v3037_v44  ;;  %v2953_v58 = vpop.f32.mrf.mxu0  ;;  %v6308_v49 = vld [vmem:[#allocation6_spill] sm:$0xff] }
 0x37a   : > { %4362 = vrcp.f32 %v3182_v54  ;;  %v2384_v37 = vadd.f32 %v5915_v55, %v6308_v49 }
 0x37b   : > { %v3040_v51 = vadd.f32 %v6023_v15, %v3000_v32  ;;  %3677 = vst.msk [vmem:[%s5976_s21 + $0x48] sm:$0xff] %vm3667_vm3, %v3587_v30  ;;  %v3418_v17 = vadd.f32 %v3362_v33, %v3253_v63 }
 0x37d   : > { %v3076_v41 = vsub.f32 0.0, %v3040_v51  ;;  %4207 = vmatmul.msk.f32.gmra.mxu2 %vm3433_vm2, %v3418_v17 }
 0x37e   : > { %v2643_v40 = vpop.f32.mrf.mxu3 }
 0x37f   : > { %v4361_v45 = vpop.eup %4360  ;;  %v3141_v50 = vmul.f32 1.442695, %v3076_v41  ;;  %v2691_v19 = vadd.f32 %v2643_v40, %v2381_v43 }
 0x380   : > { %v4363_v44 = vpop.eup %4362  ;;  %v3183_v36 = vadd.f32 1.0, %v4361_v45  ;;  %v3589_v60 = vpop.f32.mrf.mxu2 }
 0x381   : > { %4364 = vpow2.f32 %v3141_v50  ;;  %v3001_v11 = vadd.f32 %v2953_v58, %v2691_v19  ;;  %v3590_v61 = vadd.f32 %v5971_v62, %v3589_v60  ;;  %v3254_v21 = vmul.f32 %v4363_v44, %v3038_v12  ;;  %v2956_v33 = vpop.f32.mrf.mxu0  ;;  %v6309_v50 = vld [vmem:[#allocation2_spill] sm:$0xff] }
 0x382   : > { %4366 = vrcp.f32 %v3183_v36  ;;  %v2385_v19 = vadd.f32 %v5941_v42, %v6309_v50 }
 0x383   : > { %v3041_v38 = vadd.f32 %v6023_v15, %v3001_v11  ;;  %3678 = vst.msk [vmem:[%s5976_s21 + $0x50] sm:$0xff] %vm3667_vm3, %v3590_v61  ;;  %v3419_v25 = vadd.f32 %v3365_v9, %v3254_v21  ;;  %v3374_v9 = vpop.f32.mrf.mxu1 }
 0x385   : > { %v3077_v46 = vsub.f32 0.0, %v3041_v38  ;;  %4208 = vmatmul.msk.f32.gmra.mxu2 %vm3433_vm2, %v3419_v25 }
 0x386   : > { %v2646_v35 = vpop.f32.mrf.mxu3 }
 0x387   : > { %v4365_v29 = vpop.eup %4364  ;;  %v3143_v13 = vmul.f32 1.442695, %v3077_v46  ;;  %v2692_v27 = vadd.f32 %v2646_v35, %v2382_v10 }
 0x388   : > { %v4367_v12 = vpop.eup %4366  ;;  %v3184_v56 = vadd.f32 1.0, %v4365_v29  ;;  %v3592_v24 = vpop.f32.mrf.mxu2  ;;  %v6310_v29 = vld [vmem:[#allocation3_spill] sm:$0xff] }
 0x389   : > { %4368 = vpow2.f32 %v3143_v13  ;;  %v3002_v23 = vadd.f32 %v2956_v33, %v2692_v27  ;;  %v3593_v7 = vadd.f32 %v5971_v62, %v3592_v24  ;;  %v3255_v31 = vmul.f32 %v4367_v12, %v3039_v3  ;;  %v2959_v59 = vpop.f32.mrf.mxu0 }
 0x38a   : > { %4370 = vrcp.f32 %v3184_v56  ;;  %v2386_v13 = vadd.f32 %v5957_v1, %v6310_v29 }
 0x38b   : > { %v3042_v18 = vadd.f32 %v6023_v15, %v3002_v23  ;;  %3679 = vst.msk [vmem:[%s5976_s21 + $0x58] sm:$0xff] %vm3667_vm3, %v3593_v7  ;;  %v3420_v0 = vadd.f32 %v3368_v57, %v3255_v31 }
 0x38d   : > { %v3078_v47 = vsub.f32 0.0, %v3042_v18  ;;  %4209 = vmatmul.msk.f32.gmra.mxu2 %vm3433_vm2, %v3420_v0 }
 0x38e   : > { %v2649_v2 = vpop.f32.mrf.mxu3 }
 0x38f   : > { %v4369_v4 = vpop.eup %4368  ;;  %v3145_v53 = vmul.f32 1.442695, %v3078_v47  ;;  %v2693_v28 = vadd.f32 %v2649_v2, %v2383_v39 }
 0x390   : > { %v4371_v14 = vpop.eup %4370  ;;  %v3185_v3 = vadd.f32 1.0, %v4369_v4  ;;  %v3595_v22 = vpop.f32.mrf.mxu2 }
 0x391   : > { %4372 = vpow2.f32 %v3145_v53  ;;  %v3003_v5 = vadd.f32 %v2959_v59, %v2693_v28  ;;  %v3596_v6 = vadd.f32 %v5971_v62, %v3595_v22  ;;  %v3256_v8 = vmul.f32 %v4371_v14, %v3040_v51  ;;  %v2962_v52 = vpop.f32.mrf.mxu0  ;;  %v3377_v51 = vpop.f32.mrf.mxu1 }
 0x392   : > { %4374 = vrcp.f32 %v3185_v3 }
 0x393   : > { %v3043_v34 = vadd.f32 %v6023_v15, %v3003_v5  ;;  %3680 = vst.msk [vmem:[%s5976_s21 + $0x60] sm:$0xff] %vm3667_vm3, %v3596_v6  ;;  %v3421_v48 = vadd.f32 %v3371_v16, %v3256_v8 }
 0x395   : > { %v3079_v26 = vsub.f32 0.0, %v3043_v34  ;;  %4210 = vmatmul.msk.f32.gmra.mxu2 %vm3433_vm2, %v3421_v48 }
 0x396   : > { %v2652_v54 = vpop.f32.mrf.mxu3 }
 0x397   : > { %v4373_v20 = vpop.eup %4372  ;;  %v3147_v32 = vmul.f32 1.442695, %v3079_v26  ;;  %v2694_v30 = vadd.f32 %v2652_v54, %v2384_v37 }
 0x398   : > { %v4375_v63 = vpop.eup %4374  ;;  %v3186_v58 = vadd.f32 1.0, %v4373_v20  ;;  %v3598_v57 = vpop.f32.mrf.mxu2 }
 0x399   : > { %4376 = vpow2.f32 %v3147_v32  ;;  %v3004_v17 = vadd.f32 %v2962_v52, %v2694_v30  ;;  %v3599_v43 = vadd.f32 %v5971_v62, %v3598_v57  ;;  %v3257_v41 = vmul.f32 %v4375_v63, %v3041_v38  ;;  %v2965_v45 = vpop.f32.mrf.mxu0  ;;  %v3380_v46 = vpop.f32.mrf.mxu1 }
 0x39a   : > { %4378 = vrcp.f32 %v3186_v58 }
 0x39b   : > { %v3044_v55 = vadd.f32 %v6023_v15, %v3004_v17  ;;  %3681 = vst.msk [vmem:[%s5976_s21 + $0x68] sm:$0xff] %vm3667_vm3, %v3599_v43  ;;  %v3422_v40 = vadd.f32 %v3374_v9, %v3257_v41 }
 0x39d   : > { %v3080_v44 = vsub.f32 0.0, %v3044_v55  ;;  %4211 = vmatmul.msk.f32.gmra.mxu2 %vm3433_vm2, %v3422_v40 }
 0x39e   : > { %v2655_v36 = vpop.f32.mrf.mxu3 }
 0x39f   : > { %v4377_v60 = vpop.eup %4376  ;;  %v3149_v11 = vmul.f32 1.442695, %v3080_v44  ;;  %v2695_v61 = vadd.f32 %v2655_v36, %v2385_v19 }
 0x3a0   : > { %v4379_v21 = vpop.eup %4378  ;;  %v3187_v33 = vadd.f32 1.0, %v4377_v60  ;;  %v3601_v38 = vpop.f32.mrf.mxu2 }
 0x3a1   : > { %4380 = vpow2.f32 %v3149_v11  ;;  %v3005_v25 = vadd.f32 %v2965_v45, %v2695_v61  ;;  %v3602_v16 = vadd.f32 %v5971_v62, %v3601_v38  ;;  %v3258_v10 = vmul.f32 %v4379_v21, %v3042_v18  ;;  %v2968_v56 = vpop.f32.mrf.mxu0  ;;  %v3383_v9 = vpop.f32.mrf.mxu1 }
 0x3a2   : > { %4382 = vrcp.f32 %v3187_v33 }
 0x3a3   : > { %v3045_v42 = vadd.f32 %v6023_v15, %v3005_v25  ;;  %3682 = vst.msk [vmem:[%s5976_s21 + $0x70] sm:$0xff] %vm3667_vm3, %v3602_v16  ;;  %v3423_v35 = vadd.f32 %v3377_v51, %v3258_v10 }
 0x3a5   : > { %v3081_v27 = vsub.f32 0.0, %v3045_v42  ;;  %4212 = vmatmul.msk.f32.gmra.mxu2 %vm3433_vm2, %v3423_v35 }
 0x3a6   : > { %v2658_v12 = vpop.f32.mrf.mxu3 }
 0x3a7   : > { %v4381_v24 = vpop.eup %4380  ;;  %v3151_v23 = vmul.f32 1.442695, %v3081_v27  ;;  %v2696_v7 = vadd.f32 %v2658_v12, %v2386_v13 }
 0x3a8   : > { %v4383_v31 = vpop.eup %4382  ;;  %v3188_v59 = vadd.f32 1.0, %v4381_v24  ;;  %v3604_v18 = vpop.f32.mrf.mxu2 }
 0x3a9   : > { %4384 = vpow2.f32 %v3151_v23  ;;  %v3006_v0 = vadd.f32 %v2968_v56, %v2696_v7  ;;  %v3605_v39 = vadd.f32 %v5971_v62, %v3604_v18  ;;  %v3259_v47 = vmul.f32 %v4383_v31, %v3043_v34  ;;  %v3386_v8 = vpop.f32.mrf.mxu1 }
 0x3aa   : > { %4386 = vrcp.f32 %v3188_v59 }
 0x3ab   : > { %v3046_v1 = vadd.f32 %v6023_v15, %v3006_v0  ;;  %3683 = vst.msk [vmem:[%s5976_s21 + $0x78] sm:$0xff] %vm3667_vm3, %v3605_v39  ;;  %v3424_v2 = vadd.f32 %v3380_v46, %v3259_v47 }
 0x3ad   : > { %v3082_v4 = vsub.f32 0.0, %v3046_v1  ;;  %4213 = vmatmul.msk.f32.gmra.mxu2 %vm3433_vm2, %v3424_v2 }
 0x3af   : > { %v4385_v53 = vpop.eup %4384  ;;  %v3153_v28 = vmul.f32 1.442695, %v3082_v4 }
 0x3b0   : > { %v4387_v14 = vpop.eup %4386  ;;  %v3189_v3 = vadd.f32 1.0, %v4385_v53  ;;  %v3607_v22 = vpop.f32.mrf.mxu2 }
 0x3b1   : > { %4388 = vpow2.f32 %v3153_v28  ;;  %v3608_v5 = vadd.f32 %v5971_v62, %v3607_v22  ;;  %v3260_v6 = vmul.f32 %v4387_v14, %v3044_v55  ;;  %v3389_v30 = vpop.f32.mrf.mxu1 }
 0x3b2   : > { %4390 = vrcp.f32 %v3189_v3 }
 0x3b3   : > { %3684 = vst.msk [vmem:[%s5976_s21 + $0x80] sm:$0xff] %vm3667_vm3, %v3608_v5  ;;  %v3425_v15 = vadd.f32 %v3383_v9, %v3260_v6 }
 0x3b5   : > { %4214 = vmatmul.msk.f32.gmra.mxu2 %vm3433_vm2, %v3425_v15 }
 0x3b7   : > { %v4389_v52 = vpop.eup %4388 }
 0x3b8   : > { %v4391_v34 = vpop.eup %4390  ;;  %v3190_v48 = vadd.f32 1.0, %v4389_v52  ;;  %v3610_v49 = vpop.f32.mrf.mxu2 }
 0x3b9   : > { %v3611_v37 = vadd.f32 %v5971_v62, %v3610_v49  ;;  %v3261_v26 = vmul.f32 %v4391_v34, %v3045_v42 }
 0x3ba   : > { %4392 = vrcp.f32 %v3190_v48 }
 0x3bb   : > { %3685 = vst.msk [vmem:[%s5976_s21 + $0x88] sm:$0xff] %vm3667_vm3, %v3611_v37  ;;  %v3426_v54 = vadd.f32 %v3386_v8, %v3261_v26 }
 0x3bd   : > { %4215 = vmatmul.msk.f32.gmra.mxu2 %vm3433_vm2, %v3426_v54 }
 0x3c0   : > { %v4393_v20 = vpop.eup %4392  ;;  %v3613_v32 = vpop.f32.mrf.mxu2 }
 0x3c1   : > { %v3614_v63 = vadd.f32 %v5971_v62, %v3613_v32  ;;  %v3262_v58 = vmul.f32 %v4393_v20, %v3046_v1 }
 0x3c3   : > { %3686 = vst.msk [vmem:[%s5976_s21 + $0x90] sm:$0xff] %vm3667_vm3, %v3614_v63  ;;  %v3427_v57 = vadd.f32 %v3389_v30, %v3262_v58 }
 0x3c5   : > { %4216 = vmatmul.msk.f32.gmra.mxu2 %vm3433_vm2, %v3427_v57 }
 0x3c8   : > { %v3616_v51 = vpop.f32.mrf.mxu2 }
 0x3c9   : > { %v3617_v17 = vadd.f32 %v5971_v62, %v3616_v51 }
 0x3cb   : > { %3687 = vst.msk [vmem:[%s5976_s21 + $0x98] sm:$0xff] %vm3667_vm3, %v3617_v17 }
 0x3d0   : > { %v3619_v43 = vpop.f32.mrf.mxu2 }
 0x3d1   : > { %v3620_v41 = vadd.f32 %v5971_v62, %v3619_v43 }
 0x3d3   : > { %3688 = vst.msk [vmem:[%s5976_s21 + $0xa0] sm:$0xff] %vm3667_vm3, %v3620_v41 }
 0x3d8   : > { %v3622_v55 = vpop.f32.mrf.mxu2 }
 0x3d9   : > { %v3623_v40 = vadd.f32 %v5971_v62, %v3622_v55 }
 0x3db   : > { %3689 = vst.msk [vmem:[%s5976_s21 + $0xa8] sm:$0xff] %vm3667_vm3, %v3623_v40 }
 0x3e0   : > { %v3625_v45 = vpop.f32.mrf.mxu2 }
 0x3e1   : > { %v3626_v50 = vadd.f32 %v5971_v62, %v3625_v45 }
 0x3e3   : > { %3690 = vst.msk [vmem:[%s5976_s21 + $0xb0] sm:$0xff] %vm3667_vm3, %v3626_v50 }
 0x3e8   : > { %v3628_v19 = vpop.f32.mrf.mxu2 }
 0x3e9   : > { %v3629_v44 = vadd.f32 %v5971_v62, %v3628_v19 }
 0x3eb   : > { %3691 = vst.msk [vmem:[%s5976_s21 + $0xb8] sm:$0xff] %vm3667_vm3, %v3629_v44 }
 0x3f0   : > { %v3631_v36 = vpop.f32.mrf.mxu2 }
 0x3f1   : > { %v3632_v60 = vadd.f32 %v5971_v62, %v3631_v36 }
 0x3f3   : > { %3692 = vst.msk [vmem:[%s5976_s21 + $0xc0] sm:$0xff] %vm3667_vm3, %v3632_v60 }
 0x3f8   : > { %v3634_v11 = vpop.f32.mrf.mxu2 }
 0x3f9   : > { %v3635_v61 = vadd.f32 %v5971_v62, %v3634_v11 }
 0x3fb   : > { %3693 = vst.msk [vmem:[%s5976_s21 + $0xc8] sm:$0xff] %vm3667_vm3, %v3635_v61 }
 0x400   : > { %v3637_v21 = vpop.f32.mrf.mxu2 }
 0x401   : > { %v3638_v33 = vadd.f32 %v5971_v62, %v3637_v21 }
 0x403   : > { %3694 = vst.msk [vmem:[%s5976_s21 + $0xd0] sm:$0xff] %vm3667_vm3, %v3638_v33 }
 0x408   : > { %v3640_v38 = vpop.f32.mrf.mxu2 }
 0x409   : > { %v3641_v25 = vadd.f32 %v5971_v62, %v3640_v38 }
 0x40b   : > { %3695 = vst.msk [vmem:[%s5976_s21 + $0xd8] sm:$0xff] %vm3667_vm3, %v3641_v25 }
 0x410   : > { %v3643_v16 = vpop.f32.mrf.mxu2 }
 0x411   : > { %v3644_v10 = vadd.f32 %v5971_v62, %v3643_v16 }
 0x413   : > { %3696 = vst.msk [vmem:[%s5976_s21 + $0xe0] sm:$0xff] %vm3667_vm3, %v3644_v10 }
 0x418   : > { %v3646_v46 = vpop.f32.mrf.mxu2 }
 0x419   : > { %v3647_v42 = vadd.f32 %v5971_v62, %v3646_v46 }
 0x41b   : > { %3697 = vst.msk [vmem:[%s5976_s21 + $0xe8] sm:$0xff] %vm3667_vm3, %v3647_v42 }
 0x420   : > { %v3649_v35 = vpop.f32.mrf.mxu2 }
 0x421   : > { %v3650_v29 = vadd.f32 %v5971_v62, %v3649_v35 }
 0x423   : > { %3698 = vst.msk [vmem:[%s5976_s21 + $0xf0] sm:$0xff] %vm3667_vm3, %v3650_v29 }
 0x428   : > { %v3652_v13 = vpop.f32.mrf.mxu2 }
 0x429   : > { %v3653_v27 = vadd.f32 %v5971_v62, %v3652_v13 }
 0x42b   : > { %3699 = vst.msk [vmem:[%s5976_s21 + $0xf8] sm:$0xff] %vm3667_vm3, %v3653_v27 }
 0x430   : > { %v3655_v12 = vpop.f32.mrf.mxu2 }
 0x431   : > { %v3656_v56 = vadd.f32 %v5971_v62, %v3655_v12 }
 0x433   : > { %3700 = vst.msk [vmem:[%s5976_s21 + $0x100] sm:$0xff] %vm3667_vm3, %v3656_v56 }
 0x438   : > { %v3658_v24 = vpop.f32.mrf.mxu2 }
 0x439   : > { %v3659_v23 = vadd.f32 %v5971_v62, %v3658_v24 }
 0x43b   : > { %3701 = vst.msk [vmem:[%s5976_s21 + $0x108] sm:$0xff] %vm3667_vm3, %v3659_v23 }
 0x440   : > { %v3661_v7 = vpop.f32.mrf.mxu2 }
 0x441   : > { %v3662_v31 = vadd.f32 %v5971_v62, %v3661_v7 }
 0x443   : > { %3702 = vst.msk [vmem:[%s5976_s21 + $0x110] sm:$0xff] %vm3667_vm3, %v3662_v31 }
 0x448   : > { %v3664_v59 = vpop.f32.mrf.mxu2 }
 0x449   : > { %v3665_v18 = vadd.f32 %v5971_v62, %v3664_v59 }
 0x44b   : > { %3703 = vst.msk [vmem:[%s5976_s21 + $0x118] sm:$0xff] %vm3667_vm3, %v3665_v18 }
 0x44c PF: > { %s16_s23 = sadd.s32 1, %s4448_s23   ;;  %s6311_s21 = smov %s4444_s22 }
 0x44d   : > { %p13_p5 = scmp.ge.s32.totalorder %s16_s23, 4   ;;  %s6312_s22 = smov %s6314_s24 }
 0x44f   :  { %15 = sbr.rel (!%p13_p5) target bundleno = 2 (0x2), region = 82 }

</bundles_post_ra>
